<compile_context>
chip_gen: v7x
topology: tpu7x:2x2x1
jax: 0.10.0
libtpu: 0.0.40
codegen_flags: <defaults>
</compile_context>

<pallas_src>
import functools

import jax
import jax.numpy as jnp
from jax.experimental import pallas as pl
from jax.experimental.pallas import tpu as pltpu

_LN_EPS = 1e-6


def _layernorm(u, gamma_row, beta_row):
    mu = jnp.mean(u, axis=-1, keepdims=True)
    cen = u - mu
    var = jnp.mean(cen * cen, axis=-1, keepdims=True)
    return cen * jax.lax.rsqrt(var + _LN_EPS) * gamma_row + beta_row


def _erf(z):
    # Abramowitz & Stegun 7.1.26 rational approximation (|err| < 1.5e-7).
    # TODO(synk): switch to lax.erf if/when a Mosaic lowering is guaranteed.
    a1, a2, a3, a4, a5 = (0.254829592, -0.284496736, 1.421413741,
                          -1.453152027, 1.061405429)
    p = 0.3275911
    az = jnp.abs(z)
    t = 1.0 / (1.0 + p * az)
    poly = ((((a5 * t + a4) * t + a3) * t + a2) * t + a1) * t
    r = 1.0 - poly * jnp.exp(-az * az)
    return jnp.where(z >= 0.0, r, -r)


def _gelu_exact(u):
    # nn.GELU() default = exact erf GELU.
    return 0.5 * u * (1.0 + _erf(u * 0.7071067811865476))


def _encoder_block_kernel(
    x_ref, wqkv_ref, bqkv_ref, wproj_ref, bproj_ref,
    g1_ref, be1_ref, g2_ref, be2_ref,
    w1_ref, bf1_ref, w2_ref, bf2_ref,
    o_ref, k_out_ref, v_out_ref,
    wav_scr,
    *, n_heads, block_b, seq_len):
    dim = x_ref.shape[-1]
    dh = dim // n_heads

    x = x_ref[...].astype(jnp.float32)                         # (Bb*T, dim)

    # ---- LN1 once for the whole row slab, then ONE fused QKV matmul ----
    xn1 = _layernorm(x, g1_ref[...], be1_ref[...])
    qkv = jnp.dot(xn1, wqkv_ref[...],
                  preferred_element_type=jnp.float32) + bqkv_ref[...]  # (Bb*T, 3*dim)

    # ---- per-(batch, head) attention; static unroll (both are small) ----
    for b in range(block_b):
        r0 = b * seq_len
        for h in range(n_heads):
            qh = qkv[r0:r0 + seq_len, h * dh:(h + 1) * dh]     # scale folded into W
            kh = qkv[r0:r0 + seq_len, dim + h * dh: dim + (h + 1) * dh]
            vh = qkv[r0:r0 + seq_len, 2 * dim + h * dh: 2 * dim + (h + 1) * dh]

            k_out_ref[b, h] = kh.astype(k_out_ref.dtype)
            v_out_ref[b, h] = vh.astype(v_out_ref.dtype)

            # scores: contract q,k over Dh directly (no explicit k^T)
            s = jax.lax.dot_general(qh, kh, (((1,), (1,)), ((), ())),
                                    preferred_element_type=jnp.float32)  # (T, T)
            e = jnp.exp(s - jnp.max(s, axis=-1, keepdims=True))
            attn = e / jnp.sum(e, axis=-1, keepdims=True)      # exact divide (parity)
            wav_scr[r0:r0 + seq_len, h * dh:(h + 1) * dh] = jnp.dot(
                attn, vh, preferred_element_type=jnp.float32)

    # ---- single K=dim output projection over the whole slab + residual ----
    x1 = x + jnp.dot(wav_scr[...], wproj_ref[...],
                     preferred_element_type=jnp.float32) + bproj_ref[...]

    # ---- LN2 + MLP + residual ----
    xn2 = _layernorm(x1, g2_ref[...], be2_ref[...])
    hmid = jnp.dot(xn2, w1_ref[...],
                   preferred_element_type=jnp.float32) + bf1_ref[...]
    hmid = _gelu_exact(hmid)
    mlp = jnp.dot(hmid, w2_ref[...],
                  preferred_element_type=jnp.float32) + bf2_ref[...]
    o_ref[...] = (x1 + mlp).astype(o_ref.dtype)


def encoder_block(x, params, n_heads, block_b=None):
    """Pallas forward of EncoderBlock.  params hold PyTorch-layout weights."""
    B, T, dim = x.shape
    assert dim % n_heads == 0
    Dh = dim // n_heads
    hidden = params["fc1_w"].shape[0]
    scale = float(Dh) ** -0.5

    # Rows per grid step: aim for M >= 256 MXU rows, must divide B.
    if block_b is None:
        block_b = min(B, max(1, 256 // max(T, 1)))
        while B % block_b:
            block_b -= 1
    assert B % block_b == 0
    Bb = block_b
    rows = Bb * T

    f32 = jnp.float32
    # --- one-time parameter re-layout; fold softmax scale into q columns ---
    col_scale = jnp.concatenate(
        [jnp.full((dim,), scale, f32), jnp.ones((2 * dim,), f32)])
    wqkv = jnp.transpose(params["qkv_w"]).astype(f32) * col_scale      # (dim, 3*dim)
    bqkv = (params["qkv_b"].astype(f32) * col_scale).reshape(1, 3 * dim)
    wproj = jnp.transpose(params["proj_w"])                            # (dim, dim)
    w1 = jnp.transpose(params["fc1_w"])                                # (dim, hidden)
    w2 = jnp.transpose(params["fc2_w"])                                # (hidden, dim)
    row = lambda v: v.reshape(1, -1)

    x2d = x.reshape(B * T, dim)   # flatten rows in the wrapper (layout plumbing)

    kernel = functools.partial(_encoder_block_kernel,
                               n_heads=n_heads, block_b=Bb, seq_len=T)
    const2 = lambda b: (0, 0)

    out_shapes = (
        jax.ShapeDtypeStruct((B * T, dim), x.dtype),            # block output (2D)
        jax.ShapeDtypeStruct((B, n_heads, T, Dh), x.dtype),     # k
        jax.ShapeDtypeStruct((B, n_heads, T, Dh), x.dtype),     # v
    )

    out2d, k, v = pl.pallas_call(
        kernel,
        out_shape=out_shapes,
        grid_spec=pltpu.PrefetchScalarGridSpec(
            num_scalar_prefetch=0,
            grid=(B // Bb,),
            in_specs=[
                pl.BlockSpec((rows, dim), lambda b: (b, 0)),          # x (row slab)
                pl.BlockSpec((dim, 3 * dim), const2),                 # Wqkv^T (q-scaled)
                pl.BlockSpec((1, 3 * dim), const2),                   # bqkv (q-scaled)
                pl.BlockSpec((dim, dim), const2),                     # Wproj^T
                pl.BlockSpec((1, dim), const2),                       # bproj
                pl.BlockSpec((1, dim), const2),                       # ln1 gamma
                pl.BlockSpec((1, dim), const2),                       # ln1 beta
                pl.BlockSpec((1, dim), const2),                       # ln2 gamma
                pl.BlockSpec((1, dim), const2),                       # ln2 beta
                pl.BlockSpec((dim, hidden), const2),                  # fc1 W^T
                pl.BlockSpec((1, hidden), const2),                    # fc1 b
                pl.BlockSpec((hidden, dim), const2),                  # fc2 W^T
                pl.BlockSpec((1, dim), const2),                       # fc2 b
            ],
            out_specs=[
                pl.BlockSpec((rows, dim), lambda b: (b, 0)),                 # out
                pl.BlockSpec((Bb, n_heads, T, Dh), lambda b: (b, 0, 0, 0)),  # k
                pl.BlockSpec((Bb, n_heads, T, Dh), lambda b: (b, 0, 0, 0)),  # v
            ],
            scratch_shapes=[
                pltpu.VMEM((rows, dim), jnp.float32),   # per-head wav column slab
            ],
        ),
        compiler_params=pltpu.CompilerParams(
            dimension_semantics=("parallel",),
            vmem_limit_bytes=48 * 1024 * 1024,
        ),
    )(x2d, wqkv, bqkv, wproj, row(params["proj_b"]),
      row(params["ln1_g"]), row(params["ln1_b"]),
      row(params["ln2_g"]), row(params["ln2_b"]),
      w1, row(params["fc1_b"]), w2, row(params["fc2_b"]))

    return out2d.reshape(B, T, dim), k, v


def _reference(x, p, n_heads):
    """Pure-JAX mirror of the PyTorch EncoderBlock.forward."""
    B, T, dim = x.shape
    Dh = dim // n_heads
    scale = float(Dh) ** -0.5

    def ln(u, g, b):
        mu = jnp.mean(u, axis=-1, keepdims=True)
        var = jnp.mean((u - mu) ** 2, axis=-1, keepdims=True)
        return (u - mu) / jnp.sqrt(var + _LN_EPS) * g + b

    xn = ln(x, p["ln1_g"], p["ln1_b"])
    qkv = xn @ p["qkv_w"].T + p["qkv_b"]
    qkv = qkv.reshape(B, T, 3, n_heads, Dh).transpose(2, 0, 3, 1, 4)
    q, k, v = qkv[0], qkv[1], qkv[2]
    dp = jnp.einsum("bhtd,bhsd->bhts", q, k) * scale
    attn = jax.nn.softmax(dp, axis=-1)
    wav = jnp.einsum("bhts,bhsd->bhtd", attn, v)
    wav = wav.transpose(0, 2, 1, 3).reshape(B, T, dim)
    x1 = x + wav @ p["proj_w"].T + p["proj_b"]
    xn2 = ln(x1, p["ln2_g"], p["ln2_b"])
    h1 = jax.nn.gelu(xn2 @ p["fc1_w"].T + p["fc1_b"], approximate=False)
    out = x1 + h1 @ p["fc2_w"].T + p["fc2_b"]
    return out, k, v


if __name__ == "__main__":
    # Small but lane-dense shapes: Dh = 128, dim/hidden multiples of 128, T % 8 == 0.
    B, T, n_heads, Dh = 2, 8, 2, 128
    dim = n_heads * Dh          # 256
    hidden = 4 * dim            # 1024  (mlp_ratio = 4.0)

    key = jax.random.PRNGKey(0)
    keys = jax.random.split(key, 13)
    std = 0.05
    params = {
        "ln1_g": 1.0 + 0.1 * jax.random.normal(keys[0], (dim,), jnp.float32),
        "ln1_b": 0.1 * jax.random.normal(keys[1], (dim,), jnp.float32),
        "qkv_w": std * jax.random.normal(keys[2], (3 * dim, dim), jnp.float32),
        "qkv_b": std * jax.random.normal(keys[3], (3 * dim,), jnp.float32),
        "proj_w": std * jax.random.normal(keys[4], (dim, dim), jnp.float32),
        "proj_b": std * jax.random.normal(keys[5], (dim,), jnp.float32),
        "ln2_g": 1.0 + 0.1 * jax.random.normal(keys[6], (dim,), jnp.float32),
        "ln2_b": 0.1 * jax.random.normal(keys[7], (dim,), jnp.float32),
        "fc1_w": std * jax.random.normal(keys[8], (hidden, dim), jnp.float32),
        "fc1_b": std * jax.random.normal(keys[9], (hidden,), jnp.float32),
        "fc2_w": std * jax.random.normal(keys[10], (dim, hidden), jnp.float32),
        "fc2_b": std * jax.random.normal(keys[11], (dim,), jnp.float32),
    }
    x = jax.random.normal(keys[12], (B, T, dim), jnp.float32)

    out, k, v = encoder_block(x, params, n_heads)
    out, k, v = jax.block_until_ready((out, k, v))

    # Compare against an f32-precision reference (default TPU matmul precision
    # may use single-pass bf16, which is *less* accurate than the kernel).
    with jax.default_matmul_precision("float32"):
        ref_out, ref_k, ref_v = _reference(x, params, n_heads)
    ref_out, ref_k, ref_v = jax.block_until_ready((ref_out, ref_k, ref_v))

    assert out.shape == (B, T, dim)
    assert k.shape == (B, n_heads, T, Dh) and v.shape == (B, n_heads, T, Dh)
    assert jnp.allclose(k, ref_k, atol=1e-4, rtol=1e-4), "k mismatch vs reference"
    assert jnp.allclose(v, ref_v, atol=1e-4, rtol=1e-4), "v mismatch vs reference"
    assert jnp.allclose(out, ref_out, atol=2e-3, rtol=2e-3), "x mismatch vs reference"

    print("KERNEL_OK")
</pallas_src>

<mosaic_0001>
module attributes {stable_mosaic.version = 11 : i64} {
  func.func @_encoder_block_kernel(%arg0: i32, %arg1: memref<16x256xf32, #tpu.memory_space<vmem>>, %arg2: memref<256x768xf32, #tpu.memory_space<vmem>>, %arg3: memref<1x768xf32, #tpu.memory_space<vmem>>, %arg4: memref<256x256xf32, #tpu.memory_space<vmem>>, %arg5: memref<1x256xf32, #tpu.memory_space<vmem>>, %arg6: memref<1x256xf32, #tpu.memory_space<vmem>>, %arg7: memref<1x256xf32, #tpu.memory_space<vmem>>, %arg8: memref<1x256xf32, #tpu.memory_space<vmem>>, %arg9: memref<1x256xf32, #tpu.memory_space<vmem>>, %arg10: memref<256x1024xf32, #tpu.memory_space<vmem>>, %arg11: memref<1x1024xf32, #tpu.memory_space<vmem>>, %arg12: memref<1024x256xf32, #tpu.memory_space<vmem>>, %arg13: memref<1x256xf32, #tpu.memory_space<vmem>>, %arg14: memref<16x256xf32, #tpu.memory_space<vmem>>, %arg15: memref<2x2x8x128xf32, #tpu.memory_space<vmem>>, %arg16: memref<2x2x8x128xf32, #tpu.memory_space<vmem>>, %arg17: memref<16x256xf32, #tpu.memory_space<vmem>>) attributes {dimension_semantics = [#tpu.dimension_semantics<parallel>], iteration_bounds = array<i64: 1>, scalar_prefetch = 0 : i64, scratch_operands = 1 : i64, tpu.core_type = #tpu.core_type<tc>, window_params = [{transform_indices = @transform_0, window_bounds = array<i64: 16, 256>}, {pipeline_mode = #tpu.pipeline_mode<synchronous>, transform_indices = @transform_1, window_bounds = array<i64: 256, 768>}, {pipeline_mode = #tpu.pipeline_mode<synchronous>, transform_indices = @transform_2, window_bounds = array<i64: 1, 768>}, {pipeline_mode = #tpu.pipeline_mode<synchronous>, transform_indices = @transform_3, window_bounds = array<i64: 256, 256>}, {pipeline_mode = #tpu.pipeline_mode<synchronous>, transform_indices = @transform_4, window_bounds = array<i64: 1, 256>}, {pipeline_mode = #tpu.pipeline_mode<synchronous>, transform_indices = @transform_5, window_bounds = array<i64: 1, 256>}, {pipeline_mode = #tpu.pipeline_mode<synchronous>, transform_indices = @transform_6, window_bounds = array<i64: 1, 256>}, {pipeline_mode = #tpu.pipeline_mode<synchronous>, transform_indices = @transform_7, window_bounds = array<i64: 1, 256>}, {pipeline_mode = #tpu.pipeline_mode<synchronous>, transform_indices = @transform_8, window_bounds = array<i64: 1, 256>}, {pipeline_mode = #tpu.pipeline_mode<synchronous>, transform_indices = @transform_9, window_bounds = array<i64: 256, 1024>}, {pipeline_mode = #tpu.pipeline_mode<synchronous>, transform_indices = @transform_10, window_bounds = array<i64: 1, 1024>}, {pipeline_mode = #tpu.pipeline_mode<synchronous>, transform_indices = @transform_11, window_bounds = array<i64: 1024, 256>}, {pipeline_mode = #tpu.pipeline_mode<synchronous>, transform_indices = @transform_12, window_bounds = array<i64: 1, 256>}, {transform_indices = @transform_13, window_bounds = array<i64: 16, 256>}, {transform_indices = @transform_14, window_bounds = array<i64: 2, 2, 8, 128>}, {transform_indices = @transform_15, window_bounds = array<i64: 2, 2, 8, 128>}]} {
    %c0 = arith.constant 0 : index
    %c0_0 = arith.constant 0 : index
    %0 = vector.load %arg1[%c0, %c0_0] : memref<16x256xf32, #tpu.memory_space<vmem>>, vector<16x256xf32>
    %c0_1 = arith.constant 0 : index
    %c0_2 = arith.constant 0 : index
    %1 = vector.load %arg6[%c0_1, %c0_2] : memref<1x256xf32, #tpu.memory_space<vmem>>, vector<1x256xf32>
    %c0_3 = arith.constant 0 : index
    %c0_4 = arith.constant 0 : index
    %2 = vector.load %arg7[%c0_3, %c0_4] : memref<1x256xf32, #tpu.memory_space<vmem>>, vector<1x256xf32>
    %cst = arith.constant dense<0.000000e+00> : vector<16xf32>
    %3 = vector.multi_reduction <add>, %0, %cst [1] : vector<16x256xf32> to vector<16xf32>
    %4 = vector.shape_cast %3 : vector<16xf32> to vector<16x1xf32>
    %cst_5 = arith.constant 2.560000e+02 : f32
    %5 = vector.broadcast %cst_5 : f32 to vector<16x1xf32>
    %6 = arith.divf %4, %5 : vector<16x1xf32>
    %7 = vector.broadcast %6 : vector<16x1xf32> to vector<16x256xf32>
    %8 = arith.subf %0, %7 : vector<16x256xf32>
    %9 = arith.mulf %8, %8 : vector<16x256xf32>
    %cst_6 = arith.constant dense<0.000000e+00> : vector<16xf32>
    %10 = vector.multi_reduction <add>, %9, %cst_6 [1] : vector<16x256xf32> to vector<16xf32>
    %11 = vector.shape_cast %10 : vector<16xf32> to vector<16x1xf32>
    %cst_7 = arith.constant 2.560000e+02 : f32
    %12 = vector.broadcast %cst_7 : f32 to vector<16x1xf32>
    %13 = arith.divf %11, %12 : vector<16x1xf32>
    %cst_8 = arith.constant 9.99999997E-7 : f32
    %14 = vector.broadcast %cst_8 : f32 to vector<16x1xf32>
    %15 = arith.addf %13, %14 : vector<16x1xf32>
    %16 = math.rsqrt %15 : vector<16x1xf32>
    %17 = vector.broadcast %16 : vector<16x1xf32> to vector<16x256xf32>
    %18 = arith.mulf %8, %17 : vector<16x256xf32>
    %19 = vector.broadcast %1 : vector<1x256xf32> to vector<16x256xf32>
    %20 = arith.mulf %18, %19 : vector<16x256xf32>
    %21 = vector.broadcast %2 : vector<1x256xf32> to vector<16x256xf32>
    %22 = arith.addf %20, %21 : vector<16x256xf32>
    %c0_9 = arith.constant 0 : index
    %c0_10 = arith.constant 0 : index
    %23 = vector.load %arg2[%c0_9, %c0_10] : memref<256x768xf32, #tpu.memory_space<vmem>>, vector<256x768xf32>
    %cst_11 = arith.constant dense<0.000000e+00> : vector<16x768xf32>
    %24 = tpu.matmul %22, %23, %cst_11 {dimension_numbers = #tpu.dot_dimension_numbers<[1], [0], [0], [1], [0, 0, 1, 1], [], []>} : vector<16x256xf32>, vector<256x768xf32>, vector<16x768xf32> -> vector<16x768xf32>
    %c0_12 = arith.constant 0 : index
    %c0_13 = arith.constant 0 : index
    %25 = vector.load %arg3[%c0_12, %c0_13] : memref<1x768xf32, #tpu.memory_space<vmem>>, vector<1x768xf32>
    %26 = vector.broadcast %25 : vector<1x768xf32> to vector<16x768xf32>
    %27 = arith.addf %24, %26 : vector<16x768xf32>
    %28 = vector.extract_strided_slice %27 {offsets = [0, 0], sizes = [8, 128], strides = [1, 1]} : vector<16x768xf32> to vector<8x128xf32>
    %29 = vector.extract_strided_slice %27 {offsets = [0, 256], sizes = [8, 128], strides = [1, 1]} : vector<16x768xf32> to vector<8x128xf32>
    %30 = vector.extract_strided_slice %27 {offsets = [0, 512], sizes = [8, 128], strides = [1, 1]} : vector<16x768xf32> to vector<8x128xf32>
    %c0_14 = arith.constant 0 : index
    %c0_15 = arith.constant 0 : index
    %c0_16 = arith.constant 0 : index
    %c0_17 = arith.constant 0 : index
    %31 = vector.load %arg15[%c0_14, %c0_15, %c0_16, %c0_17] : memref<2x2x8x128xf32, #tpu.memory_space<vmem>>, vector<1x1x8x128xf32>
    %32 = vector.shape_cast %31 : vector<1x1x8x128xf32> to vector<8x128xf32>
    %33 = vector.shape_cast %29 : vector<8x128xf32> to vector<1x1x8x128xf32>
    tpu.vector_store %arg15[%c0_14, %c0_15, %c0_16, %c0_17], %33 {strides = array<i32>} : memref<2x2x8x128xf32, #tpu.memory_space<vmem>>, vector<1x1x8x128xf32>,
    %c0_18 = arith.constant 0 : index
    %c0_19 = arith.constant 0 : index
    %c0_20 = arith.constant 0 : index
    %c0_21 = arith.constant 0 : index
    %34 = vector.load %arg16[%c0_18, %c0_19, %c0_20, %c0_21] : memref<2x2x8x128xf32, #tpu.memory_space<vmem>>, vector<1x1x8x128xf32>
    %35 = vector.shape_cast %34 : vector<1x1x8x128xf32> to vector<8x128xf32>
    %36 = vector.shape_cast %30 : vector<8x128xf32> to vector<1x1x8x128xf32>
    tpu.vector_store %arg16[%c0_18, %c0_19, %c0_20, %c0_21], %36 {strides = array<i32>} : memref<2x2x8x128xf32, #tpu.memory_space<vmem>>, vector<1x1x8x128xf32>,
    %cst_22 = arith.constant dense<0.000000e+00> : vector<8x8xf32>
    %37 = tpu.matmul %28, %29, %cst_22 {dimension_numbers = #tpu.dot_dimension_numbers<[1], [1], [0], [0], [0, 0, 1, 0], [], []>} : vector<8x128xf32>, vector<8x128xf32>, vector<8x8xf32> -> vector<8x8xf32>
    %cst_23 = arith.constant dense<0xFF800000> : vector<8xf32>
    %38 = vector.multi_reduction <maximumf>, %37, %cst_23 [1] : vector<8x8xf32> to vector<8xf32>
    %39 = vector.shape_cast %38 : vector<8xf32> to vector<8x1xf32>
    %40 = vector.broadcast %39 : vector<8x1xf32> to vector<8x8xf32>
    %41 = arith.subf %37, %40 : vector<8x8xf32>
    %42 = math.exp %41 : vector<8x8xf32>
    %cst_24 = arith.constant dense<0.000000e+00> : vector<8xf32>
    %43 = vector.multi_reduction <add>, %42, %cst_24 [1] : vector<8x8xf32> to vector<8xf32>
    %44 = vector.shape_cast %43 : vector<8xf32> to vector<8x1xf32>
    %45 = vector.broadcast %44 : vector<8x1xf32> to vector<8x8xf32>
    %46 = arith.divf %42, %45 : vector<8x8xf32>
    %cst_25 = arith.constant dense<0.000000e+00> : vector<8x128xf32>
    %47 = tpu.matmul %46, %30, %cst_25 {dimension_numbers = #tpu.dot_dimension_numbers<[1], [0], [0], [1], [0, 0, 1, 1], [], []>} : vector<8x8xf32>, vector<8x128xf32>, vector<8x128xf32> -> vector<8x128xf32>
    %c0_26 = arith.constant 0 : index
    %c0_27 = arith.constant 0 : index
    %48 = vector.load %arg17[%c0_26, %c0_27] : memref<16x256xf32, #tpu.memory_space<vmem>>, vector<8x128xf32>
    tpu.vector_store %arg17[%c0_26, %c0_27], %47 {strides = array<i32>} : memref<16x256xf32, #tpu.memory_space<vmem>>, vector<8x128xf32>,
    %49 = vector.extract_strided_slice %27 {offsets = [0, 128], sizes = [8, 128], strides = [1, 1]} : vector<16x768xf32> to vector<8x128xf32>
    %50 = vector.extract_strided_slice %27 {offsets = [0, 384], sizes = [8, 128], strides = [1, 1]} : vector<16x768xf32> to vector<8x128xf32>
    %51 = vector.extract_strided_slice %27 {offsets = [0, 640], sizes = [8, 128], strides = [1, 1]} : vector<16x768xf32> to vector<8x128xf32>
    %c0_28 = arith.constant 0 : index
    %c1 = arith.constant 1 : index
    %c0_29 = arith.constant 0 : index
    %c0_30 = arith.constant 0 : index
    %52 = vector.load %arg15[%c0_28, %c1, %c0_29, %c0_30] : memref<2x2x8x128xf32, #tpu.memory_space<vmem>>, vector<1x1x8x128xf32>
    %53 = vector.shape_cast %52 : vector<1x1x8x128xf32> to vector<8x128xf32>
    %54 = vector.shape_cast %50 : vector<8x128xf32> to vector<1x1x8x128xf32>
    tpu.vector_store %arg15[%c0_28, %c1, %c0_29, %c0_30], %54 {strides = array<i32>} : memref<2x2x8x128xf32, #tpu.memory_space<vmem>>, vector<1x1x8x128xf32>,
    %c0_31 = arith.constant 0 : index
    %c1_32 = arith.constant 1 : index
    %c0_33 = arith.constant 0 : index
    %c0_34 = arith.constant 0 : index
    %55 = vector.load %arg16[%c0_31, %c1_32, %c0_33, %c0_34] : memref<2x2x8x128xf32, #tpu.memory_space<vmem>>, vector<1x1x8x128xf32>
    %56 = vector.shape_cast %55 : vector<1x1x8x128xf32> to vector<8x128xf32>
    %57 = vector.shape_cast %51 : vector<8x128xf32> to vector<1x1x8x128xf32>
    tpu.vector_store %arg16[%c0_31, %c1_32, %c0_33, %c0_34], %57 {strides = array<i32>} : memref<2x2x8x128xf32, #tpu.memory_space<vmem>>, vector<1x1x8x128xf32>,
    %cst_35 = arith.constant dense<0.000000e+00> : vector<8x8xf32>
    %58 = tpu.matmul %49, %50, %cst_35 {dimension_numbers = #tpu.dot_dimension_numbers<[1], [1], [0], [0], [0, 0, 1, 0], [], []>} : vector<8x128xf32>, vector<8x128xf32>, vector<8x8xf32> -> vector<8x8xf32>
    %cst_36 = arith.constant dense<0xFF800000> : vector<8xf32>
    %59 = vector.multi_reduction <maximumf>, %58, %cst_36 [1] : vector<8x8xf32> to vector<8xf32>
    %60 = vector.shape_cast %59 : vector<8xf32> to vector<8x1xf32>
    %61 = vector.broadcast %60 : vector<8x1xf32> to vector<8x8xf32>
    %62 = arith.subf %58, %61 : vector<8x8xf32>
    %63 = math.exp %62 : vector<8x8xf32>
    %cst_37 = arith.constant dense<0.000000e+00> : vector<8xf32>
    %64 = vector.multi_reduction <add>, %63, %cst_37 [1] : vector<8x8xf32> to vector<8xf32>
    %65 = vector.shape_cast %64 : vector<8xf32> to vector<8x1xf32>
    %66 = vector.broadcast %65 : vector<8x1xf32> to vector<8x8xf32>
    %67 = arith.divf %63, %66 : vector<8x8xf32>
    %cst_38 = arith.constant dense<0.000000e+00> : vector<8x128xf32>
    %68 = tpu.matmul %67, %51, %cst_38 {dimension_numbers = #tpu.dot_dimension_numbers<[1], [0], [0], [1], [0, 0, 1, 1], [], []>} : vector<8x8xf32>, vector<8x128xf32>, vector<8x128xf32> -> vector<8x128xf32>
    %c0_39 = arith.constant 0 : index
    %c128 = arith.constant 128 : index
    %69 = vector.load %arg17[%c0_39, %c128] : memref<16x256xf32, #tpu.memory_space<vmem>>, vector<8x128xf32>
    tpu.vector_store %arg17[%c0_39, %c128], %68 {strides = array<i32>} : memref<16x256xf32, #tpu.memory_space<vmem>>, vector<8x128xf32>,
    %70 = vector.extract_strided_slice %27 {offsets = [8, 0], sizes = [8, 128], strides = [1, 1]} : vector<16x768xf32> to vector<8x128xf32>
    %71 = vector.extract_strided_slice %27 {offsets = [8, 256], sizes = [8, 128], strides = [1, 1]} : vector<16x768xf32> to vector<8x128xf32>
    %72 = vector.extract_strided_slice %27 {offsets = [8, 512], sizes = [8, 128], strides = [1, 1]} : vector<16x768xf32> to vector<8x128xf32>
    %c1_40 = arith.constant 1 : index
    %c0_41 = arith.constant 0 : index
    %c0_42 = arith.constant 0 : index
    %c0_43 = arith.constant 0 : index
    %73 = vector.load %arg15[%c1_40, %c0_41, %c0_42, %c0_43] : memref<2x2x8x128xf32, #tpu.memory_space<vmem>>, vector<1x1x8x128xf32>
    %74 = vector.shape_cast %73 : vector<1x1x8x128xf32> to vector<8x128xf32>
    %75 = vector.shape_cast %71 : vector<8x128xf32> to vector<1x1x8x128xf32>
    tpu.vector_store %arg15[%c1_40, %c0_41, %c0_42, %c0_43], %75 {strides = array<i32>} : memref<2x2x8x128xf32, #tpu.memory_space<vmem>>, vector<1x1x8x128xf32>,
    %c1_44 = arith.constant 1 : index
    %c0_45 = arith.constant 0 : index
    %c0_46 = arith.constant 0 : index
    %c0_47 = arith.constant 0 : index
    %76 = vector.load %arg16[%c1_44, %c0_45, %c0_46, %c0_47] : memref<2x2x8x128xf32, #tpu.memory_space<vmem>>, vector<1x1x8x128xf32>
    %77 = vector.shape_cast %76 : vector<1x1x8x128xf32> to vector<8x128xf32>
    %78 = vector.shape_cast %72 : vector<8x128xf32> to vector<1x1x8x128xf32>
    tpu.vector_store %arg16[%c1_44, %c0_45, %c0_46, %c0_47], %78 {strides = array<i32>} : memref<2x2x8x128xf32, #tpu.memory_space<vmem>>, vector<1x1x8x128xf32>,
    %cst_48 = arith.constant dense<0.000000e+00> : vector<8x8xf32>
    %79 = tpu.matmul %70, %71, %cst_48 {dimension_numbers = #tpu.dot_dimension_numbers<[1], [1], [0], [0], [0, 0, 1, 0], [], []>} : vector<8x128xf32>, vector<8x128xf32>, vector<8x8xf32> -> vector<8x8xf32>
    %cst_49 = arith.constant dense<0xFF800000> : vector<8xf32>
    %80 = vector.multi_reduction <maximumf>, %79, %cst_49 [1] : vector<8x8xf32> to vector<8xf32>
    %81 = vector.shape_cast %80 : vector<8xf32> to vector<8x1xf32>
    %82 = vector.broadcast %81 : vector<8x1xf32> to vector<8x8xf32>
    %83 = arith.subf %79, %82 : vector<8x8xf32>
    %84 = math.exp %83 : vector<8x8xf32>
    %cst_50 = arith.constant dense<0.000000e+00> : vector<8xf32>
    %85 = vector.multi_reduction <add>, %84, %cst_50 [1] : vector<8x8xf32> to vector<8xf32>
    %86 = vector.shape_cast %85 : vector<8xf32> to vector<8x1xf32>
    %87 = vector.broadcast %86 : vector<8x1xf32> to vector<8x8xf32>
    %88 = arith.divf %84, %87 : vector<8x8xf32>
    %cst_51 = arith.constant dense<0.000000e+00> : vector<8x128xf32>
    %89 = tpu.matmul %88, %72, %cst_51 {dimension_numbers = #tpu.dot_dimension_numbers<[1], [0], [0], [1], [0, 0, 1, 1], [], []>} : vector<8x8xf32>, vector<8x128xf32>, vector<8x128xf32> -> vector<8x128xf32>
    %c8 = arith.constant 8 : index
    %c0_52 = arith.constant 0 : index
    %90 = vector.load %arg17[%c8, %c0_52] : memref<16x256xf32, #tpu.memory_space<vmem>>, vector<8x128xf32>
    tpu.vector_store %arg17[%c8, %c0_52], %89 {strides = array<i32>} : memref<16x256xf32, #tpu.memory_space<vmem>>, vector<8x128xf32>,
    %91 = vector.extract_strided_slice %27 {offsets = [8, 128], sizes = [8, 128], strides = [1, 1]} : vector<16x768xf32> to vector<8x128xf32>
    %92 = vector.extract_strided_slice %27 {offsets = [8, 384], sizes = [8, 128], strides = [1, 1]} : vector<16x768xf32> to vector<8x128xf32>
    %93 = vector.extract_strided_slice %27 {offsets = [8, 640], sizes = [8, 128], strides = [1, 1]} : vector<16x768xf32> to vector<8x128xf32>
    %c1_53 = arith.constant 1 : index
    %c1_54 = arith.constant 1 : index
    %c0_55 = arith.constant 0 : index
    %c0_56 = arith.constant 0 : index
    %94 = vector.load %arg15[%c1_53, %c1_54, %c0_55, %c0_56] : memref<2x2x8x128xf32, #tpu.memory_space<vmem>>, vector<1x1x8x128xf32>
    %95 = vector.shape_cast %94 : vector<1x1x8x128xf32> to vector<8x128xf32>
    %96 = vector.shape_cast %92 : vector<8x128xf32> to vector<1x1x8x128xf32>
    tpu.vector_store %arg15[%c1_53, %c1_54, %c0_55, %c0_56], %96 {strides = array<i32>} : memref<2x2x8x128xf32, #tpu.memory_space<vmem>>, vector<1x1x8x128xf32>,
    %c1_57 = arith.constant 1 : index
    %c1_58 = arith.constant 1 : index
    %c0_59 = arith.constant 0 : index
    %c0_60 = arith.constant 0 : index
    %97 = vector.load %arg16[%c1_57, %c1_58, %c0_59, %c0_60] : memref<2x2x8x128xf32, #tpu.memory_space<vmem>>, vector<1x1x8x128xf32>
    %98 = vector.shape_cast %97 : vector<1x1x8x128xf32> to vector<8x128xf32>
    %99 = vector.shape_cast %93 : vector<8x128xf32> to vector<1x1x8x128xf32>
    tpu.vector_store %arg16[%c1_57, %c1_58, %c0_59, %c0_60], %99 {strides = array<i32>} : memref<2x2x8x128xf32, #tpu.memory_space<vmem>>, vector<1x1x8x128xf32>,
    %cst_61 = arith.constant dense<0.000000e+00> : vector<8x8xf32>
    %100 = tpu.matmul %91, %92, %cst_61 {dimension_numbers = #tpu.dot_dimension_numbers<[1], [1], [0], [0], [0, 0, 1, 0], [], []>} : vector<8x128xf32>, vector<8x128xf32>, vector<8x8xf32> -> vector<8x8xf32>
    %cst_62 = arith.constant dense<0xFF800000> : vector<8xf32>
    %101 = vector.multi_reduction <maximumf>, %100, %cst_62 [1] : vector<8x8xf32> to vector<8xf32>
    %102 = vector.shape_cast %101 : vector<8xf32> to vector<8x1xf32>
    %103 = vector.broadcast %102 : vector<8x1xf32> to vector<8x8xf32>
    %104 = arith.subf %100, %103 : vector<8x8xf32>
    %105 = math.exp %104 : vector<8x8xf32>
    %cst_63 = arith.constant dense<0.000000e+00> : vector<8xf32>
    %106 = vector.multi_reduction <add>, %105, %cst_63 [1] : vector<8x8xf32> to vector<8xf32>
    %107 = vector.shape_cast %106 : vector<8xf32> to vector<8x1xf32>
    %108 = vector.broadcast %107 : vector<8x1xf32> to vector<8x8xf32>
    %109 = arith.divf %105, %108 : vector<8x8xf32>
    %cst_64 = arith.constant dense<0.000000e+00> : vector<8x128xf32>
    %110 = tpu.matmul %109, %93, %cst_64 {dimension_numbers = #tpu.dot_dimension_numbers<[1], [0], [0], [1], [0, 0, 1, 1], [], []>} : vector<8x8xf32>, vector<8x128xf32>, vector<8x128xf32> -> vector<8x128xf32>
    %c8_65 = arith.constant 8 : index
    %c128_66 = arith.constant 128 : index
    %111 = vector.load %arg17[%c8_65, %c128_66] : memref<16x256xf32, #tpu.memory_space<vmem>>, vector<8x128xf32>
    tpu.vector_store %arg17[%c8_65, %c128_66], %110 {strides = array<i32>} : memref<16x256xf32, #tpu.memory_space<vmem>>, vector<8x128xf32>,
    %c0_67 = arith.constant 0 : index
    %c0_68 = arith.constant 0 : index
    %112 = vector.load %arg17[%c0_67, %c0_68] : memref<16x256xf32, #tpu.memory_space<vmem>>, vector<16x256xf32>
    %c0_69 = arith.constant 0 : index
    %c0_70 = arith.constant 0 : index
    %113 = vector.load %arg4[%c0_69, %c0_70] : memref<256x256xf32, #tpu.memory_space<vmem>>, vector<256x256xf32>
    %cst_71 = arith.constant dense<0.000000e+00> : vector<16x256xf32>
    %114 = tpu.matmul %112, %113, %cst_71 {dimension_numbers = #tpu.dot_dimension_numbers<[1], [0], [0], [1], [0, 0, 1, 1], [], []>} : vector<16x256xf32>, vector<256x256xf32>, vector<16x256xf32> -> vector<16x256xf32>
    %115 = arith.addf %0, %114 : vector<16x256xf32>
    %c0_72 = arith.constant 0 : index
    %c0_73 = arith.constant 0 : index
    %116 = vector.load %arg5[%c0_72, %c0_73] : memref<1x256xf32, #tpu.memory_space<vmem>>, vector<1x256xf32>
    %117 = vector.broadcast %116 : vector<1x256xf32> to vector<16x256xf32>
    %118 = arith.addf %115, %117 : vector<16x256xf32>
    %c0_74 = arith.constant 0 : index
    %c0_75 = arith.constant 0 : index
    %119 = vector.load %arg8[%c0_74, %c0_75] : memref<1x256xf32, #tpu.memory_space<vmem>>, vector<1x256xf32>
    %c0_76 = arith.constant 0 : index
    %c0_77 = arith.constant 0 : index
    %120 = vector.load %arg9[%c0_76, %c0_77] : memref<1x256xf32, #tpu.memory_space<vmem>>, vector<1x256xf32>
    %cst_78 = arith.constant dense<0.000000e+00> : vector<16xf32>
    %121 = vector.multi_reduction <add>, %118, %cst_78 [1] : vector<16x256xf32> to vector<16xf32>
    %122 = vector.shape_cast %121 : vector<16xf32> to vector<16x1xf32>
    %cst_79 = arith.constant 2.560000e+02 : f32
    %123 = vector.broadcast %cst_79 : f32 to vector<16x1xf32>
    %124 = arith.divf %122, %123 : vector<16x1xf32>
    %125 = vector.broadcast %124 : vector<16x1xf32> to vector<16x256xf32>
    %126 = arith.subf %118, %125 : vector<16x256xf32>
    %127 = arith.mulf %126, %126 : vector<16x256xf32>
    %cst_80 = arith.constant dense<0.000000e+00> : vector<16xf32>
    %128 = vector.multi_reduction <add>, %127, %cst_80 [1] : vector<16x256xf32> to vector<16xf32>
    %129 = vector.shape_cast %128 : vector<16xf32> to vector<16x1xf32>
    %cst_81 = arith.constant 2.560000e+02 : f32
    %130 = vector.broadcast %cst_81 : f32 to vector<16x1xf32>
    %131 = arith.divf %129, %130 : vector<16x1xf32>
    %cst_82 = arith.constant 9.99999997E-7 : f32
    %132 = vector.broadcast %cst_82 : f32 to vector<16x1xf32>
    %133 = arith.addf %131, %132 : vector<16x1xf32>
    %134 = math.rsqrt %133 : vector<16x1xf32>
    %135 = vector.broadcast %134 : vector<16x1xf32> to vector<16x256xf32>
    %136 = arith.mulf %126, %135 : vector<16x256xf32>
    %137 = vector.broadcast %119 : vector<1x256xf32> to vector<16x256xf32>
    %138 = arith.mulf %136, %137 : vector<16x256xf32>
    %139 = vector.broadcast %120 : vector<1x256xf32> to vector<16x256xf32>
    %140 = arith.addf %138, %139 : vector<16x256xf32>
    %c0_83 = arith.constant 0 : index
    %c0_84 = arith.constant 0 : index
    %141 = vector.load %arg10[%c0_83, %c0_84] : memref<256x1024xf32, #tpu.memory_space<vmem>>, vector<256x1024xf32>
    %cst_85 = arith.constant dense<0.000000e+00> : vector<16x1024xf32>
    %142 = tpu.matmul %140, %141, %cst_85 {dimension_numbers = #tpu.dot_dimension_numbers<[1], [0], [0], [1], [0, 0, 1, 1], [], []>} : vector<16x256xf32>, vector<256x1024xf32>, vector<16x1024xf32> -> vector<16x1024xf32>
    %c0_86 = arith.constant 0 : index
    %c0_87 = arith.constant 0 : index
    %143 = vector.load %arg11[%c0_86, %c0_87] : memref<1x1024xf32, #tpu.memory_space<vmem>>, vector<1x1024xf32>
    %144 = vector.broadcast %143 : vector<1x1024xf32> to vector<16x1024xf32>
    %145 = arith.addf %142, %144 : vector<16x1024xf32>
    %cst_88 = arith.constant 5.000000e-01 : f32
    %146 = vector.broadcast %cst_88 : f32 to vector<16x1024xf32>
    %147 = arith.mulf %146, %145 : vector<16x1024xf32>
    %cst_89 = arith.constant 0.707106769 : f32
    %148 = vector.broadcast %cst_89 : f32 to vector<16x1024xf32>
    %149 = arith.mulf %145, %148 : vector<16x1024xf32>
    %150 = math.absf %149 : vector<16x1024xf32>
    %cst_90 = arith.constant 0.327591091 : f32
    %151 = vector.broadcast %cst_90 : f32 to vector<16x1024xf32>
    %152 = arith.mulf %151, %150 : vector<16x1024xf32>
    %cst_91 = arith.constant 1.000000e+00 : f32
    %153 = vector.broadcast %cst_91 : f32 to vector<16x1024xf32>
    %154 = arith.addf %153, %152 : vector<16x1024xf32>
    %cst_92 = arith.constant 1.000000e+00 : f32
    %155 = vector.broadcast %cst_92 : f32 to vector<16x1024xf32>
    %156 = arith.divf %155, %154 : vector<16x1024xf32>
    %cst_93 = arith.constant 1.06140542 : f32
    %157 = vector.broadcast %cst_93 : f32 to vector<16x1024xf32>
    %158 = arith.mulf %157, %156 : vector<16x1024xf32>
    %cst_94 = arith.constant -1.45315206 : f32
    %159 = vector.broadcast %cst_94 : f32 to vector<16x1024xf32>
    %160 = arith.addf %158, %159 : vector<16x1024xf32>
    %161 = arith.mulf %160, %156 : vector<16x1024xf32>
    %cst_95 = arith.constant 1.42141378 : f32
    %162 = vector.broadcast %cst_95 : f32 to vector<16x1024xf32>
    %163 = arith.addf %161, %162 : vector<16x1024xf32>
    %164 = arith.mulf %163, %156 : vector<16x1024xf32>
    %cst_96 = arith.constant -0.284496725 : f32
    %165 = vector.broadcast %cst_96 : f32 to vector<16x1024xf32>
    %166 = arith.addf %164, %165 : vector<16x1024xf32>
    %167 = arith.mulf %166, %156 : vector<16x1024xf32>
    %cst_97 = arith.constant 0.254829586 : f32
    %168 = vector.broadcast %cst_97 : f32 to vector<16x1024xf32>
    %169 = arith.addf %167, %168 : vector<16x1024xf32>
    %170 = arith.mulf %169, %156 : vector<16x1024xf32>
    %cst_98 = arith.constant 0.000000e+00 : f32
    %171 = vector.broadcast %cst_98 : f32 to vector<16x1024xf32>
    %172 = arith.subf %171, %150 : vector<16x1024xf32>
    %173 = arith.mulf %172, %150 : vector<16x1024xf32>
    %174 = math.exp %173 : vector<16x1024xf32>
    %175 = arith.mulf %170, %174 : vector<16x1024xf32>
    %cst_99 = arith.constant 1.000000e+00 : f32
    %176 = vector.broadcast %cst_99 : f32 to vector<16x1024xf32>
    %177 = arith.subf %176, %175 : vector<16x1024xf32>
    %cst_100 = arith.constant 0.000000e+00 : f32
    %178 = vector.broadcast %cst_100 : f32 to vector<16x1024xf32>
    %179 = arith.cmpf oge, %149, %178 : vector<16x1024xf32>
    %cst_101 = arith.constant 0.000000e+00 : f32
    %180 = vector.broadcast %cst_101 : f32 to vector<16x1024xf32>
    %181 = arith.subf %180, %177 : vector<16x1024xf32>
    %182 = arith.select %179, %177, %181 : vector<16x1024xi1>, vector<16x1024xf32>
    %cst_102 = arith.constant 1.000000e+00 : f32
    %183 = vector.broadcast %cst_102 : f32 to vector<16x1024xf32>
    %184 = arith.addf %183, %182 : vector<16x1024xf32>
    %185 = arith.mulf %147, %184 : vector<16x1024xf32>
    %c0_103 = arith.constant 0 : index
    %c0_104 = arith.constant 0 : index
    %186 = vector.load %arg12[%c0_103, %c0_104] : memref<1024x256xf32, #tpu.memory_space<vmem>>, vector<1024x256xf32>
    %cst_105 = arith.constant dense<0.000000e+00> : vector<16x256xf32>
    %187 = tpu.matmul %185, %186, %cst_105 {dimension_numbers = #tpu.dot_dimension_numbers<[1], [0], [0], [1], [0, 0, 1, 1], [], []>} : vector<16x1024xf32>, vector<1024x256xf32>, vector<16x256xf32> -> vector<16x256xf32>
    %c0_106 = arith.constant 0 : index
    %c0_107 = arith.constant 0 : index
    %188 = vector.load %arg13[%c0_106, %c0_107] : memref<1x256xf32, #tpu.memory_space<vmem>>, vector<1x256xf32>
    %189 = vector.broadcast %188 : vector<1x256xf32> to vector<16x256xf32>
    %190 = arith.addf %187, %189 : vector<16x256xf32>
    %191 = arith.addf %118, %190 : vector<16x256xf32>
    %c0_108 = arith.constant 0 : index
    %c0_109 = arith.constant 0 : index
    %192 = vector.load %arg14[%c0_108, %c0_109] : memref<16x256xf32, #tpu.memory_space<vmem>>, vector<16x256xf32>
    tpu.vector_store %arg14[%c0_108, %c0_109], %191 {strides = array<i32>} : memref<16x256xf32, #tpu.memory_space<vmem>>, vector<16x256xf32>,
    return
  }
  func.func @transform_0(%arg0: i32) -> (i32, i32) {
    %c0_i32 = arith.constant 0 : i32
    %c0_i32_0 = arith.constant 0 : i32
    return %arg0, %c0_i32 : i32, i32
  }
  func.func @transform_1(%arg0: i32) -> (i32, i32) {
    %c0_i32 = arith.constant 0 : i32
    %c0_i32_0 = arith.constant 0 : i32
    %c0_i32_1 = arith.constant 0 : i32
    return %c0_i32, %c0_i32_0 : i32, i32
  }
  func.func @transform_2(%arg0: i32) -> (i32, i32) {
    %c0_i32 = arith.constant 0 : i32
    %c0_i32_0 = arith.constant 0 : i32
    %c0_i32_1 = arith.constant 0 : i32
    return %c0_i32, %c0_i32_0 : i32, i32
  }
  func.func @transform_3(%arg0: i32) -> (i32, i32) {
    %c0_i32 = arith.constant 0 : i32
    %c0_i32_0 = arith.constant 0 : i32
    %c0_i32_1 = arith.constant 0 : i32
    return %c0_i32, %c0_i32_0 : i32, i32
  }
  func.func @transform_4(%arg0: i32) -> (i32, i32) {
    %c0_i32 = arith.constant 0 : i32
    %c0_i32_0 = arith.constant 0 : i32
    %c0_i32_1 = arith.constant 0 : i32
    return %c0_i32, %c0_i32_0 : i32, i32
  }
  func.func @transform_5(%arg0: i32) -> (i32, i32) {
    %c0_i32 = arith.constant 0 : i32
    %c0_i32_0 = arith.constant 0 : i32
    %c0_i32_1 = arith.constant 0 : i32
    return %c0_i32, %c0_i32_0 : i32, i32
  }
  func.func @transform_6(%arg0: i32) -> (i32, i32) {
    %c0_i32 = arith.constant 0 : i32
    %c0_i32_0 = arith.constant 0 : i32
    %c0_i32_1 = arith.constant 0 : i32
    return %c0_i32, %c0_i32_0 : i32, i32
  }
  func.func @transform_7(%arg0: i32) -> (i32, i32) {
    %c0_i32 = arith.constant 0 : i32
    %c0_i32_0 = arith.constant 0 : i32
    %c0_i32_1 = arith.constant 0 : i32
    return %c0_i32, %c0_i32_0 : i32, i32
  }
  func.func @transform_8(%arg0: i32) -> (i32, i32) {
    %c0_i32 = arith.constant 0 : i32
    %c0_i32_0 = arith.constant 0 : i32
    %c0_i32_1 = arith.constant 0 : i32
    return %c0_i32, %c0_i32_0 : i32, i32
  }
  func.func @transform_9(%arg0: i32) -> (i32, i32) {
    %c0_i32 = arith.constant 0 : i32
    %c0_i32_0 = arith.constant 0 : i32
    %c0_i32_1 = arith.constant 0 : i32
    return %c0_i32, %c0_i32_0 : i32, i32
  }
  func.func @transform_10(%arg0: i32) -> (i32, i32) {
    %c0_i32 = arith.constant 0 : i32
    %c0_i32_0 = arith.constant 0 : i32
    %c0_i32_1 = arith.constant 0 : i32
    return %c0_i32, %c0_i32_0 : i32, i32
  }
  func.func @transform_11(%arg0: i32) -> (i32, i32) {
    %c0_i32 = arith.constant 0 : i32
    %c0_i32_0 = arith.constant 0 : i32
    %c0_i32_1 = arith.constant 0 : i32
    return %c0_i32, %c0_i32_0 : i32, i32
  }
  func.func @transform_12(%arg0: i32) -> (i32, i32) {
    %c0_i32 = arith.constant 0 : i32
    %c0_i32_0 = arith.constant 0 : i32
    %c0_i32_1 = arith.constant 0 : i32
    return %c0_i32, %c0_i32_0 : i32, i32
  }
  func.func @transform_13(%arg0: i32) -> (i32, i32) {
    %c0_i32 = arith.constant 0 : i32
    %c0_i32_0 = arith.constant 0 : i32
    return %arg0, %c0_i32 : i32, i32
  }
  func.func @transform_14(%arg0: i32) -> (i32, i32, i32, i32) {
    %c0_i32 = arith.constant 0 : i32
    %c0_i32_0 = arith.constant 0 : i32
    %c0_i32_1 = arith.constant 0 : i32
    %c0_i32_2 = arith.constant 0 : i32
    return %arg0, %c0_i32, %c0_i32_0, %c0_i32_1 : i32, i32, i32, i32
  }
  func.func @transform_15(%arg0: i32) -> (i32, i32, i32, i32) {
    %c0_i32 = arith.constant 0 : i32
    %c0_i32_0 = arith.constant 0 : i32
    %c0_i32_1 = arith.constant 0 : i32
    %c0_i32_2 = arith.constant 0 : i32
    return %arg0, %c0_i32, %c0_i32_0, %c0_i32_1 : i32, i32, i32, i32
  }
}

</mosaic_0001>

<bundles_post_ra>
// kernel: tpu_custom_call.1
= control target key start
LH: loop header
LB: loop body
LE: loop exit
PB: predicated region body
PF: predicated region fallthrough
CT: control target
= control target key end

     0   :  { %s5153_s0 = inlined_call_operand.hbm [shape: f32[16,256], index: 0, kind: input, shape index: {}]   ;;  %s5154_s1 = inlined_call_operand.hbm [shape: f32[256,768], index: 1, kind: input, shape index: {}]   ;;  %s5155_s2 = inlined_call_operand.vmem [shape: f32[1,768], index: 2, kind: input, shape index: {}]   ;;  %s5156_s3 = inlined_call_operand.hbm [shape: f32[256,256], index: 3, kind: input, shape index: {}]   ;;  %s5157_s4 = inlined_call_operand.hbm [shape: f32[1,256], index: 4, kind: input, shape index: {}]   ;;  %s5158_s5 = inlined_call_operand.vmem [shape: f32[1,256], index: 5, kind: input, shape index: {}]   ;;  %s5159_s6 = inlined_call_operand.vmem [shape: f32[1,256], index: 6, kind: input, shape index: {}]   ;;  %s5160_s7 = inlined_call_operand.vmem [shape: f32[1,256], index: 7, kind: input, shape index: {}]   ;;  %s5161_s8 = inlined_call_operand.vmem [shape: f32[1,256], index: 8, kind: input, shape index: {}]   ;;  %s5162_s9 = inlined_call_operand.hbm [shape: f32[256,1024], index: 9, kind: input, shape index: {}]   ;;  %s5163_s10 = inlined_call_operand.vmem [shape: f32[1,1024], index: 10, kind: input, shape index: {}]   ;;  %s5164_s11 = inlined_call_operand.hbm [shape: f32[1024,256], index: 11, kind: input, shape index: {}]   ;;  %s5165_s12 = inlined_call_operand.vmem [shape: f32[1,256], index: 12, kind: input, shape index: {}]   ;;  %s5166_s13 = inlined_call_operand.hbm [shape: f32[16,256], index: 13, kind: output, shape index: {0}]   ;;  %s5167_s14 = inlined_call_operand.hbm [shape: f32[2,2,8,128], index: 14, kind: output, shape index: {1}]   ;;  %s5168_s15 = inlined_call_operand.hbm [shape: f32[2,2,8,128], index: 15, kind: output, shape index: {2}]  }
   0x1   :  { %5170 = sst [smem:[#allocation24_spill]] %s5166_s13 }
   0x2   :  { %21 = vsyncpa [#allocation4], 0 }
   0x3   :  { %22 = vsyncpa [#allocation7], 0 }
   0x4   :  { %23 = vsyncpa [#allocation10], 0 }
   0x5   :  { %24 = vsyncpa [#allocation13], 0 }
   0x6   :  { %25 = vsyncpa [#allocation5], 0 }
   0x7   :  { %26 = vsyncpa [#allocation16], 0  ;;  %s4356_s18 = smov [#allocation6]   ;;  %s4146_s22 = scalar_lea.hbm %s5154_s1, 24576 }
   0x8   :  { %s44_s19 = sshll.u32 %s4356_s18, 4  ;;  %p4147_p0 = scmp.ne.s32.totalorder %s5154_s1, %s4146_s22  ;;  %s45_s19 = int_to_ptr.vmem [resolvable:$true] %s44_s19 }
   0x9   :  { %p4150_p1 = scmp.lt.u32.totalorder %s4146_s22, %s5154_s1 }
   0xb   :  { %p4152_p2 = pnand %p4150_p1, %p4147_p0 }
   0xd   :  { %4155 = shalt.err (!%p4152_p2)
}
   0xe   :  { %s4156_s27 = scalar_lea.vmem %s45_s19, 24576  ;;  %p4161_p4 = scmp.lt.s32.totalorder %s45_s19, %s45_s19 }
   0xf   :  { %p4157_p3 = scmp.ne.s32.totalorder %s45_s19, %s4156_s27  ;;  %p4162_p5 = scmp.lt.s32.totalorder %s4156_s27, %s4156_s27 }
  0x11   :  { %p4163_p6 = por %p4162_p5, %p4161_p4 }
  0x13   :  { %p4164_p7 = pnand %p4163_p6, %p4157_p3 }
  0x15   :  { %4167 = shalt.err (!%p4164_p7)
}
  0x16   :  { %s4357_s28 = smov 768   ;;  %s4358_s29 = smov 48  }
  0x17   :  { %50 = dma.hbm_to_vmem [thread:$0]  %s5154_s1, 24576, %s45_s19, [#allocation7], %s4357_s28, %s4357_s28, %s4358_s29  }
  0x18   :  { %s4359_s17 = smov [#allocation9]   ;;  %s4360_s20 = smov [#allocation3]  }
  0x19   :  { %s71_s18 = sshll.u32 %s4359_s17, 4  ;;  %s32_s21 = sshll.u32 %s4360_s20, 4  ;;  %s72_s18 = int_to_ptr.vmem [resolvable:$true] %s71_s18  ;;  %s33_s21 = int_to_ptr.vmem [resolvable:$true] %s32_s21 }
  0x1a   :  { %s4168_s24 = scalar_lea.hbm %s5157_s4, 32 }
  0x1b   :  { %p4169_p8 = scmp.ne.s32.totalorder %s5157_s4, %s4168_s24  ;;  %p4172_p9 = scmp.lt.u32.totalorder %s4168_s24, %s5157_s4 }
  0x1d   :  { %p4174_p10 = pnand %p4172_p9, %p4169_p8 }
  0x1f   :  { %4177 = shalt.err (!%p4174_p10)
}
  0x20   :  { %s4178_s1 = scalar_lea.vmem %s72_s18, 32  ;;  %p4183_p12 = scmp.lt.s32.totalorder %s72_s18, %s72_s18 }
  0x21   :  { %p4179_p11 = scmp.ne.s32.totalorder %s72_s18, %s4178_s1  ;;  %p4184_p13 = scmp.lt.s32.totalorder %s4178_s1, %s4178_s1 }
  0x23   :  { %p4185_p0 = por %p4184_p13, %p4183_p12 }
  0x25   :  { %p4186_p1 = pnand %p4185_p0, %p4179_p11 }
  0x27   :  { %4189 = shalt.err (!%p4186_p1)
}
  0x28   :  { %74 = dma.hbm_to_vmem [thread:$0]  %s5157_s4, 32, %s72_s18, [#allocation10]  }
  0x29   :  { %s4190_s16 = scalar_lea.hbm %s5153_s0, 512 }
  0x2a   :  { %p4191_p2 = scmp.ne.s32.totalorder %s5153_s0, %s4190_s16  ;;  %p4194_p3 = scmp.lt.u32.totalorder %s4190_s16, %s5153_s0 }
  0x2c   :  { %p4196_p4 = pnand %p4194_p3, %p4191_p2 }
  0x2e   :  { %4199 = shalt.err (!%p4196_p4)
}
  0x2f   :  { %s4200_s23 = scalar_lea.vmem %s33_s21, 512  ;;  %p4205_p6 = scmp.lt.s32.totalorder %s33_s21, %s33_s21 }
  0x30   :  { %p4201_p5 = scmp.ne.s32.totalorder %s33_s21, %s4200_s23  ;;  %p4206_p7 = scmp.lt.s32.totalorder %s4200_s23, %s4200_s23 }
  0x32   :  { %p4207_p8 = por %p4206_p7, %p4205_p6 }
  0x34   :  { %p4208_p9 = pnand %p4207_p8, %p4201_p5 }
  0x36   :  { %4211 = shalt.err (!%p4208_p9)
}
  0x37   :  { %s4361_s4 = smov 256   ;;  %s4362_s18 = smov 16  }
  0x38   :  { %38 = dma.hbm_to_vmem [thread:$0]  %s5153_s0, 512, %s33_s21, [#allocation4], %s4361_s4, %s4361_s4, %s4362_s18  }
  0x39   :  { %s4363_s26 = smov [#allocation8]   ;;  %s4364_s1 = smov [#allocation11]  }
  0x3a   :  { %s58_s27 = sshll.u32 %s4363_s26, 4  ;;  %s88_s19 = sshll.u32 %s4364_s1, 4  ;;  %s59_s27 = int_to_ptr.vmem [resolvable:$true] %s58_s27  ;;  %s89_s19 = int_to_ptr.vmem [resolvable:$true] %s88_s19 }
  0x3b   :  { %s4212_s30 = scalar_lea.hbm %s5156_s3, 8192 }
  0x3c   :  { %p4213_p10 = scmp.ne.s32.totalorder %s5156_s3, %s4212_s30  ;;  %p4216_p11 = scmp.lt.u32.totalorder %s4212_s30, %s5156_s3 }
  0x3e   :  { %p4218_p12 = pnand %p4216_p11, %p4213_p10 }
  0x40   :  { %4221 = shalt.err (!%p4218_p12)
}
  0x41   :  { %s4222_s0 = scalar_lea.vmem %s59_s27, 8192  ;;  %p4227_p0 = scmp.lt.s32.totalorder %s59_s27, %s59_s27 }
  0x42   :  { %p4223_p13 = scmp.ne.s32.totalorder %s59_s27, %s4222_s0  ;;  %p4228_p1 = scmp.lt.s32.totalorder %s4222_s0, %s4222_s0 }
  0x44   :  { %p4229_p2 = por %p4228_p1, %p4227_p0 }
  0x46   :  { %p4230_p3 = pnand %p4229_p2, %p4223_p13 }
  0x48   :  { %4233 = shalt.err (!%p4230_p3)
}
  0x49   :  { %64 = dma.hbm_to_vmem [thread:$0]  %s5156_s3, 8192, %s59_s27, [#allocation7], %s4361_s4, %s4361_s4, %s4362_s18  }
  0x4a   :  { %s4234_s25 = scalar_lea.hbm %s5162_s9, 32768 }
  0x4b   :  { %p4235_p4 = scmp.ne.s32.totalorder %s5162_s9, %s4234_s25  ;;  %p4238_p5 = scmp.lt.u32.totalorder %s4234_s25, %s5162_s9 }
  0x4d   :  { %p4240_p6 = pnand %p4238_p5, %p4235_p4 }
  0x4f   :  { %4243 = shalt.err (!%p4240_p6)
}
  0x50   :  { %s4244_s30 = scalar_lea.vmem %s89_s19, 32768  ;;  %p4249_p8 = scmp.lt.s32.totalorder %s89_s19, %s89_s19 }
  0x51   :  { %p4245_p7 = scmp.ne.s32.totalorder %s89_s19, %s4244_s30  ;;  %p4250_p9 = scmp.lt.s32.totalorder %s4244_s30, %s4244_s30 }
  0x53   :  { %p4251_p10 = por %p4250_p9, %p4249_p8 }
  0x55   :  { %p4252_p11 = pnand %p4251_p10, %p4245_p7 }
  0x57   :  { %4255 = shalt.err (!%p4252_p11)
}
  0x58   :  { %s4365_s3 = smov 1024   ;;  %s4366_s27 = smov 64  }
  0x59   :  { %94 = dma.hbm_to_vmem [thread:$0]  %s5162_s9, 32768, %s89_s19, [#allocation10], %s4365_s3, %s4365_s3, %s4366_s27  }
  0x5a   :  { %s4367_s17 = smov [#allocation12]   ;;  %s4256_s22 = scalar_lea.hbm %s5164_s11, 32768 }
  0x5b   :  { %s102_s20 = sshll.u32 %s4367_s17, 4  ;;  %p4257_p12 = scmp.ne.s32.totalorder %s5164_s11, %s4256_s22  ;;  %s103_s20 = int_to_ptr.vmem [resolvable:$true] %s102_s20 }
  0x5c   :  { %p4260_p13 = scmp.lt.u32.totalorder %s4256_s22, %s5164_s11 }
  0x5e   :  { %p4262_p0 = pnand %p4260_p13, %p4257_p12 }
  0x60   :  { %4265 = shalt.err (!%p4262_p0)
}
  0x61   :  { %s4266_s1 = scalar_lea.vmem %s103_s20, 32768  ;;  %p4271_p2 = scmp.lt.s32.totalorder %s103_s20, %s103_s20 }
  0x62   :  { %p4267_p1 = scmp.ne.s32.totalorder %s103_s20, %s4266_s1  ;;  %p4272_p3 = scmp.lt.s32.totalorder %s4266_s1, %s4266_s1 }
  0x64   :  { %p4273_p4 = por %p4272_p3, %p4271_p2 }
  0x66   :  { %p4274_p5 = pnand %p4273_p4, %p4267_p1 }
  0x68   :  { %4277 = shalt.err (!%p4274_p5)
}
  0x69   :  { %108 = dma.hbm_to_vmem [thread:$0]  %s5164_s11, 32768, %s103_s20, [#allocation13], %s4361_s4, %s4361_s4, %s4362_s18  }
  0x6a   :  { %4344 = dma.done.wait [#allocation4], 512  }
  0x6b   :  { %4345 = vsyncadd [#allocation4], 4294966784 }
  0x6c   :  { %4346 = dma.done.wait [#allocation7], 32768  }
  0x6d   :  { %4347 = vsyncadd [#allocation7], 4294934528 }
  0x6e   :  { %4348 = dma.done.wait [#allocation10], 32800  }
  0x6f   :  { %4349 = vsyncadd [#allocation10], 4294934496 }
  0x70   :  { %4350 = dma.done.wait [#allocation13], 32768  }
  0x71   :  { %4351 = vsyncadd [#allocation13], 4294934528  ;;  %v4536_v0 = vld [vmem:[#allocation3] sm:$0xff]  ;;  %v4538_v1 = vld [vmem:[#allocation3 + $0x8] sm:$0xff]  ;;  %vm4369_vm0 = vmmov 0   ;;  %vm725_vm1 = vcmask 64512  }
  0x72   :  { %v4540_v2 = vld [vmem:[#allocation3 + $0x10] sm:$0xff]  ;;  %v135_v3 = vadd.f32 %v4538_v1, %v4536_v0  ;;  %v4544_v4 = vld [vmem:[#allocation3 + $0x18] sm:$0xff]  ;;  %v199_v6 = vld [vmem:[#allocation6 + $0x8] sm:$0xff] }
  0x73   :  { %v138_v5 = vadd.f32 %v4544_v4, %v4540_v2  ;;  %v205_v7 = vld [vmem:[#allocation6 + $0x38] sm:$0xff]  ;;  %v198_v8 = vld [vmem:[#allocation6] sm:$0xff]  ;;  %v204_v10 = vld [vmem:[#allocation6 + $0x30] sm:$0xff] }
  0x74   :  { %136 = vadd.xlane.f32.xlu0 %v135_v3  ;;  %v3250_v9 = vpack.c.bf16 %v205_v7, %v199_v6  ;;  %v211_v11 = vld [vmem:[#allocation6 + $0x68] sm:$0xff]  ;;  %v217_v12 = vld [vmem:[#allocation6 + $0x98] sm:$0xff]  ;;  %v3252_v13 = vpack.c.bf16 %v204_v10, %v198_v8  ;;  %v210_v15 = vld [vmem:[#allocation6 + $0x60] sm:$0xff] }
  0x75   :  { %v3254_v14 = vpack.c.bf16 %v217_v12, %v211_v11  ;;  %v216_v16 = vld [vmem:[#allocation6 + $0x90] sm:$0xff]  ;;  %v223_v17 = vld [vmem:[#allocation6 + $0xc8] sm:$0xff]  ;;  %v229_v18 = vld [vmem:[#allocation6 + $0xf8] sm:$0xff] }
  0x76   :  { %3251 = vmatprep.subr.bf16.mxu1 %v3250_v9  ;;  %v3256_v19 = vpack.c.bf16 %v216_v16, %v210_v15  ;;  %v3258_v20 = vpack.c.bf16 %v229_v18, %v223_v17  ;;  %v222_v21 = vld [vmem:[#allocation6 + $0xc0] sm:$0xff]  ;;  %v228_v22 = vld [vmem:[#allocation6 + $0xf0] sm:$0xff]  ;;  %v235_v23 = vld [vmem:[#allocation6 + $0x128] sm:$0xff] }
  0x77   :  { %3253 = vmatpush1.bf16.msra.mxu1 %v3252_v13  ;;  %v241_v24 = vld [vmem:[#allocation6 + $0x158] sm:$0xff]  ;;  %v3260_v25 = vpack.c.bf16 %v228_v22, %v222_v21  ;;  %v234_v27 = vld [vmem:[#allocation6 + $0x120] sm:$0xff]  ;;  %v240_v28 = vld [vmem:[#allocation6 + $0x150] sm:$0xff] }
  0x78   :  { %139 = vadd.xlane.f32.xlu0 %v138_v5  ;;  %3255 = vmatprep.subr.bf16.mxu1 %v3254_v14  ;;  %v3262_v26 = vpack.c.bf16 %v241_v24, %v235_v23  ;;  %v247_v29 = vld [vmem:[#allocation6 + $0x188] sm:$0xff]  ;;  %v253_v30 = vld [vmem:[#allocation6 + $0x1b8] sm:$0xff]  ;;  %v3264_v31 = vpack.c.bf16 %v240_v28, %v234_v27  ;;  %v246_v33 = vld [vmem:[#allocation6 + $0x180] sm:$0xff] }
  0x79   :  { %v3266_v32 = vpack.c.bf16 %v253_v30, %v247_v29  ;;  %v252_v34 = vld [vmem:[#allocation6 + $0x1b0] sm:$0xff]  ;;  %v259_v35 = vld [vmem:[#allocation6 + $0x1e8] sm:$0xff]  ;;  %v265_v36 = vld [vmem:[#allocation6 + $0x218] sm:$0xff] }
  0x7a   :  { %v3268_v37 = vpack.c.bf16 %v252_v34, %v246_v33  ;;  %v3270_v38 = vpack.c.bf16 %v265_v36, %v259_v35  ;;  %v258_v39 = vld [vmem:[#allocation6 + $0x1e0] sm:$0xff]  ;;  %v264_v40 = vld [vmem:[#allocation6 + $0x210] sm:$0xff]  ;;  %v271_v41 = vld [vmem:[#allocation6 + $0x248] sm:$0xff] }
  0x7b   :  { %3257 = vmatpush1.bf16.msra.mxu1 %v3256_v19  ;;  %v277_v42 = vld [vmem:[#allocation6 + $0x278] sm:$0xff]  ;;  %v3272_v43 = vpack.c.bf16 %v264_v40, %v258_v39  ;;  %v270_v45 = vld [vmem:[#allocation6 + $0x240] sm:$0xff]  ;;  %v276_v46 = vld [vmem:[#allocation6 + $0x270] sm:$0xff] }
  0x7c   :  { %3259 = vmatprep.subr.bf16.mxu1 %v3258_v20  ;;  %v3274_v44 = vpack.c.bf16 %v277_v42, %v271_v41  ;;  %v283_v47 = vld [vmem:[#allocation6 + $0x2a8] sm:$0xff]  ;;  %v289_v48 = vld [vmem:[#allocation6 + $0x2d8] sm:$0xff]  ;;  %v3276_v49 = vpack.c.bf16 %v276_v46, %v270_v45  ;;  %v282_v51 = vld [vmem:[#allocation6 + $0x2a0] sm:$0xff] }
  0x7d   :  { %v3278_v50 = vpack.c.bf16 %v289_v48, %v283_v47  ;;  %v288_v52 = vld [vmem:[#allocation6 + $0x2d0] sm:$0xff]  ;;  %v295_v53 = vld [vmem:[#allocation6 + $0x308] sm:$0xff]  ;;  %v301_v54 = vld [vmem:[#allocation6 + $0x338] sm:$0xff] }
  0x7e   :  { %v3280_v55 = vpack.c.bf16 %v288_v52, %v282_v51  ;;  %v3282_v56 = vpack.c.bf16 %v301_v54, %v295_v53  ;;  %v294_v57 = vld [vmem:[#allocation6 + $0x300] sm:$0xff]  ;;  %v300_v58 = vld [vmem:[#allocation6 + $0x330] sm:$0xff]  ;;  %v307_v59 = vld [vmem:[#allocation6 + $0x368] sm:$0xff] }
  0x7f   :  { %3261 = vmatpush1.bf16.msra.mxu1 %v3260_v25  ;;  %v313_v60 = vld [vmem:[#allocation6 + $0x398] sm:$0xff]  ;;  %v3284_v61 = vpack.c.bf16 %v300_v58, %v294_v57  ;;  %v306_v63 = vld [vmem:[#allocation6 + $0x360] sm:$0xff]  ;;  %v312_v3 = vld [vmem:[#allocation6 + $0x390] sm:$0xff]  ;;  %v169_v57 = vlaneseq }
  0x80   :  { %3263 = vmatprep.subr.bf16.mxu1 %v3262_v26  ;;  %v3286_v62 = vpack.c.bf16 %v313_v60, %v307_v59  ;;  %v319_v5 = vld [vmem:[#allocation6 + $0x3c8] sm:$0xff]  ;;  %v325_v6 = vld [vmem:[#allocation6 + $0x3f8] sm:$0xff]  ;;  %v3288_v7 = vpack.c.bf16 %v312_v3, %v306_v63  ;;  %v318_v9 = vld [vmem:[#allocation6 + $0x3c0] sm:$0xff] }
  0x81   :  { %v3290_v8 = vpack.c.bf16 %v325_v6, %v319_v5  ;;  %v324_v10 = vld [vmem:[#allocation6 + $0x3f0] sm:$0xff]  ;;  %v331_v24 = vld [vmem:[#allocation6 + $0x428] sm:$0xff]  ;;  %v337_v25 = vld [vmem:[#allocation6 + $0x458] sm:$0xff] }
  0x82   :  { %v3292_v11 = vpack.c.bf16 %v324_v10, %v318_v9  ;;  %v3294_v26 = vpack.c.bf16 %v337_v25, %v331_v24  ;;  %v330_v27 = vld [vmem:[#allocation6 + $0x420] sm:$0xff]  ;;  %v336_v28 = vld [vmem:[#allocation6 + $0x450] sm:$0xff]  ;;  %v349_v29 = vld [vmem:[#allocation6 + $0x4b8] sm:$0xff] }
  0x83   :  { %3265 = vmatpush1.bf16.msra.mxu1 %v3264_v31  ;;  %v342_v31 = vld [vmem:[#allocation6 + $0x480] sm:$0xff]  ;;  %v355_v34 = vld [vmem:[#allocation6 + $0x4e8] sm:$0xff]  ;;  %v361_v35 = vld [vmem:[#allocation6 + $0x518] sm:$0xff] }
  0x84   :  { %3267 = vmatprep.subr.bf16.mxu1 %v3266_v32  ;;  %v348_v32 = vld [vmem:[#allocation6 + $0x4b0] sm:$0xff]  ;;  %v3302_v36 = vpack.c.bf16 %v361_v35, %v355_v34  ;;  %v367_v40 = vld [vmem:[#allocation6 + $0x548] sm:$0xff]  ;;  %v373_v41 = vld [vmem:[#allocation6 + $0x578] sm:$0xff] }
  0x85   :  { %v3300_v33 = vpack.c.bf16 %v348_v32, %v342_v31  ;;  %v366_v42 = vld [vmem:[#allocation6 + $0x540] sm:$0xff]  ;;  %v379_v45 = vld [vmem:[#allocation6 + $0x5a8] sm:$0xff]  ;;  %v385_v46 = vld [vmem:[#allocation6 + $0x5d8] sm:$0xff] }
  0x86   :  { %v3310_v48 = vpack.c.bf16 %v385_v46, %v379_v45  ;;  %v201_v52 = vld [vmem:[#allocation6 + $0x18] sm:$0xff]  ;;  %v207_v53 = vld [vmem:[#allocation6 + $0x48] sm:$0xff]  ;;  %v133_v5 = vld [vmem:[%s5158_s5] sm:$0x3] }
  0x87   :  { %3269 = vmatpush1.bf16.msra.mxu1 %v3268_v37  ;;  %v354_v37 = vld [vmem:[#allocation6 + $0x4e0] sm:$0xff]  ;;  %v3314_v54 = vpack.c.bf16 %v207_v53, %v201_v52  ;;  %v237_v35 = vld [vmem:[#allocation6 + $0x138] sm:$0xff]  ;;  %v248_v45 = vld [vmem:[#allocation6 + $0x190] sm:$0xff] }
  0x88   :  { %3271 = vmatprep.subr.bf16.mxu1 %v3270_v38  ;;  %v360_v38 = vld [vmem:[#allocation6 + $0x510] sm:$0xff]  ;;  %v134_v6 = vld [vmem:[%s5159_s6] sm:$0x3]  ;;  %v273_v53 = vld [vmem:[#allocation6 + $0x258] sm:$0xff] }
  0x89   :  { %v3304_v39 = vpack.c.bf16 %v360_v38, %v354_v37  ;;  %v230_v34 = vld [vmem:[#allocation6 + $0x100] sm:$0xff] }
  0x8a   :  { %v254_v46 = vld [vmem:[#allocation6 + $0x1c0] sm:$0xff] }
  0x8b   :  { %3273 = vmatpush1.bf16.msra.mxu1 %v3272_v43  ;;  %v3306_v43 = vpack.c.bf16 %v373_v41, %v367_v40  ;;  %v242_v40 = vld [vmem:[#allocation6 + $0x160] sm:$0xff]  ;;  %v249_v41 = vld [vmem:[#allocation6 + $0x198] sm:$0xff] }
  0x8c   :  { %3275 = vmatprep.subr.bf16.mxu1 %v3274_v44  ;;  %v372_v44 = vld [vmem:[#allocation6 + $0x570] sm:$0xff]  ;;  %v266_v52 = vld [vmem:[#allocation6 + $0x220] sm:$0xff] }
  0x8d   :  { %v3308_v47 = vpack.c.bf16 %v372_v44, %v366_v42  ;;  %v255_v42 = vld [vmem:[#allocation6 + $0x1c8] sm:$0xff] }
  0x8e   :  { %v3330_v44 = vpack.c.bf16 %v255_v42, %v249_v41  ;;  %v356_v42 = vld [vmem:[#allocation6 + $0x4f0] sm:$0xff] }
  0x8f   :  { %3277 = vmatpush1.bf16.msra.mxu1 %v3276_v49  ;;  %v378_v49 = vld [vmem:[#allocation6 + $0x5a0] sm:$0xff] }
  0x90   :  { %3279 = vmatprep.subr.bf16.mxu1 %v3278_v50  ;;  %v384_v50 = vld [vmem:[#allocation6 + $0x5d0] sm:$0xff] }
  0x91   :  { %v3312_v51 = vpack.c.bf16 %v384_v50, %v378_v49  ;;  %v3332_v49 = vpack.c.bf16 %v254_v46, %v248_v45  ;;  %v375_v45 = vld [vmem:[#allocation6 + $0x588] sm:$0xff] }
  0x93   :  { %3281 = vmatpush1.bf16.msra.mxu1 %v3280_v55 }
  0x94   :  { %3283 = vmatprep.subr.bf16.mxu1 %v3282_v56 }
  0x97   :  { %3285 = vmatpush1.bf16.msra.mxu1 %v3284_v61  ;;  %v4568_v61 = vshrl.u32 %v169_v57, 7  ;;  %v272_v57 = vld [vmem:[#allocation6 + $0x250] sm:$0xff] }
  0x98   :  { %3287 = vmatprep.subr.bf16.mxu1 %v3286_v62 }
  0x99   :  { %v4571_v63 = vsub.s32 1, %v4568_v61  ;;  %v4574_v3 = vsub.s32 0, %v4568_v61 }
  0x9b   :  { %3289 = vmatpush1.bf16.msra.mxu1 %v3288_v7  ;;  %v176_v7 = vrot.slane %v133_v5, %v4571_v63 }
  0x9c   :  { %3291 = vmatprep.subr.bf16.mxu1 %v3290_v8  ;;  %v172_v8 = vrot.slane %v133_v5, %v4574_v3 }
  0x9f   :  { %3293 = vmatpush1.bf16.msra.mxu1 %v3292_v11  ;;  %v191_v11 = vrot.slane %v134_v6, %v4571_v63 }
  0xa0   :  { %3295 = vmatprep.subr.bf16.mxu1 %v3294_v26 }
 0x101   :  { %v137_v12 = vpop.xlane.xlu0 %136 }
 0x102   :  { %v142_v13 = vmul.f32 0.00390625, %v137_v12 }
 0x104   :  { %v4549_v14 = vsub.f32 %v4536_v0, %v142_v13  ;;  %v4552_v15 = vsub.f32 %v4538_v1, %v142_v13  ;;  %v187_v13 = vrot.slane %v134_v6, %v4574_v3  ;;  %v284_v6 = vld [vmem:[#allocation6 + $0x2b0] sm:$0xff] }
 0x105   :  { %v140_v16 = vpop.xlane.xlu0 %139 }
 0x106   :  { %v143_v17 = vmul.f32 0.00390625, %v140_v16  ;;  %v148_v18 = vmul.f32 %v4549_v14, %v4549_v14  ;;  %v149_v19 = vmul.f32 %v4552_v15, %v4552_v15  ;;  %v200_v16 = vld [vmem:[#allocation6 + $0x10] sm:$0xff] }
 0x108   :  { %v4559_v20 = vsub.f32 %v4540_v2, %v143_v17  ;;  %v4562_v21 = vsub.f32 %v4544_v4, %v143_v17  ;;  %v152_v22 = vadd.f32 %v149_v19, %v148_v18  ;;  %v3296_v2 = vpack.c.bf16 %v336_v28, %v330_v27  ;;  %v343_v4 = vld [vmem:[#allocation6 + $0x488] sm:$0xff]  ;;  %v206_v17 = vld [vmem:[#allocation6 + $0x40] sm:$0xff] }
 0x109   :  { %v3298_v30 = vpack.c.bf16 %v349_v29, %v343_v4  ;;  %v218_v28 = vld [vmem:[#allocation6 + $0xa0] sm:$0xff]  ;;  %v225_v29 = vld [vmem:[#allocation6 + $0xd8] sm:$0xff] }
 0x10a   :  { %153 = vadd.xlane.f32.xlu1 %v152_v22  ;;  %v150_v0 = vmul.f32 %v4559_v20, %v4559_v20  ;;  %v151_v1 = vmul.f32 %v4562_v21, %v4562_v21  ;;  %3297 = vmatpush1.bf16.msra.mxu1 %v3296_v2  ;;  %v213_v22 = vld [vmem:[#allocation6 + $0x78] sm:$0xff] }
 0x10b   :  { %3299 = vmatprep.subr.bf16.mxu1 %v3298_v30  ;;  %v231_v30 = vld [vmem:[#allocation6 + $0x108] sm:$0xff] }
 0x10c   :  { %v155_v23 = vadd.f32 %v151_v1, %v150_v0  ;;  %v219_v0 = vld [vmem:[#allocation6 + $0xa8] sm:$0xff] }
 0x10d   :  { %v3318_v27 = vpack.c.bf16 %v219_v0, %v213_v22  ;;  %v308_v22 = vld [vmem:[#allocation6 + $0x370] sm:$0xff]  ;;  %v314_v0 = vld [vmem:[#allocation6 + $0x3a0] sm:$0xff] }
 0x10e   :  { %156 = vadd.xlane.f32.xlu1 %v155_v23  ;;  %3301 = vmatpush1.bf16.msra.mxu1 %v3300_v33  ;;  %v3316_v23 = vpack.c.bf16 %v206_v17, %v200_v16  ;;  %v309_v16 = vld [vmem:[#allocation6 + $0x378] sm:$0xff]  ;;  %v315_v17 = vld [vmem:[#allocation6 + $0x3a8] sm:$0xff] }
 0x10f   :  { %3303 = vmatprep.subr.bf16.mxu1 %v3302_v36  ;;  %v243_v36 = vld [vmem:[#allocation6 + $0x168] sm:$0xff] }
 0x110   :  { %v3326_v38 = vpack.c.bf16 %v243_v36, %v237_v35  ;;  %v344_v36 = vld [vmem:[#allocation6 + $0x490] sm:$0xff] }
 0x112   :  { %3305 = vmatpush1.bf16.msra.mxu1 %v3304_v39  ;;  %v236_v39 = vld [vmem:[#allocation6 + $0x130] sm:$0xff] }
 0x113   :  { %3307 = vmatprep.subr.bf16.mxu1 %v3306_v43  ;;  %v3328_v43 = vpack.c.bf16 %v242_v40, %v236_v39  ;;  %v363_v39 = vld [vmem:[#allocation6 + $0x528] sm:$0xff] }
 0x116   :  { %3309 = vmatpush1.bf16.msra.mxu1 %v3308_v47  ;;  %v261_v47 = vld [vmem:[#allocation6 + $0x1f8] sm:$0xff] }
 0x117   :  { %3311 = vmatprep.subr.bf16.mxu1 %v3310_v48  ;;  %v267_v48 = vld [vmem:[#allocation6 + $0x228] sm:$0xff] }
 0x118   :  { %v3334_v50 = vpack.c.bf16 %v267_v48, %v261_v47  ;;  %v368_v48 = vld [vmem:[#allocation6 + $0x550] sm:$0xff] }
 0x11a   :  { %3313 = vmatpush1.bf16.msra.mxu1 %v3312_v51  ;;  %v260_v51 = vld [vmem:[#allocation6 + $0x1f0] sm:$0xff] }
 0x11b   :  { %3315 = vmatprep.subr.bf16.mxu1 %v3314_v54  ;;  %v279_v54 = vld [vmem:[#allocation6 + $0x288] sm:$0xff] }
 0x197   :  { %v154_v55 = vpop.xlane.xlu1 %153 }
 0x198   :  { %v158_v56 = vmul.f32 0.00390625, %v154_v55  ;;  %v3336_v55 = vpack.c.bf16 %v266_v52, %v260_v51  ;;  %v387_v51 = vld [vmem:[#allocation6 + $0x5e8] sm:$0xff] }
 0x19a   :  { %v160_v58 = vadd.f32 1e-06, %v158_v56  ;;  %v3338_v56 = vpack.c.bf16 %v279_v54, %v273_v53  ;;  %v380_v54 = vld [vmem:[#allocation6 + $0x5b0] sm:$0xff] }
 0x19b   :  { %v157_v59 = vpop.xlane.xlu1 %156 }
 0x19c   :  { %4053 = vrsqrt.f32 %v160_v58  ;;  %v159_v60 = vmul.f32 0.00390625, %v157_v59  ;;  %v278_v58 = vld [vmem:[#allocation6 + $0x280] sm:$0xff]  ;;  %v285_v59 = vld [vmem:[#allocation6 + $0x2b8] sm:$0xff] }
 0x19e   :  { %v161_v62 = vadd.f32 1e-06, %v159_v60  ;;  %v291_v60 = vld [vmem:[#allocation6 + $0x2e8] sm:$0xff] }
 0x19f   :  { %v3342_v5 = vpack.c.bf16 %v291_v60, %v285_v59  ;;  %v202_v60 = vld [vmem:[#allocation6 + $0x20] sm:$0xff] }
 0x1a0   :  { %4055 = vrsqrt.f32 %v161_v62  ;;  %v3340_v62 = vpack.c.bf16 %v278_v58, %v272_v57  ;;  %v209_v57 = vld [vmem:[#allocation6 + $0x58] sm:$0xff] }
 0x1a6   :  { %v4054_v9 = vpop.eup %4053 }
 0x1a7   :  { %v165_v10 = vmul.f32 %v4054_v9, %v4552_v15  ;;  %v164_v12 = vmul.f32 %v4054_v9, %v4549_v14  ;;  %v212_v14 = vld [vmem:[#allocation6 + $0x70] sm:$0xff]  ;;  %v303_v9 = vld [vmem:[#allocation6 + $0x348] sm:$0xff] }
 0x1a8   :  { %v3320_v33 = vpack.c.bf16 %v218_v28, %v212_v14  ;;  %v326_v14 = vld [vmem:[#allocation6 + $0x400] sm:$0xff]  ;;  %v333_v28 = vld [vmem:[#allocation6 + $0x438] sm:$0xff] }
 0x1a9   :  { %v180_v18 = vmul.f32 %v176_v7, %v165_v10  ;;  %v179_v19 = vmul.f32 %v172_v8, %v164_v12  ;;  %v296_v12 = vld [vmem:[#allocation6 + $0x310] sm:$0xff] }
 0x1aa   :  { %v4056_v1 = vpop.eup %4055 }
 0x1ab   :  { %v4588_v24 = vadd.f32 %v191_v11, %v180_v18  ;;  %v4590_v25 = vadd.f32 %v187_v13, %v179_v19  ;;  %v167_v15 = vmul.f32 %v4056_v1, %v4562_v21  ;;  %v166_v26 = vmul.f32 %v4056_v1, %v4559_v20  ;;  %v224_v20 = vld [vmem:[#allocation6 + $0xd0] sm:$0xff]  ;;  %v321_v1 = vld [vmem:[#allocation6 + $0x3d8] sm:$0xff] }
 0x1ac   :  { %v3322_v21 = vpack.c.bf16 %v231_v30, %v225_v29  ;;  %v3324_v37 = vpack.c.bf16 %v230_v34, %v224_v20  ;;  %v3350_v19 = vpack.c.bf16 %v315_v17, %v309_v16  ;;  %v332_v30 = vld [vmem:[#allocation6 + $0x430] sm:$0xff]  ;;  %v351_v20 = vld [vmem:[#allocation6 + $0x4c8] sm:$0xff]  ;;  %v226_v17 = vld [vmem:[#allocation6 + $0xe0] sm:$0xff] }
 0x1ad   :  { %486 = vmatprep.mubr.f32.mxu1 %v4588_v24  ;;  %v182_v2 = vmul.f32 %v176_v7, %v167_v15  ;;  %v181_v4 = vmul.f32 %v172_v8, %v166_v26  ;;  %v290_v7 = vld [vmem:[#allocation6 + $0x2e0] sm:$0xff]  ;;  %v297_v8 = vld [vmem:[#allocation6 + $0x318] sm:$0xff]  ;;  %v3352_v15 = vpack.c.bf16 %v314_v0, %v308_v22 }
 0x1ae   :  { %487 = vmatmul.mubr.f32.vlgmr.msra.gmra.mrb[0].mxu1 %v4590_v25  ;;  %v3344_v10 = vpack.c.bf16 %v290_v7, %v284_v6  ;;  %v221_v6 = vld [vmem:[#allocation6 + $0xb8] sm:$0xff] }
 0x1af   :  { %3317 = vmatpush1.bf16.msra.mxu1 %v3316_v23  ;;  %v4596_v31 = vadd.f32 %v191_v11, %v182_v2  ;;  %v4598_v32 = vadd.f32 %v187_v13, %v181_v4  ;;  %v3346_v11 = vpack.c.bf16 %v303_v9, %v297_v8  ;;  %v302_v13 = vld [vmem:[#allocation6 + $0x340] sm:$0xff]  ;;  %v327_v23 = vld [vmem:[#allocation6 + $0x408] sm:$0xff]  ;;  %v245_v22 = vld [vmem:[#allocation6 + $0x178] sm:$0xff] }
 0x1b0   :  { %3319 = vmatprep.subr.bf16.mxu1 %v3318_v27  ;;  %v3348_v18 = vpack.c.bf16 %v302_v13, %v296_v12  ;;  %v3354_v26 = vpack.c.bf16 %v327_v23, %v321_v1  ;;  %v320_v27 = vld [vmem:[#allocation6 + $0x3d0] sm:$0xff]  ;;  %v339_v2 = vld [vmem:[#allocation6 + $0x468] sm:$0xff]  ;;  %v214_v9 = vld [vmem:[#allocation6 + $0x80] sm:$0xff] }
 0x1b1   :  { %492 = vmatprep.mubr.f32.mxu1 %v4596_v31  ;;  %v3356_v4 = vpack.c.bf16 %v326_v14, %v320_v27  ;;  %v3358_v29 = vpack.c.bf16 %v339_v2, %v333_v28  ;;  %v233_v12 = vld [vmem:[#allocation6 + $0x118] sm:$0xff]  ;;  %v238_v23 = vld [vmem:[#allocation6 + $0x140] sm:$0xff] }
 0x1b2   :  { %493 = vmatmul.mubr.f32.gmra.mrb[2].mxu1 %v4598_v32  ;;  %v257_v27 = vld [vmem:[#allocation6 + $0x1d8] sm:$0xff]  ;;  %v250_v2 = vld [vmem:[#allocation6 + $0x1a0] sm:$0xff] }
 0x1b3   :  { %3321 = vmatpush1.bf16.msra.mxu1 %v3320_v33  ;;  %563 = vmatprep.mubr.f32.mxu1 %v4588_v24  ;;  %v338_v33 = vld [vmem:[#allocation6 + $0x460] sm:$0xff] }
 0x1b4   :  { %3323 = vmatprep.subr.bf16.mxu1 %v3322_v21  ;;  %v345_v21 = vld [vmem:[#allocation6 + $0x498] sm:$0xff]  ;;  %v3360_v34 = vpack.c.bf16 %v338_v33, %v332_v30 }
 0x1b5   :  { %v3362_v35 = vpack.c.bf16 %v351_v20, %v345_v21  ;;  %v269_v30 = vld [vmem:[#allocation6 + $0x238] sm:$0xff]  ;;  %v268_v20 = vld [vmem:[#allocation6 + $0x230] sm:$0xff] }
 0x1b7   :  { %3325 = vmatpush1.bf16.msra.mxu1 %v3324_v37  ;;  %v350_v37 = vld [vmem:[#allocation6 + $0x4c0] sm:$0xff] }
 0x1b8   :  { %3327 = vmatprep.subr.bf16.mxu1 %v3326_v38  ;;  %v357_v38 = vld [vmem:[#allocation6 + $0x4f8] sm:$0xff]  ;;  %v3364_v40 = vpack.c.bf16 %v350_v37, %v344_v36 }
 0x1b9   :  { %v3366_v41 = vpack.c.bf16 %v363_v39, %v357_v38  ;;  %v274_v38 = vld [vmem:[#allocation6 + $0x260] sm:$0xff]  ;;  %v280_v39 = vld [vmem:[#allocation6 + $0x290] sm:$0xff] }
 0x1bb   :  { %3329 = vmatpush1.bf16.msra.mxu1 %v3328_v43  ;;  %v362_v43 = vld [vmem:[#allocation6 + $0x520] sm:$0xff] }
 0x1bc   :  { %3331 = vmatprep.subr.bf16.mxu1 %v3330_v44  ;;  %v369_v44 = vld [vmem:[#allocation6 + $0x558] sm:$0xff]  ;;  %v3368_v46 = vpack.c.bf16 %v362_v43, %v356_v42  ;;  %v3404_v42 = vpack.c.bf16 %v280_v39, %v274_v38 }
 0x1bd   :  { %v3370_v47 = vpack.c.bf16 %v375_v45, %v369_v44  ;;  %v286_v44 = vld [vmem:[#allocation6 + $0x2c0] sm:$0xff]  ;;  %v292_v45 = vld [vmem:[#allocation6 + $0x2f0] sm:$0xff] }
 0x1bf   :  { %3333 = vmatpush1.bf16.msra.mxu1 %v3332_v49  ;;  %v374_v49 = vld [vmem:[#allocation6 + $0x580] sm:$0xff] }
 0x1c0   :  { %3335 = vmatprep.subr.bf16.mxu1 %v3334_v50  ;;  %v381_v50 = vld [vmem:[#allocation6 + $0x5b8] sm:$0xff]  ;;  %v3372_v52 = vpack.c.bf16 %v374_v49, %v368_v48  ;;  %v3408_v48 = vpack.c.bf16 %v292_v45, %v286_v44 }
 0x1c1   :  { %v3374_v53 = vpack.c.bf16 %v387_v51, %v381_v50  ;;  %v298_v50 = vld [vmem:[#allocation6 + $0x320] sm:$0xff]  ;;  %v304_v51 = vld [vmem:[#allocation6 + $0x350] sm:$0xff] }
 0x1c3   :  { %3337 = vmatpush1.bf16.msra.mxu1 %v3336_v55  ;;  %v386_v55 = vld [vmem:[#allocation6 + $0x5e0] sm:$0xff] }
 0x1c4   :  { %3339 = vmatprep.subr.bf16.mxu1 %v3338_v56  ;;  %v203_v56 = vld [vmem:[#allocation6 + $0x28] sm:$0xff]  ;;  %v3376_v58 = vpack.c.bf16 %v386_v55, %v380_v54  ;;  %v3412_v54 = vpack.c.bf16 %v304_v51, %v298_v50 }
 0x1c5   :  { %v3378_v59 = vpack.c.bf16 %v209_v57, %v203_v56  ;;  %v310_v56 = vld [vmem:[#allocation6 + $0x380] sm:$0xff]  ;;  %v316_v57 = vld [vmem:[#allocation6 + $0x3b0] sm:$0xff] }
 0x1c7   :  { %3341 = vmatpush1.bf16.msra.mxu1 %v3340_v62  ;;  %v208_v62 = vld [vmem:[#allocation6 + $0x50] sm:$0xff] }
 0x1c8   :  { %3343 = vmatprep.subr.bf16.mxu1 %v3342_v5  ;;  %v215_v5 = vld [vmem:[#allocation6 + $0x88] sm:$0xff]  ;;  %v3380_v7 = vpack.c.bf16 %v208_v62, %v202_v60  ;;  %v3416_v60 = vpack.c.bf16 %v316_v57, %v310_v56  ;;  %v414_v56 = vsub.s32 5, %v4568_v61 }
 0x1c9   :  { %v3382_v8 = vpack.c.bf16 %v221_v6, %v215_v5  ;;  %v322_v5 = vld [vmem:[#allocation6 + $0x3e0] sm:$0xff]  ;;  %v328_v6 = vld [vmem:[#allocation6 + $0x410] sm:$0xff] }
 0x1cb   :  { %3345 = vmatpush1.bf16.msra.mxu1 %v3344_v10  ;;  %v220_v10 = vld [vmem:[#allocation6 + $0xb0] sm:$0xff] }
 0x1cc   :  { %3347 = vmatprep.subr.bf16.mxu1 %v3346_v11  ;;  %v227_v11 = vld [vmem:[#allocation6 + $0xe8] sm:$0xff]  ;;  %v3384_v13 = vpack.c.bf16 %v220_v10, %v214_v9  ;;  %v3420_v9 = vpack.c.bf16 %v328_v6, %v322_v5 }
 0x1cd   :  { %v3386_v16 = vpack.c.bf16 %v233_v12, %v227_v11  ;;  %v334_v11 = vld [vmem:[#allocation6 + $0x440] sm:$0xff]  ;;  %v340_v12 = vld [vmem:[#allocation6 + $0x470] sm:$0xff] }
 0x1cf   :  { %3349 = vmatpush1.bf16.msra.mxu1 %v3348_v18  ;;  %v232_v18 = vld [vmem:[#allocation6 + $0x110] sm:$0xff] }
 0x1d0   :  { %3351 = vmatprep.subr.bf16.mxu1 %v3350_v19  ;;  %v239_v19 = vld [vmem:[#allocation6 + $0x148] sm:$0xff]  ;;  %v3388_v0 = vpack.c.bf16 %v232_v18, %v226_v17  ;;  %v3424_v17 = vpack.c.bf16 %v340_v12, %v334_v11 }
 0x1d1   :  { %v3390_v1 = vpack.c.bf16 %v245_v22, %v239_v19  ;;  %v346_v19 = vld [vmem:[#allocation6 + $0x4a0] sm:$0xff]  ;;  %v352_v22 = vld [vmem:[#allocation6 + $0x4d0] sm:$0xff] }
 0x1d3   :  { %3353 = vmatpush1.bf16.msra.mxu1 %v3352_v15  ;;  %v244_v15 = vld [vmem:[#allocation6 + $0x170] sm:$0xff] }
 0x1d4   :  { %3355 = vmatprep.subr.bf16.mxu1 %v3354_v26  ;;  %v251_v26 = vld [vmem:[#allocation6 + $0x1a8] sm:$0xff]  ;;  %v3392_v14 = vpack.c.bf16 %v244_v15, %v238_v23  ;;  %v3428_v23 = vpack.c.bf16 %v352_v22, %v346_v19 }
 0x1d5   :  { %v3394_v28 = vpack.c.bf16 %v257_v27, %v251_v26  ;;  %v358_v26 = vld [vmem:[#allocation6 + $0x500] sm:$0xff]  ;;  %v364_v27 = vld [vmem:[#allocation6 + $0x530] sm:$0xff] }
 0x1d7   :  { %3357 = vmatpush1.bf16.msra.mxu1 %v3356_v4  ;;  %v256_v4 = vld [vmem:[#allocation6 + $0x1d0] sm:$0xff] }
 0x1d8   :  { %3359 = vmatprep.subr.bf16.mxu1 %v3358_v29  ;;  %v263_v29 = vld [vmem:[#allocation6 + $0x208] sm:$0xff]  ;;  %v3396_v33 = vpack.c.bf16 %v256_v4, %v250_v2  ;;  %v3432_v2 = vpack.c.bf16 %v364_v27, %v358_v26 }
 0x1d9   :  { %v3398_v21 = vpack.c.bf16 %v269_v30, %v263_v29  ;;  %v370_v29 = vld [vmem:[#allocation6 + $0x560] sm:$0xff]  ;;  %v376_v30 = vld [vmem:[#allocation6 + $0x590] sm:$0xff] }
 0x1db   :  { %3361 = vmatpush1.bf16.msra.mxu1 %v3360_v34  ;;  %v275_v34 = vld [vmem:[#allocation6 + $0x268] sm:$0xff] }
 0x1dc   :  { %3363 = vmatprep.subr.bf16.mxu1 %v3362_v35  ;;  %v281_v35 = vld [vmem:[#allocation6 + $0x298] sm:$0xff] }
 0x1dd   :  { %v3402_v37 = vpack.c.bf16 %v281_v35, %v275_v34  ;;  %v382_v34 = vld [vmem:[#allocation6 + $0x5c0] sm:$0xff]  ;;  %v388_v35 = vld [vmem:[#allocation6 + $0x5f0] sm:$0xff] }
 0x1df   :  { %3365 = vmatpush1.bf16.msra.mxu1 %v3364_v40  ;;  %v287_v40 = vld [vmem:[#allocation6 + $0x2c8] sm:$0xff] }
 0x1e0   :  { %3367 = vmatprep.subr.bf16.mxu1 %v3366_v41  ;;  %v293_v41 = vld [vmem:[#allocation6 + $0x2f8] sm:$0xff] }
 0x1e1   :  { %v3406_v43 = vpack.c.bf16 %v293_v41, %v287_v40  ;;  %v4625_v41 = vld [vmem:[%s5155_s2] sm:$0x3f] }
 0x1e2   :  { %v395_v44 = vrot.slane %v4625_v41, %v4574_v3 }
 0x1e3   :  { %3369 = vmatpush1.bf16.msra.mxu1 %v3368_v46  ;;  %v299_v46 = vld [vmem:[#allocation6 + $0x328] sm:$0xff] }
 0x1e4   :  { %3371 = vmatprep.subr.bf16.mxu1 %v3370_v47  ;;  %v305_v47 = vld [vmem:[#allocation6 + $0x358] sm:$0xff] }
 0x1e5   :  { %v3410_v49 = vpack.c.bf16 %v305_v47, %v299_v46 }
 0x1e7   :  { %3373 = vmatpush1.bf16.msra.mxu1 %v3372_v52  ;;  %v311_v52 = vld [vmem:[#allocation6 + $0x388] sm:$0xff] }
 0x1e8   :  { %3375 = vmatprep.subr.bf16.mxu1 %v3374_v53  ;;  %v317_v53 = vld [vmem:[#allocation6 + $0x3b8] sm:$0xff] }
 0x1e9   :  { %v3414_v55 = vpack.c.bf16 %v317_v53, %v311_v52 }
 0x1eb   :  { %3377 = vmatpush1.bf16.msra.mxu1 %v3376_v58  ;;  %v323_v58 = vld [vmem:[#allocation6 + $0x3e8] sm:$0xff] }
 0x1ec   :  { %3379 = vmatprep.subr.bf16.mxu1 %v3378_v59  ;;  %v329_v59 = vld [vmem:[#allocation6 + $0x418] sm:$0xff] }
 0x1ed   :  { %v3418_v62 = vpack.c.bf16 %v329_v59, %v323_v58  ;;  %v415_v58 = vrot.slane %v4625_v41, %v414_v56 }
 0x1ee   :  { %564 = vmatmul.mubr.f32.vlgmr.msra.gmra.mrb[4].mxu1 %v4590_v25 }
 0x1ef   :  { %569 = vmatprep.mubr.f32.mxu1 %v4596_v31  ;;  %3381 = vmatpush1.bf16.msra.mxu1 %v3380_v7  ;;  %v335_v7 = vld [vmem:[#allocation6 + $0x448] sm:$0xff] }
 0x1f0   :  { %3383 = vmatprep.subr.bf16.mxu1 %v3382_v8  ;;  %v341_v8 = vld [vmem:[#allocation6 + $0x478] sm:$0xff] }
 0x1f1   :  { %v3422_v10 = vpack.c.bf16 %v341_v8, %v335_v7 }
 0x1f2   :  { %570 = vmatmul.mubr.f32.gmra.mrb[6].mxu1 %v4598_v32 }
 0x1f3   :  { %3385 = vmatpush1.bf16.msra.mxu1 %v3384_v13  ;;  %640 = vmatprep.mubr.f32.mxu1 %v4588_v24  ;;  %v262_v24 = vld [vmem:[#allocation6 + $0x200] sm:$0xff]  ;;  %v347_v13 = vld [vmem:[#allocation6 + $0x4a8] sm:$0xff] }
 0x1f4   :  { %3387 = vmatprep.subr.bf16.mxu1 %v3386_v16  ;;  %v3400_v36 = vpack.c.bf16 %v268_v20, %v262_v24  ;;  %v353_v16 = vld [vmem:[#allocation6 + $0x4d8] sm:$0xff]  ;;  %v3436_v24 = vpack.c.bf16 %v376_v30, %v370_v29  ;;  %v399_v29 = vrot.slane %v4625_v41, %v4571_v63 }
 0x1f5   :  { %v3426_v18 = vpack.c.bf16 %v353_v16, %v347_v13 }
 0x1f7   :  { %3389 = vmatpush1.bf16.msra.mxu1 %v3388_v0  ;;  %v359_v0 = vld [vmem:[#allocation6 + $0x508] sm:$0xff] }
 0x1f8   :  { %3391 = vmatprep.subr.bf16.mxu1 %v3390_v1  ;;  %v365_v1 = vld [vmem:[#allocation6 + $0x538] sm:$0xff] }
 0x1f9   :  { %v3430_v15 = vpack.c.bf16 %v365_v1, %v359_v0 }
 0x1fb   :  { %3393 = vmatpush1.bf16.msra.mxu1 %v3392_v14  ;;  %v371_v14 = vld [vmem:[#allocation6 + $0x568] sm:$0xff] }
 0x1fc   :  { %3395 = vmatprep.subr.bf16.mxu1 %v3394_v28  ;;  %v377_v28 = vld [vmem:[#allocation6 + $0x598] sm:$0xff] }
 0x1fd   :  { %v3434_v4 = vpack.c.bf16 %v377_v28, %v371_v14 }
 0x1ff   :  { %3397 = vmatpush1.bf16.msra.mxu1 %v3396_v33  ;;  %v383_v33 = vld [vmem:[#allocation6 + $0x5c8] sm:$0xff] }
 0x200   :  { %3399 = vmatprep.subr.bf16.mxu1 %v3398_v21  ;;  %v389_v21 = vld [vmem:[#allocation6 + $0x5f8] sm:$0xff] }
 0x201   :  { %v3438_v20 = vpack.c.bf16 %v389_v21, %v383_v33 }
 0x203   :  { %3401 = vmatpush1.bf16.msra.mxu1 %v3400_v36  ;;  %v3440_v36 = vpack.c.bf16 %v388_v35, %v382_v34 }
 0x204   :  { %3403 = vmatprep.subr.bf16.mxu1 %v3402_v37  ;;  %v4368_v37 = vmov 0.0  }
 0x205   :  { %3210 = vmatprep.subr.mxu0 %v4368_v37  ;;  %3212 = vmatprep.mubr.msk.f32.mxu0 %vm4369_vm0, %v4368_v37 }
 0x207   :  { %3405 = vmatpush1.bf16.msra.mxu1 %v3404_v42 }
 0x208   :  { %3407 = vmatprep.subr.bf16.mxu1 %v3406_v43 }
 0x20b   :  { %3409 = vmatpush1.bf16.msra.mxu1 %v3408_v48 }
 0x20c   :  { %3411 = vmatprep.subr.bf16.mxu1 %v3410_v49 }
 0x20f   :  { %3413 = vmatpush1.bf16.msra.mxu1 %v3412_v54 }
 0x210   :  { %3415 = vmatprep.subr.bf16.mxu1 %v3414_v55  ;;  %v410_v55 = vsub.s32 4, %v4568_v61 }
 0x212   :  { %v411_v57 = vrot.slane %v4625_v41, %v410_v55 }
 0x213   :  { %3417 = vmatpush1.bf16.msra.mxu1 %v3416_v60 }
 0x214   :  { %3419 = vmatprep.subr.bf16.mxu1 %v3418_v62 }
 0x217   :  { %3421 = vmatpush1.bf16.msra.mxu1 %v3420_v9 }
 0x218   :  { %3423 = vmatprep.subr.bf16.mxu1 %v3422_v10 }
 0x21b   :  { %3425 = vmatpush1.bf16.msra.mxu1 %v3424_v17 }
 0x21c   :  { %3427 = vmatprep.subr.bf16.mxu1 %v3426_v18 }
 0x21f   :  { %3429 = vmatpush1.bf16.msra.mxu1 %v3428_v23 }
 0x220   :  { %3431 = vmatprep.subr.bf16.mxu1 %v3430_v15 }
 0x223   :  { %3433 = vmatpush1.bf16.msra.mxu1 %v3432_v2 }
 0x224   :  { %3435 = vmatprep.subr.bf16.mxu1 %v3434_v4 }
 0x227   :  { %3437 = vmatpush1.bf16.msra.mxu1 %v3436_v24 }
 0x228   :  { %3439 = vmatprep.subr.bf16.mxu1 %v3438_v20 }
 0x22b   :  { %3441 = vmatpush1.bf16.msra.mxu1 %v3440_v36 }
 0x22c   :  { %3230 = vmatprep.subr.mxu1 %v4368_v37 }
 0x22e   :  { %641 = vmatmul.mubr.f32.vlgmr.msra.gmra.mrb[8].mxu1 %v4590_v25 }
 0x22f   :  { %646 = vmatprep.mubr.f32.mxu1 %v4596_v31  ;;  %v402_v31 = vsub.s32 2, %v4568_v61 }
 0x231   :  { %v403_v42 = vrot.slane %v4625_v41, %v402_v31 }
 0x232   :  { %647 = vmatmul.mubr.f32.gmra.mrb[10].mxu1 %v4598_v32  ;;  %v406_v32 = vsub.s32 3, %v4568_v61 }
 0x233   :  { %3232 = vmatprep.mubr.msk.f32.mxu1 %vm4369_vm0, %v4368_v37 }
 0x234   :  { %v407_v43 = vrot.slane %v4625_v41, %v406_v32 }
 0x281   :  { %v488_v38 = vpop.f32.mrb[0].mxu1 }
 0x282   :  { %v4616_v39 = vpop.f32.mrb[1].mxu1  ;;  %v489_v49 = vadd.f32 %v488_v38, %v395_v44 }
 0x283   :  { %v491_v21 = vadd.f32 %v4616_v39, %v399_v29 }
 0x285   :  { %v494_v25 = vpop.f32.mrb[2].mxu1 }
 0x286   :  { %v4618_v40 = vpop.f32.mrb[3].mxu1  ;;  %v495_v54 = vadd.f32 %v494_v25, %v395_v44 }
 0x287   :  { %v497_v20 = vadd.f32 %v4618_v40, %v399_v29 }
 0x2c1   :  { %v565_v45 = vpop.f32.mrb[4].mxu1 }
 0x2c2   :  { %v566_v46 = vadd.f32 %v565_v45, %v403_v42  ;;  %v567_v47 = vpop.f32.mrb[5].mxu1 }
 0x2c3   :  { %v4635_v48 = vadd.f32 %v567_v47, %v407_v43 }
 0x2c4   :  { %653 = vst [vmem:[#allocation15] sm:$0xff] %v566_v46  ;;  %3211 = vmatpush3.xpose.msra.mxu0 %v566_v46 }
 0x2c5   :  { %812 = vst [vmem:[#allocation15 + $0x8] sm:$0xff] %v4635_v48  ;;  %v571_v50 = vpop.f32.mrb[6].mxu1  ;;  %3215 = vmatprep.subr.mxu0 %v4368_v37 }
 0x2c6   :  { %v572_v51 = vadd.f32 %v571_v50, %v403_v42  ;;  %v573_v52 = vpop.f32.mrb[7].mxu1 }
 0x2c7   :  { %v4639_v53 = vadd.f32 %v573_v52, %v407_v43  ;;  %3213 = vmatmul.mubr.f32.vlgmr.msra.gmra.mrb[0].mxu0 %v489_v49 }
 0x2c8   :  { %971 = vst [vmem:[#allocation15 + $0x10] sm:$0xff] %v572_v51  ;;  %3231 = vmatpush3.xpose.msra.mxu1 %v572_v51  ;;  %3217 = vmatprep.mubr.msk.f32.mxu0 %vm4369_vm0, %v4368_v37 }
 0x2c9   :  { %1130 = vst [vmem:[#allocation15 + $0x18] sm:$0xff] %v4639_v53  ;;  %3235 = vmatprep.subr.mxu1 %v4368_v37 }
 0x2cb   :  { %3233 = vmatmul.mubr.f32.vlgmr.msra.gmra.mrb[12].mxu1 %v495_v54  ;;  %v1295_v54 = vld [vmem:[#allocation8 + $0x18] sm:$0xff] }
 0x2cc   :  { %3237 = vmatprep.mubr.msk.f32.mxu1 %vm4369_vm0, %v4368_v37 }
 0x301   :  { %v642_v59 = vpop.f32.mrb[8].mxu1 }
 0x302   :  { %v643_v60 = vadd.f32 %v642_v59, %v411_v57  ;;  %v644_v62 = vpop.f32.mrb[9].mxu1 }
 0x303   :  { %v645_v5 = vadd.f32 %v644_v62, %v415_v58 }
 0x304   :  { %654 = vst [vmem:[#allocation17] sm:$0xff] %v643_v60  ;;  %3216 = vmatpush3.msra.mxu0 %v643_v60 }
 0x305   :  { %814 = vst [vmem:[#allocation17 + $0x8] sm:$0xff] %v645_v5  ;;  %v648_v6 = vpop.f32.mrb[10].mxu1  ;;  %3220 = vmatprep.subr.mxu0 %v4368_v37 }
 0x306   :  { %v649_v7 = vadd.f32 %v648_v6, %v411_v57  ;;  %v650_v8 = vpop.f32.mrb[11].mxu1  ;;  %v1294_v6 = vld [vmem:[#allocation8 + $0x10] sm:$0xff] }
 0x307   :  { %v651_v9 = vadd.f32 %v650_v8, %v415_v58  ;;  %v1299_v8 = vld [vmem:[#allocation8 + $0x38] sm:$0xff] }
 0x308   :  { %973 = vst [vmem:[#allocation17 + $0x10] sm:$0xff] %v649_v7  ;;  %3236 = vmatpush3.msra.mxu1 %v649_v7  ;;  %v1297_v7 = vld [vmem:[#allocation8 + $0x28] sm:$0xff] }
 0x309   :  { %1132 = vst [vmem:[#allocation17 + $0x18] sm:$0xff] %v651_v9  ;;  %3240 = vmatprep.subr.mxu1 %v4368_v37 }
 0x39a   :  { %v721_v10 = vpop.f32.mrb[0].mxu0 }
 0x39b   :  { %v3214_v11 = vpop.f32.mrb[1].mxu0  ;;  %v726_v12 = vsel %vm725_vm1, %v721_v10, -inf }
 0x39c   :  { %727 = vmax.xlane.f32.xlu0 %v726_v12  ;;  %v3446_v12 = vpack.c.bf16 %v1299_v8, %v1297_v7  ;;  %v1330_v7 = vld [vmem:[#allocation8 + $0x130] sm:$0xff]  ;;  %v1333_v8 = vld [vmem:[#allocation8 + $0x148] sm:$0xff] }
 0x39e   :  { %v1040_v13 = vpop.f32.mrb[12].mxu1 }
 0x39f   :  { %v3234_v16 = vpop.f32.mrb[13].mxu1  ;;  %v1044_v17 = vsel %vm725_vm1, %v1040_v13, -inf }
 0x3a0   :  { %1045 = vmax.xlane.f32.xlu1 %v1044_v17  ;;  %v1298_v16 = vld [vmem:[#allocation8 + $0x30] sm:$0xff]  ;;  %v1301_v17 = vld [vmem:[#allocation8 + $0x48] sm:$0xff] }
 0x429   :  { %v728_v18 = vpop.xlane.xlu0 %727 }
 0x42a   :  { %v729_v19 = vsub.f32 %v721_v10, %v728_v18  ;;  %v1303_v18 = vld [vmem:[#allocation8 + $0x58] sm:$0xff] }
 0x42c   :  { %v730_v22 = vmul.f32 1.442695, %v729_v19 }
 0x42d   :  { %v1046_v0 = vpop.xlane.xlu1 %1045 }
 0x42e   :  { %4057 = vpow2.f32 %v730_v22  ;;  %v1047_v1 = vsub.f32 %v1040_v13, %v1046_v0  ;;  %v1296_v13 = vld [vmem:[#allocation8 + $0x20] sm:$0xff]  ;;  %v3450_v22 = vpack.c.bf16 %v1303_v18, %v1301_v17  ;;  %v1339_v17 = vld [vmem:[#allocation8 + $0x178] sm:$0xff] }
 0x42f   :  { %v3448_v19 = vpack.c.bf16 %v1298_v16, %v1296_v13  ;;  %v1300_v0 = vld [vmem:[#allocation8 + $0x40] sm:$0xff]  ;;  %v1334_v13 = vld [vmem:[#allocation8 + $0x150] sm:$0xff]  ;;  %v1337_v16 = vld [vmem:[#allocation8 + $0x168] sm:$0xff] }
 0x430   :  { %v1048_v23 = vmul.f32 1.442695, %v1047_v1  ;;  %v1302_v1 = vld [vmem:[#allocation8 + $0x50] sm:$0xff] }
 0x432   :  { %4059 = vpow2.f32 %v1048_v23  ;;  %v1305_v23 = vld [vmem:[#allocation8 + $0x68] sm:$0xff] }
 0x438   :  { %v4058_v15 = vpop.eup %4057 }
 0x439   :  { %v732_v26 = vsel %vm725_vm1, %v4058_v15, 0.0 }
 0x43a   :  { %733 = vadd.xlane.f32.xlu0 %v732_v26  ;;  %v3452_v26 = vpack.c.bf16 %v1302_v1, %v1300_v0  ;;  %v1338_v0 = vld [vmem:[#allocation8 + $0x170] sm:$0xff]  ;;  %v1341_v1 = vld [vmem:[#allocation8 + $0x188] sm:$0xff] }
 0x43c   :  { %v4060_v27 = vpop.eup %4059 }
 0x43d   :  { %v1050_v14 = vsel %vm725_vm1, %v4060_v27, 0.0 }
 0x43e   :  { %1051 = vadd.xlane.f32.xlu1 %v1050_v14  ;;  %v1304_v14 = vld [vmem:[#allocation8 + $0x60] sm:$0xff] }
 0x4c7   :  { %v734_v28 = vpop.xlane.xlu0 %733 }
 0x4c8   :  { %4061 = vrcp.f32 %v734_v28  ;;  %v1306_v28 = vld [vmem:[#allocation8 + $0x70] sm:$0xff] }
 0x4c9   :  { %v3456_v29 = vpack.c.bf16 %v1306_v28, %v1304_v14  ;;  %v1342_v14 = vld [vmem:[#allocation8 + $0x190] sm:$0xff]  ;;  %v1345_v28 = vld [vmem:[#allocation8 + $0x1a8] sm:$0xff] }
 0x4cb   :  { %v1052_v2 = vpop.xlane.xlu1 %1051 }
 0x4cc   :  { %4063 = vrcp.f32 %v1052_v2  ;;  %v1309_v2 = vld [vmem:[#allocation8 + $0x88] sm:$0xff] }
 0x4d2   :  { %v4062_v4 = vpop.eup %4061 }
 0x4d3   :  { %v736_v30 = vmul.f32 %v4062_v4, %v4058_v15  ;;  %v1307_v15 = vld [vmem:[#allocation8 + $0x78] sm:$0xff] }
 0x4d4   :  { %v1311_v4 = vld [vmem:[#allocation8 + $0x98] sm:$0xff] }
 0x4d5   :  { %3218 = vmatmul.mubr.msk.f32.vlgmr.msra.gmra.mrb[2].mxu0 %vm725_vm1, %v736_v30  ;;  %v3458_v30 = vpack.c.bf16 %v1311_v4, %v1309_v2  ;;  %v1347_v2 = vld [vmem:[#allocation8 + $0x1b8] sm:$0xff] }
 0x4d6   :  { %v4064_v33 = vpop.eup %4063  ;;  %3221 = vmatpush3.xpose.msra.mxu0 %v4635_v48  ;;  %3222 = vmatprep.mubr.msk.f32.mxu0 %vm4369_vm0, %v4368_v37 }
 0x4d7   :  { %v1054_v24 = vmul.f32 %v4064_v33, %v4060_v27  ;;  %3225 = vmatprep.subr.mxu0 %v4368_v37  ;;  %v3454_v27 = vpack.c.bf16 %v1307_v15, %v1305_v23  ;;  %v1308_v33 = vld [vmem:[#allocation8 + $0x80] sm:$0xff]  ;;  %v1343_v23 = vld [vmem:[#allocation8 + $0x198] sm:$0xff] }
 0x4d9   :  { %3223 = vmatmul.mubr.f32.vlgmr.msra.gmra.mrb[4].mxu0 %v491_v21  ;;  %3238 = vmatmul.mubr.msk.f32.vlgmr.msra.gmra.mrb[14].mxu1 %vm725_vm1, %v1054_v24  ;;  %v1310_v21 = vld [vmem:[#allocation8 + $0x90] sm:$0xff]  ;;  %v1313_v24 = vld [vmem:[#allocation8 + $0xa8] sm:$0xff] }
 0x4da   :  { %3226 = vmatpush3.msra.mxu0 %v645_v5  ;;  %3241 = vmatpush3.xpose.msra.mxu1 %v4639_v53  ;;  %v1293_v53 = vld [vmem:[#allocation8 + $0x8] sm:$0xff]  ;;  %v1292_v5 = vld [vmem:[#allocation8] sm:$0xff] }
 0x4db   :  { %3242 = vmatprep.mubr.msk.f32.mxu1 %vm4369_vm0, %v4368_v37  ;;  %3245 = vmatprep.subr.mxu1 %v4368_v37  ;;  %v3442_v57 = vpack.c.bf16 %v1295_v54, %v1293_v53  ;;  %v3444_v10 = vpack.c.bf16 %v1294_v6, %v1292_v5  ;;  %v1328_v6 = vld [vmem:[#allocation8 + $0x120] sm:$0xff] }
 0x4dc   :  { %3227 = vmatprep.mubr.msk.f32.mxu0 %vm4369_vm0, %v4368_v37 }
 0x4dd   :  { %3243 = vmatmul.mubr.f32.vlgmr.msra.gmra.mrb[16].mxu1 %v497_v20  ;;  %v1315_v20 = vld [vmem:[#allocation8 + $0xb8] sm:$0xff] }
 0x4de   :  { %3246 = vmatpush3.msra.mxu1 %v651_v9  ;;  %3247 = vmatprep.mubr.msk.f32.mxu1 %vm4369_vm0, %v4368_v37 }
 0x4df   :  { %3443 = vmatprep.subr.bf16.mxu1 %v3442_v57  ;;  %v1324_v57 = vld [vmem:[#allocation8 + $0x100] sm:$0xff] }
 0x5a8   :  { %v4679_v34 = vpop.f32.mrb[2].mxu0 }
 0x5a9   :  { %v3219_v35 = vpop.f32.mrb[3].mxu0 }
 0x5aa   :  { %v3460_v35 = vpack.c.bf16 %v1310_v21, %v1308_v33  ;;  %v1346_v33 = vld [vmem:[#allocation8 + $0x1b0] sm:$0xff]  ;;  %v1349_v21 = vld [vmem:[#allocation8 + $0x1c8] sm:$0xff] }
 0x5ac   :  { %v881_v36 = vpop.f32.mrb[4].mxu0  ;;  %v4681_v38 = vpop.f32.mrb[14].mxu1 }
 0x5ad   :  { %v3224_v39 = vpop.f32.mrb[5].mxu0  ;;  %v3239_v25 = vpop.f32.mrb[15].mxu1  ;;  %v885_v40 = vsel %vm725_vm1, %v881_v36, -inf }
 0x5ae   :  { %886 = vmax.xlane.f32.xlu0 %v885_v40  ;;  %v1312_v39 = vld [vmem:[#allocation8 + $0xa0] sm:$0xff]  ;;  %v1314_v25 = vld [vmem:[#allocation8 + $0xb0] sm:$0xff]  ;;  %v1317_v40 = vld [vmem:[#allocation8 + $0xc8] sm:$0xff] }
 0x5b0   :  { %v1199_v41 = vpop.f32.mrb[16].mxu1 }
 0x5b1   :  { %v3244_v42 = vpop.f32.mrb[17].mxu1  ;;  %v1203_v43 = vsel %vm725_vm1, %v1199_v41, -inf }
 0x5b2   :  { %1204 = vmax.xlane.f32.xlu1 %v1203_v43  ;;  %v3464_v42 = vpack.c.bf16 %v1314_v25, %v1312_v39  ;;  %v1350_v39 = vld [vmem:[#allocation8 + $0x1d0] sm:$0xff]  ;;  %v1353_v25 = vld [vmem:[#allocation8 + $0x1e8] sm:$0xff] }
 0x63b   :  { %v887_v44 = vpop.xlane.xlu0 %886 }
 0x63c   :  { %v888_v45 = vsub.f32 %v881_v36, %v887_v44  ;;  %v3462_v36 = vpack.c.bf16 %v1315_v20, %v1313_v24  ;;  %v1316_v44 = vld [vmem:[#allocation8 + $0xc0] sm:$0xff]  ;;  %v1351_v24 = vld [vmem:[#allocation8 + $0x1d8] sm:$0xff] }
 0x63e   :  { %v889_v46 = vmul.f32 1.442695, %v888_v45  ;;  %v1318_v45 = vld [vmem:[#allocation8 + $0xd0] sm:$0xff] }
 0x63f   :  { %v1205_v37 = vpop.xlane.xlu1 %1204 }
 0x640   :  { %4065 = vpow2.f32 %v889_v46  ;;  %v1206_v47 = vsub.f32 %v1199_v41, %v1205_v37  ;;  %v1319_v41 = vld [vmem:[#allocation8 + $0xd8] sm:$0xff]  ;;  %v1321_v46 = vld [vmem:[#allocation8 + $0xe8] sm:$0xff] }
 0x641   :  { %v3466_v43 = vpack.c.bf16 %v1319_v41, %v1317_v40  ;;  %v1323_v37 = vld [vmem:[#allocation8 + $0xf8] sm:$0xff] }
 0x642   :  { %v1207_v48 = vmul.f32 1.442695, %v1206_v47  ;;  %v3468_v47 = vpack.c.bf16 %v1318_v45, %v1316_v44  ;;  %v1355_v40 = vld [vmem:[#allocation8 + $0x1f8] sm:$0xff]  ;;  %v1354_v44 = vld [vmem:[#allocation8 + $0x1f0] sm:$0xff] }
 0x644   :  { %4067 = vpow2.f32 %v1207_v48  ;;  %v3470_v48 = vpack.c.bf16 %v1323_v37, %v1321_v46 }
 0x64a   :  { %v4066_v49 = vpop.eup %4065 }
 0x64b   :  { %v891_v50 = vsel %vm725_vm1, %v4066_v49, 0.0 }
 0x64c   :  { %892 = vadd.xlane.f32.xlu0 %v891_v50  ;;  %v1322_v50 = vld [vmem:[#allocation8 + $0xf0] sm:$0xff] }
 0x64e   :  { %v4068_v51 = vpop.eup %4067 }
 0x64f   :  { %v1209_v52 = vsel %vm725_vm1, %v4068_v51, 0.0 }
 0x650   :  { %1210 = vadd.xlane.f32.xlu1 %v1209_v52  ;;  %v1327_v52 = vld [vmem:[#allocation8 + $0x118] sm:$0xff] }
 0x6d9   :  { %v893_v58 = vpop.xlane.xlu0 %892 }
 0x6da   :  { %4069 = vrcp.f32 %v893_v58  ;;  %v1326_v58 = vld [vmem:[#allocation8 + $0x110] sm:$0xff] }
 0x6dd   :  { %v1211_v59 = vpop.xlane.xlu1 %1210 }
 0x6de   :  { %4071 = vrcp.f32 %v1211_v59  ;;  %v1329_v59 = vld [vmem:[#allocation8 + $0x128] sm:$0xff] }
 0x6e4   :  { %v4070_v60 = vpop.eup %4069 }
 0x6e5   :  { %v895_v62 = vmul.f32 %v4070_v60, %v4066_v49  ;;  %v1320_v49 = vld [vmem:[#allocation8 + $0xe0] sm:$0xff]  ;;  %v1331_v60 = vld [vmem:[#allocation8 + $0x138] sm:$0xff] }
 0x6e6   :  { %v3472_v53 = vpack.c.bf16 %v1322_v50, %v1320_v49  ;;  %v3478_v5 = vpack.c.bf16 %v1331_v60, %v1329_v59  ;;  %v1437_v49 = vld [vmem:[#allocation9] sm:$0x3] }
 0x6e7   :  { %3228 = vmatmul.mubr.msk.f32.vlgmr.msra.gmra.mrb[6].mxu0 %vm725_vm1, %v895_v62  ;;  %v3476_v62 = vpack.c.bf16 %v1326_v58, %v1324_v57  ;;  %v1442_v50 = vrot.slane %v1437_v49, %v4574_v3  ;;  %v4142_v58 = vld [vmem:[#allocation3 + $0x8] sm:$0xff] }
 0x6e8   :  { %v4072_v9 = vpop.eup %4071 }
 0x6e9   :  { %v1213_v11 = vmul.f32 %v4072_v9, %v4068_v51  ;;  %v1325_v51 = vld [vmem:[#allocation8 + $0x108] sm:$0xff]  ;;  %v1335_v9 = vld [vmem:[#allocation8 + $0x158] sm:$0xff] }
 0x6ea   :  { %v3474_v54 = vpack.c.bf16 %v1327_v52, %v1325_v51  ;;  %v1446_v52 = vrot.slane %v1437_v49, %v4571_v63  ;;  %v1574_v49 = vld [vmem:[#allocation11 + $0x1c8] sm:$0xff] }
 0x6eb   :  { %3248 = vmatmul.mubr.msk.f32.vlgmr.msra.gmra.mrb[18].mxu1 %vm725_vm1, %v1213_v11  ;;  %v3482_v11 = vpack.c.bf16 %v1335_v9, %v1333_v8 }
 0x6ec   :  { %3445 = vmatpush1.bf16.msra.mxu1 %v3444_v10  ;;  %v3480_v10 = vpack.c.bf16 %v1330_v7, %v1328_v6 }
 0x6ed   :  { %3447 = vmatprep.subr.bf16.mxu1 %v3446_v12  ;;  %v1332_v12 = vld [vmem:[#allocation8 + $0x140] sm:$0xff] }
 0x6ee   :  { %v3484_v18 = vpack.c.bf16 %v1334_v13, %v1332_v12  ;;  %v1518_v13 = vld [vmem:[#allocation11 + $0x8] sm:$0xff] }
 0x6f0   :  { %3449 = vmatpush1.bf16.msra.mxu1 %v3448_v19  ;;  %v3486_v19 = vpack.c.bf16 %v1339_v17, %v1337_v16  ;;  %v1526_v16 = vld [vmem:[#allocation11 + $0x48] sm:$0xff]  ;;  %v1520_v17 = vld [vmem:[#allocation11 + $0x18] sm:$0xff] }
 0x6f1   :  { %3451 = vmatprep.subr.bf16.mxu1 %v3450_v22  ;;  %v1336_v22 = vld [vmem:[#allocation8 + $0x160] sm:$0xff] }
 0x6f2   :  { %v3488_v15 = vpack.c.bf16 %v1338_v0, %v1336_v22  ;;  %v1517_v22 = vld [vmem:[#allocation11] sm:$0xff] }
 0x6f3   :  { %v1525_v0 = vld [vmem:[#allocation11 + $0x40] sm:$0xff] }
 0x6f4   :  { %3453 = vmatpush1.bf16.msra.mxu1 %v3452_v26  ;;  %v3490_v26 = vpack.c.bf16 %v1343_v23, %v1341_v1  ;;  %v3508_v23 = vpack.c.bf16 %v1525_v0, %v1517_v22  ;;  %v1598_v22 = vld [vmem:[#allocation11 + $0x288] sm:$0xff] }
 0x6f5   :  { %3455 = vmatprep.subr.bf16.mxu1 %v3454_v27  ;;  %v1340_v27 = vld [vmem:[#allocation8 + $0x180] sm:$0xff]  ;;  %v1606_v0 = vld [vmem:[#allocation11 + $0x2c8] sm:$0xff] }
 0x6f6   :  { %v3492_v4 = vpack.c.bf16 %v1342_v14, %v1340_v27  ;;  %v1534_v27 = vld [vmem:[#allocation11 + $0x88] sm:$0xff] }
 0x6f8   :  { %3457 = vmatpush1.bf16.msra.mxu1 %v3456_v29  ;;  %v3494_v29 = vpack.c.bf16 %v1347_v2, %v1345_v28  ;;  %v1542_v28 = vld [vmem:[#allocation11 + $0xc8] sm:$0xff]  ;;  %v1536_v2 = vld [vmem:[#allocation11 + $0x98] sm:$0xff] }
 0x6f9   :  { %3459 = vmatprep.subr.bf16.mxu1 %v3458_v30  ;;  %v1344_v30 = vld [vmem:[#allocation8 + $0x1a0] sm:$0xff] }
 0x6fa   :  { %v3496_v20 = vpack.c.bf16 %v1346_v33, %v1344_v30  ;;  %v1533_v33 = vld [vmem:[#allocation11 + $0x80] sm:$0xff] }
 0x6fc   :  { %3461 = vmatpush1.bf16.msra.mxu1 %v3460_v35  ;;  %v3498_v35 = vpack.c.bf16 %v1351_v24, %v1349_v21  ;;  %v1541_v21 = vld [vmem:[#allocation11 + $0xc0] sm:$0xff]  ;;  %v1535_v24 = vld [vmem:[#allocation11 + $0x90] sm:$0xff] }
 0x6fd   :  { %3463 = vmatprep.subr.bf16.mxu1 %v3462_v36  ;;  %v1348_v36 = vld [vmem:[#allocation8 + $0x1c0] sm:$0xff] }
 0x6fe   :  { %v3500_v41 = vpack.c.bf16 %v1350_v39, %v1348_v36  ;;  %v1550_v36 = vld [vmem:[#allocation11 + $0x108] sm:$0xff] }
 0x6ff   :  { %v1558_v39 = vld [vmem:[#allocation11 + $0x148] sm:$0xff] }
 0x700   :  { %3465 = vmatpush1.bf16.msra.mxu1 %v3464_v42  ;;  %v3502_v42 = vpack.c.bf16 %v1355_v40, %v1353_v25  ;;  %v3514_v40 = vpack.c.bf16 %v1558_v39, %v1550_v36  ;;  %v1613_v39 = vld [vmem:[#allocation11 + $0x300] sm:$0xff] }
 0x701   :  { %3467 = vmatprep.subr.bf16.mxu1 %v3466_v43  ;;  %v1352_v43 = vld [vmem:[#allocation8 + $0x1e0] sm:$0xff] }
 0x702   :  { %v3504_v45 = vpack.c.bf16 %v1354_v44, %v1352_v43  ;;  %v1549_v43 = vld [vmem:[#allocation11 + $0x100] sm:$0xff] }
 0x704   :  { %3469 = vmatpush1.bf16.msra.mxu1 %v3468_v47 }
 0x705   :  { %3471 = vmatprep.subr.bf16.mxu1 %v3470_v48 }
 0x708   :  { %3473 = vmatpush1.bf16.msra.mxu1 %v3472_v53  ;;  %v4141_v53 = vld [vmem:[#allocation3] sm:$0xff] }
 0x709   :  { %3475 = vmatprep.subr.bf16.mxu1 %v3474_v54 }
 0x70c   :  { %3477 = vmatpush1.bf16.msra.mxu1 %v3476_v62 }
 0x70d   :  { %3479 = vmatprep.subr.bf16.mxu1 %v3478_v5  ;;  %v4143_v5 = vld [vmem:[#allocation3 + $0x10] sm:$0xff] }
 0x710   :  { %3481 = vmatpush1.bf16.msra.mxu1 %v3480_v10 }
 0x711   :  { %3483 = vmatprep.subr.bf16.mxu1 %v3482_v11 }
 0x714   :  { %3485 = vmatpush1.bf16.msra.mxu1 %v3484_v18  ;;  %v3506_v18 = vpack.c.bf16 %v1526_v16, %v1518_v13  ;;  %v1581_v13 = vld [vmem:[#allocation11 + $0x200] sm:$0xff] }
 0x715   :  { %3487 = vmatprep.subr.bf16.mxu1 %v3486_v19  ;;  %v1528_v19 = vld [vmem:[#allocation11 + $0x58] sm:$0xff]  ;;  %v1589_v16 = vld [vmem:[#allocation11 + $0x240] sm:$0xff] }
 0x716   :  { %v3570_v1 = vpack.c.bf16 %v1528_v19, %v1520_v17  ;;  %3507 = vmatprep.subr.bf16.mxu0 %v3506_v18  ;;  %v1583_v17 = vld [vmem:[#allocation11 + $0x210] sm:$0xff] }
 0x717   :  { %3509 = vmatpush1.bf16.msra.mxu0 %v3508_v23  ;;  %v1591_v19 = vld [vmem:[#allocation11 + $0x250] sm:$0xff]  ;;  %v1608_v23 = vld [vmem:[#allocation11 + $0x2d8] sm:$0xff] }
 0x718   :  { %3489 = vmatpush1.bf16.msra.mxu1 %v3488_v15  ;;  %v1519_v15 = vld [vmem:[#allocation11 + $0x10] sm:$0xff] }
 0x719   :  { %3491 = vmatprep.subr.bf16.mxu1 %v3490_v26  ;;  %v1527_v26 = vld [vmem:[#allocation11 + $0x50] sm:$0xff] }
 0x71a   :  { %v3572_v14 = vpack.c.bf16 %v1527_v26, %v1519_v15  ;;  %v3524_v15 = vpack.c.bf16 %v1589_v16, %v1581_v13  ;;  %v3588_v26 = vpack.c.bf16 %v1591_v19, %v1583_v17  ;;  %v1662_v13 = vld [vmem:[#allocation11 + $0x488] sm:$0xff]  ;;  %v1664_v17 = vld [vmem:[#allocation11 + $0x498] sm:$0xff] }
 0x71b   :  { %v1670_v16 = vld [vmem:[#allocation11 + $0x4c8] sm:$0xff] }
 0x71c   :  { %3493 = vmatpush1.bf16.msra.mxu1 %v3492_v4  ;;  %v1544_v4 = vld [vmem:[#allocation11 + $0xd8] sm:$0xff] }
 0x71d   :  { %3495 = vmatprep.subr.bf16.mxu1 %v3494_v29  ;;  %v3510_v29 = vpack.c.bf16 %v1542_v28, %v1534_v27  ;;  %v3574_v30 = vpack.c.bf16 %v1544_v4, %v1536_v2  ;;  %v3526_v27 = vpack.c.bf16 %v1606_v0, %v1598_v22  ;;  %v1605_v28 = vld [vmem:[#allocation11 + $0x2c0] sm:$0xff]  ;;  %v1599_v2 = vld [vmem:[#allocation11 + $0x290] sm:$0xff]  ;;  %v3542_v0 = vpack.c.bf16 %v1670_v16, %v1662_v13  ;;  %v1718_v13 = vld [vmem:[#allocation11 + $0x648] sm:$0xff] }
 0x71e   :  { %v1712_v16 = vld [vmem:[#allocation11 + $0x618] sm:$0xff] }
 0x71f   :  { %3511 = vmatprep.subr.bf16.mxu0 %v3510_v29  ;;  %v1607_v29 = vld [vmem:[#allocation11 + $0x2d0] sm:$0xff] }
 0x720   :  { %3497 = vmatpush1.bf16.msra.mxu1 %v3496_v20  ;;  %v3512_v20 = vpack.c.bf16 %v1541_v21, %v1533_v33  ;;  %v1622_v33 = vld [vmem:[#allocation11 + $0x348] sm:$0xff]  ;;  %v1616_v21 = vld [vmem:[#allocation11 + $0x318] sm:$0xff] }
 0x721   :  { %3499 = vmatprep.subr.bf16.mxu1 %v3498_v35  ;;  %v1543_v35 = vld [vmem:[#allocation11 + $0xd0] sm:$0xff] }
 0x722   :  { %v3576_v25 = vpack.c.bf16 %v1543_v35, %v1535_v24  ;;  %3513 = vmatpush1.bf16.msra.mxu0 %v3512_v20  ;;  %v1624_v24 = vld [vmem:[#allocation11 + $0x358] sm:$0xff]  ;;  %v3592_v35 = vpack.c.bf16 %v1607_v29, %v1599_v2 }
 0x723   :  { %3515 = vmatprep.subr.bf16.mxu0 %v3514_v40  ;;  %v1615_v40 = vld [vmem:[#allocation11 + $0x310] sm:$0xff]  ;;  %v1680_v2 = vld [vmem:[#allocation11 + $0x518] sm:$0xff] }
 0x724   :  { %3501 = vmatpush1.bf16.msra.mxu1 %v3500_v41  ;;  %v1552_v41 = vld [vmem:[#allocation11 + $0x118] sm:$0xff] }
 0x725   :  { %3503 = vmatprep.subr.bf16.mxu1 %v3502_v42  ;;  %v1560_v42 = vld [vmem:[#allocation11 + $0x158] sm:$0xff] }
 0x726   :  { %v3578_v44 = vpack.c.bf16 %v1560_v42, %v1552_v41  ;;  %v3594_v41 = vpack.c.bf16 %v1624_v24, %v1616_v21  ;;  %v1623_v42 = vld [vmem:[#allocation11 + $0x350] sm:$0xff]  ;;  %v1677_v21 = vld [vmem:[#allocation11 + $0x500] sm:$0xff] }
 0x727   :  { %v1685_v24 = vld [vmem:[#allocation11 + $0x540] sm:$0xff] }
 0x728   :  { %3505 = vmatpush1.bf16.msra.mxu1 %v3504_v45  ;;  %v1557_v45 = vld [vmem:[#allocation11 + $0x140] sm:$0xff] }
 0x729   :  { %3571 = vmatprep.subr.bf16.mxu1 %v3570_v1  ;;  %v1600_v1 = vld [vmem:[#allocation11 + $0x298] sm:$0xff] }
 0x72a   :  { %v3590_v4 = vpack.c.bf16 %v1608_v23, %v1600_v1  ;;  %v1661_v1 = vld [vmem:[#allocation11 + $0x480] sm:$0xff] }
 0x72b   :  { %v1669_v23 = vld [vmem:[#allocation11 + $0x4c0] sm:$0xff] }
 0x72c   :  { %v3544_v29 = vpack.c.bf16 %v1669_v23, %v1661_v1  ;;  %v1711_v23 = vld [vmem:[#allocation11 + $0x610] sm:$0xff] }
 0x7ba   :  { %v965_v46 = vpop.f32.mrb[6].mxu0 }
 0x7bb   :  { %v3229_v37 = vpop.f32.mrb[7].mxu0  ;;  %1420 = vmatprep.mubr.f32.mxu1 %v965_v46  ;;  %v1551_v46 = vld [vmem:[#allocation11 + $0x110] sm:$0xff] }
 0x7bc   :  { %1421 = vmatmul.mubr.f32.vlgmr.msra.gmra.mrb[20].mxu1 %v4679_v34  ;;  %v1559_v37 = vld [vmem:[#allocation11 + $0x150] sm:$0xff] }
 0x7bd   :  { %3573 = vmatpush1.bf16.msra.mxu1 %v3572_v14  ;;  %v1597_v14 = vld [vmem:[#allocation11 + $0x280] sm:$0xff] }
 0x7be   :  { %v1283_v47 = vpop.f32.mrb[18].mxu1  ;;  %3575 = vmatprep.subr.bf16.mxu1 %v3574_v30  ;;  %v1614_v30 = vld [vmem:[#allocation11 + $0x308] sm:$0xff]  ;;  %v3528_v20 = vpack.c.bf16 %v1605_v28, %v1597_v14 }
 0x7bf   :  { %v3249_v48 = vpop.f32.mrb[19].mxu1  ;;  %1426 = vmatprep.mubr.f32.mxu1 %v1283_v47  ;;  %v3516_v47 = vpack.c.bf16 %v1557_v45, %v1549_v43  ;;  %v3530_v36 = vpack.c.bf16 %v1622_v33, %v1614_v30  ;;  %v1630_v43 = vld [vmem:[#allocation11 + $0x388] sm:$0xff]  ;;  %v1632_v45 = vld [vmem:[#allocation11 + $0x398] sm:$0xff] }
 0x7c0   :  { %1427 = vmatmul.mubr.f32.gmra.mrb[22].mxu1 %v4681_v38  ;;  %v4144_v38 = vld [vmem:[#allocation3 + $0x18] sm:$0xff]  ;;  %v1566_v48 = vld [vmem:[#allocation11 + $0x188] sm:$0xff] }
 0x7c1   :  { %3577 = vmatpush1.bf16.msra.mxu1 %v3576_v25  ;;  %3517 = vmatpush1.bf16.msra.mxu0 %v3516_v47  ;;  %v1621_v25 = vld [vmem:[#allocation11 + $0x340] sm:$0xff]  ;;  %v3596_v47 = vpack.c.bf16 %v1623_v42, %v1615_v40  ;;  %v1678_v14 = vld [vmem:[#allocation11 + $0x508] sm:$0xff] }
 0x7c2   :  { %3579 = vmatprep.subr.bf16.mxu1 %v3578_v44  ;;  %v1638_v44 = vld [vmem:[#allocation11 + $0x3c8] sm:$0xff] }
 0x7c3   :  { %v1686_v28 = vld [vmem:[#allocation11 + $0x548] sm:$0xff] }
 0x7c4   :  { %v3546_v33 = vpack.c.bf16 %v1686_v28, %v1678_v14  ;;  %v1734_v14 = vld [vmem:[#allocation11 + $0x6c8] sm:$0xff]  ;;  %v1728_v28 = vld [vmem:[#allocation11 + $0x698] sm:$0xff] }
 0x88f   :  { %v1422_v51 = vpop.f32.mrb[20].mxu1 }
 0x890   :  { %v1433_v54 = vadd.f32 %v4141_v53, %v1422_v51  ;;  %v1424_v57 = vpop.f32.mrb[21].mxu1  ;;  %v3580_v51 = vpack.c.bf16 %v1559_v37, %v1551_v46  ;;  %v1576_v53 = vld [vmem:[#allocation11 + $0x1d8] sm:$0xff]  ;;  %v3532_v37 = vpack.c.bf16 %v1621_v25, %v1613_v39  ;;  %v3548_v39 = vpack.c.bf16 %v1685_v24, %v1677_v21  ;;  %v1727_v24 = vld [vmem:[#allocation11 + $0x690] sm:$0xff] }
 0x891   :  { %v1434_v59 = vadd.f32 %v4142_v58, %v1424_v57  ;;  %v1573_v57 = vld [vmem:[#allocation11 + $0x1c0] sm:$0xff]  ;;  %v1640_v46 = vld [vmem:[#allocation11 + $0x3d8] sm:$0xff] }
 0x892   :  { %v4693_v60 = vadd.f32 %v1442_v50, %v1433_v54  ;;  %v1565_v54 = vld [vmem:[#allocation11 + $0x180] sm:$0xff]  ;;  %3581 = vmatpush1.bf16.msra.mxu1 %v3580_v51  ;;  %v1631_v51 = vld [vmem:[#allocation11 + $0x390] sm:$0xff] }
 0x893   :  { %v4695_v62 = vadd.f32 %v1446_v52, %v1434_v59  ;;  %v1428_v34 = vpop.f32.mrb[22].mxu1  ;;  %v1567_v59 = vld [vmem:[#allocation11 + $0x190] sm:$0xff] }
 0x894   :  { %v1435_v6 = vadd.f32 %v4143_v5, %v1428_v34  ;;  %v1430_v7 = vpop.f32.mrb[23].mxu1  ;;  %v1575_v34 = vld [vmem:[#allocation11 + $0x1d0] sm:$0xff]  ;;  %v1582_v5 = vld [vmem:[#allocation11 + $0x208] sm:$0xff] }
 0x895   :  { %v1436_v8 = vadd.f32 %v4144_v38, %v1430_v7  ;;  %v1455_v9 = vadd.f32 %v4695_v62, %v4693_v60  ;;  %v1584_v7 = vld [vmem:[#allocation11 + $0x218] sm:$0xff] }
 0x896   :  { %v4699_v10 = vadd.f32 %v1442_v50, %v1435_v6  ;;  %v1568_v50 = vld [vmem:[#allocation11 + $0x198] sm:$0xff]  ;;  %v1590_v6 = vld [vmem:[#allocation11 + $0x248] sm:$0xff] }
 0x897   :  { %v4701_v11 = vadd.f32 %v1446_v52, %v1436_v8  ;;  %1456 = vadd.xlane.f32.xlu0 %v1455_v9  ;;  %v3518_v52 = vpack.c.bf16 %v1574_v49, %v1566_v48  ;;  %v3582_v58 = vpack.c.bf16 %v1576_v53, %v1568_v50  ;;  %v1592_v38 = vld [vmem:[#allocation11 + $0x258] sm:$0xff]  ;;  %v3520_v8 = vpack.c.bf16 %v1573_v57, %v1565_v54  ;;  %v1629_v49 = vld [vmem:[#allocation11 + $0x380] sm:$0xff]  ;;  %v1639_v53 = vld [vmem:[#allocation11 + $0x3d0] sm:$0xff] }
 0x898   :  { %v3584_v9 = vpack.c.bf16 %v1575_v34, %v1567_v59  ;;  %v3586_v18 = vpack.c.bf16 %v1592_v38, %v1584_v7  ;;  %v3534_v48 = vpack.c.bf16 %v1638_v44, %v1630_v43  ;;  %v1637_v50 = vld [vmem:[#allocation11 + $0x3c0] sm:$0xff]  ;;  %v1646_v54 = vld [vmem:[#allocation11 + $0x408] sm:$0xff]  ;;  %v1656_v59 = vld [vmem:[#allocation11 + $0x458] sm:$0xff] }
 0x899   :  { %v1458_v12 = vadd.f32 %v4701_v11, %v4699_v10  ;;  %3519 = vmatprep.subr.bf16.mxu0 %v3518_v52  ;;  %3583 = vmatprep.subr.bf16.mxu1 %v3582_v58  ;;  %v3598_v52 = vpack.c.bf16 %v1640_v46, %v1632_v45  ;;  %v1654_v57 = vld [vmem:[#allocation11 + $0x448] sm:$0xff]  ;;  %v1648_v58 = vld [vmem:[#allocation11 + $0x418] sm:$0xff]  ;;  %v3536_v34 = vpack.c.bf16 %v1637_v50, %v1629_v49  ;;  %v1645_v7 = vld [vmem:[#allocation11 + $0x400] sm:$0xff] }
 0x89a   :  { %3521 = vmatpush1.bf16.msra.mxu0 %v3520_v8  ;;  %3585 = vmatpush1.bf16.msra.mxu1 %v3584_v9  ;;  %v1653_v38 = vld [vmem:[#allocation11 + $0x440] sm:$0xff]  ;;  %v1647_v8 = vld [vmem:[#allocation11 + $0x410] sm:$0xff]  ;;  %v3602_v9 = vpack.c.bf16 %v1656_v59, %v1648_v58  ;;  %v1704_v59 = vld [vmem:[#allocation11 + $0x5d8] sm:$0xff] }
 0x89b   :  { %1459 = vadd.xlane.f32.xlu1 %v1458_v12  ;;  %v3522_v12 = vpack.c.bf16 %v1590_v6, %v1582_v5  ;;  %3587 = vmatprep.subr.bf16.mxu1 %v3586_v18  ;;  %v3600_v5 = vpack.c.bf16 %v1639_v53, %v1631_v51  ;;  %v3538_v6 = vpack.c.bf16 %v1654_v57, %v1646_v54  ;;  %v1672_v18 = vld [vmem:[#allocation11 + $0x4d8] sm:$0xff]  ;;  %v1694_v53 = vld [vmem:[#allocation11 + $0x588] sm:$0xff] }
 0x89c   :  { %v3540_v19 = vpack.c.bf16 %v1653_v38, %v1645_v7  ;;  %v1702_v54 = vld [vmem:[#allocation11 + $0x5c8] sm:$0xff]  ;;  %v1696_v57 = vld [vmem:[#allocation11 + $0x598] sm:$0xff]  ;;  %v1695_v38 = vld [vmem:[#allocation11 + $0x590] sm:$0xff] }
 0x89d   :  { %3523 = vmatprep.subr.bf16.mxu0 %v3522_v12  ;;  %v1655_v12 = vld [vmem:[#allocation11 + $0x450] sm:$0xff]  ;;  %v3550_v58 = vpack.c.bf16 %v1702_v54, %v1694_v53 }
 0x89e   :  { %3525 = vmatpush1.bf16.msra.mxu0 %v3524_v15  ;;  %3589 = vmatpush1.bf16.msra.mxu1 %v3588_v26  ;;  %v3604_v22 = vpack.c.bf16 %v1655_v12, %v1647_v8  ;;  %v1663_v15 = vld [vmem:[#allocation11 + $0x490] sm:$0xff]  ;;  %v3606_v26 = vpack.c.bf16 %v1672_v18, %v1664_v17  ;;  %v1710_v12 = vld [vmem:[#allocation11 + $0x608] sm:$0xff]  ;;  %v1720_v18 = vld [vmem:[#allocation11 + $0x658] sm:$0xff] }
 0x89f   :  { %3527 = vmatprep.subr.bf16.mxu0 %v3526_v27  ;;  %3591 = vmatprep.subr.bf16.mxu1 %v3590_v4  ;;  %v1671_v27 = vld [vmem:[#allocation11 + $0x4d0] sm:$0xff]  ;;  %v1688_v4 = vld [vmem:[#allocation11 + $0x558] sm:$0xff]  ;;  %v3554_v17 = vpack.c.bf16 %v1718_v13, %v1710_v12  ;;  %v1530_v12 = vld [vmem:[#allocation11 + $0x68] sm:$0xff] }
 0x8a0   :  { %v3608_v30 = vpack.c.bf16 %v1671_v27, %v1663_v15  ;;  %v1703_v8 = vld [vmem:[#allocation11 + $0x5d0] sm:$0xff]  ;;  %v1726_v27 = vld [vmem:[#allocation11 + $0x688] sm:$0xff]  ;;  %v1524_v13 = vld [vmem:[#allocation11 + $0x38] sm:$0xff] }
 0x8a1   :  { %v1719_v15 = vld [vmem:[#allocation11 + $0x650] sm:$0xff] }
 0x8a2   :  { %3529 = vmatpush1.bf16.msra.mxu0 %v3528_v20  ;;  %3593 = vmatpush1.bf16.msra.mxu1 %v3592_v35  ;;  %v3610_v20 = vpack.c.bf16 %v1688_v4, %v1680_v2  ;;  %v1679_v35 = vld [vmem:[#allocation11 + $0x510] sm:$0xff]  ;;  %v3558_v2 = vpack.c.bf16 %v1734_v14, %v1726_v27  ;;  %v1736_v4 = vld [vmem:[#allocation11 + $0x6d8] sm:$0xff] }
 0x8a3   :  { %3531 = vmatprep.subr.bf16.mxu0 %v3530_v36  ;;  %3595 = vmatprep.subr.bf16.mxu1 %v3594_v41  ;;  %v1687_v36 = vld [vmem:[#allocation11 + $0x550] sm:$0xff]  ;;  %v1454_v27 = vld [vmem:[%s5161_s8] sm:$0x3] }
 0x8a4   :  { %v3612_v25 = vpack.c.bf16 %v1687_v36, %v1679_v35  ;;  %v1742_v35 = vld [vmem:[#allocation11 + $0x708] sm:$0xff] }
 0x8a6   :  { %3533 = vmatpush1.bf16.msra.mxu0 %v3532_v37  ;;  %3597 = vmatpush1.bf16.msra.mxu1 %v3596_v47 }
 0x8a7   :  { %3535 = vmatprep.subr.bf16.mxu0 %v3534_v48  ;;  %3599 = vmatprep.subr.bf16.mxu1 %v3598_v52 }
 0x8aa   :  { %3537 = vmatpush1.bf16.msra.mxu0 %v3536_v34  ;;  %3601 = vmatpush1.bf16.msra.mxu1 %v3600_v5  ;;  %v1693_v34 = vld [vmem:[#allocation11 + $0x580] sm:$0xff] }
 0x8ab   :  { %3539 = vmatprep.subr.bf16.mxu0 %v3538_v6  ;;  %3603 = vmatprep.subr.bf16.mxu1 %v3602_v9  ;;  %v1701_v5 = vld [vmem:[#allocation11 + $0x5c0] sm:$0xff]  ;;  %v3614_v6 = vpack.c.bf16 %v1704_v59, %v1696_v57  ;;  %v3616_v9 = vpack.c.bf16 %v1703_v8, %v1695_v38  ;;  %v1760_v57 = vld [vmem:[#allocation11 + $0x798] sm:$0xff] }
 0x8ac   :  { %v3552_v7 = vpack.c.bf16 %v1701_v5, %v1693_v34  ;;  %v1757_v59 = vld [vmem:[#allocation11 + $0x780] sm:$0xff] }
 0x8ad   :  { %v1765_v5 = vld [vmem:[#allocation11 + $0x7c0] sm:$0xff] }
 0x8ae   :  { %3541 = vmatpush1.bf16.msra.mxu0 %v3540_v19  ;;  %3605 = vmatpush1.bf16.msra.mxu1 %v3604_v22  ;;  %v1709_v19 = vld [vmem:[#allocation11 + $0x600] sm:$0xff]  ;;  %v3568_v38 = vpack.c.bf16 %v1765_v5, %v1757_v59  ;;  %v1554_v5 = vld [vmem:[#allocation11 + $0x128] sm:$0xff] }
 0x8af   :  { %3543 = vmatprep.subr.bf16.mxu0 %v3542_v0  ;;  %3607 = vmatprep.subr.bf16.mxu1 %v3606_v26  ;;  %v1717_v22 = vld [vmem:[#allocation11 + $0x640] sm:$0xff]  ;;  %v3618_v0 = vpack.c.bf16 %v1720_v18, %v1712_v16  ;;  %v3620_v26 = vpack.c.bf16 %v1719_v15, %v1711_v23 }
 0x8b0   :  { %v3556_v1 = vpack.c.bf16 %v1717_v22, %v1709_v19 }
 0x8b2   :  { %3545 = vmatpush1.bf16.msra.mxu0 %v3544_v29  ;;  %3609 = vmatpush1.bf16.msra.mxu1 %v3608_v30  ;;  %v1725_v29 = vld [vmem:[#allocation11 + $0x680] sm:$0xff] }
 0x8b3   :  { %3547 = vmatprep.subr.bf16.mxu0 %v3546_v33  ;;  %3611 = vmatprep.subr.bf16.mxu1 %v3610_v20  ;;  %v1733_v30 = vld [vmem:[#allocation11 + $0x6c0] sm:$0xff]  ;;  %v3622_v33 = vpack.c.bf16 %v1736_v4, %v1728_v28  ;;  %v1735_v20 = vld [vmem:[#allocation11 + $0x6d0] sm:$0xff] }
 0x8b4   :  { %v3560_v21 = vpack.c.bf16 %v1733_v30, %v1725_v29  ;;  %v3624_v36 = vpack.c.bf16 %v1735_v20, %v1727_v24  ;;  %v1521_v4 = vld [vmem:[#allocation11 + $0x20] sm:$0xff]  ;;  %v1510_v30 = vrot.slane %v1454_v27, %v4571_v63  ;;  %v1523_v20 = vld [vmem:[#allocation11 + $0x30] sm:$0xff] }
 0x8b5   :  { %v1529_v24 = vld [vmem:[#allocation11 + $0x60] sm:$0xff] }
 0x8b6   :  { %3549 = vmatpush1.bf16.msra.mxu0 %v3548_v39  ;;  %3613 = vmatpush1.bf16.msra.mxu1 %v3612_v25  ;;  %v1750_v39 = vld [vmem:[#allocation11 + $0x748] sm:$0xff]  ;;  %v1744_v25 = vld [vmem:[#allocation11 + $0x718] sm:$0xff] }
 0x8b7   :  { %3551 = vmatprep.subr.bf16.mxu0 %v3550_v58  ;;  %3615 = vmatprep.subr.bf16.mxu1 %v3614_v6  ;;  %v1768_v58 = vld [vmem:[#allocation11 + $0x7d8] sm:$0xff]  ;;  %v1759_v6 = vld [vmem:[#allocation11 + $0x790] sm:$0xff] }
 0x8b8   :  { %v3630_v34 = vpack.c.bf16 %v1768_v58, %v1760_v57  ;;  %v1539_v57 = vld [vmem:[#allocation11 + $0xb0] sm:$0xff] }
 0x8b9   :  { %v1547_v58 = vld [vmem:[#allocation11 + $0xf0] sm:$0xff] }
 0x8ba   :  { %3553 = vmatpush1.bf16.msra.mxu0 %v3552_v7  ;;  %3617 = vmatpush1.bf16.msra.mxu1 %v3616_v9  ;;  %v1767_v7 = vld [vmem:[#allocation11 + $0x7d0] sm:$0xff]  ;;  %v1522_v9 = vld [vmem:[#allocation11 + $0x28] sm:$0xff] }
 0x8bb   :  { %3555 = vmatprep.subr.bf16.mxu0 %v3554_v17  ;;  %3619 = vmatprep.subr.bf16.mxu1 %v3618_v0  ;;  %v3632_v8 = vpack.c.bf16 %v1767_v7, %v1759_v6  ;;  %v3634_v16 = vpack.c.bf16 %v1530_v12, %v1522_v9  ;;  %v1532_v17 = vld [vmem:[#allocation11 + $0x78] sm:$0xff]  ;;  %v1562_v7 = vld [vmem:[#allocation11 + $0x168] sm:$0xff]  ;;  %v3704_v9 = vpack.c.bf16 %v1547_v58, %v1539_v57  ;;  %v1553_v12 = vld [vmem:[#allocation11 + $0x120] sm:$0xff] }
 0x8bc   :  { %v3698_v18 = vpack.c.bf16 %v1532_v17, %v1524_v13  ;;  %v1561_v13 = vld [vmem:[#allocation11 + $0x160] sm:$0xff]  ;;  %v1563_v17 = vld [vmem:[#allocation11 + $0x170] sm:$0xff] }
 0x8bd   :  { %v1603_v57 = vld [vmem:[#allocation11 + $0x2b0] sm:$0xff] }
 0x8be   :  { %3557 = vmatpush1.bf16.msra.mxu0 %v3556_v1  ;;  %3621 = vmatpush1.bf16.msra.mxu1 %v3620_v26  ;;  %v1453_v26 = vld [vmem:[%s5160_s7] sm:$0x3]  ;;  %v1611_v58 = vld [vmem:[#allocation11 + $0x2f0] sm:$0xff] }
 0x8bf   :  { %3559 = vmatprep.subr.bf16.mxu0 %v3558_v2  ;;  %3623 = vmatprep.subr.bf16.mxu1 %v3622_v33  ;;  %v1495_v14 = vrot.slane %v1453_v26, %v4571_v63  ;;  %v1491_v28 = vrot.slane %v1453_v26, %v4574_v3 }
 0x8c2   :  { %3561 = vmatpush1.bf16.msra.mxu0 %v3560_v21  ;;  %3625 = vmatpush1.bf16.msra.mxu1 %v3624_v36  ;;  %v1506_v21 = vrot.slane %v1454_v27, %v4574_v3  ;;  %v1538_v36 = vld [vmem:[#allocation11 + $0xa8] sm:$0xff]  ;;  %v1569_v27 = vld [vmem:[#allocation11 + $0x1a0] sm:$0xff] }
 0x924   :  { %v1457_v40 = vpop.xlane.xlu0 %1456 }
 0x925   :  { %v1461_v41 = vmul.f32 0.00390625, %v1457_v40  ;;  %v1752_v40 = vld [vmem:[#allocation11 + $0x758] sm:$0xff] }
 0x927   :  { %v4706_v42 = vsub.f32 %v4693_v60, %v1461_v41  ;;  %v4709_v43 = vsub.f32 %v4695_v62, %v1461_v41  ;;  %v3562_v41 = vpack.c.bf16 %v1750_v39, %v1742_v35  ;;  %v1531_v35 = vld [vmem:[#allocation11 + $0x70] sm:$0xff] }
 0x928   :  { %v1460_v44 = vpop.xlane.xlu1 %1459 }
 0x929   :  { %v1462_v45 = vmul.f32 0.00390625, %v1460_v44  ;;  %v1467_v46 = vmul.f32 %v4706_v42, %v4706_v42  ;;  %v1468_v37 = vmul.f32 %v4709_v43, %v4709_v43  ;;  %v3626_v44 = vpack.c.bf16 %v1752_v40, %v1744_v25  ;;  %3563 = vmatprep.subr.bf16.mxu0 %v3562_v41  ;;  %v1546_v40 = vld [vmem:[#allocation11 + $0xe8] sm:$0xff]  ;;  %v1540_v41 = vld [vmem:[#allocation11 + $0xb8] sm:$0xff] }
 0x92b   :  { %v4716_v47 = vsub.f32 %v4699_v10, %v1462_v45  ;;  %v4719_v48 = vsub.f32 %v4701_v11, %v1462_v45  ;;  %v1471_v49 = vadd.f32 %v1468_v37, %v1467_v46  ;;  %v1741_v45 = vld [vmem:[#allocation11 + $0x700] sm:$0xff]  ;;  %v1743_v37 = vld [vmem:[#allocation11 + $0x710] sm:$0xff]  ;;  %3627 = vmatprep.subr.bf16.mxu1 %v3626_v44  ;;  %v1548_v44 = vld [vmem:[#allocation11 + $0xf8] sm:$0xff] }
 0x92c   :  { %v1749_v46 = vld [vmem:[#allocation11 + $0x740] sm:$0xff] }
 0x92d   :  { %1472 = vadd.xlane.f32.xlu0 %v1471_v49  ;;  %v1469_v50 = vmul.f32 %v4716_v47, %v4716_v47  ;;  %v1470_v51 = vmul.f32 %v4719_v48, %v4719_v48  ;;  %v3564_v49 = vpack.c.bf16 %v1749_v46, %v1741_v45  ;;  %v3636_v46 = vpack.c.bf16 %v1529_v24, %v1521_v4  ;;  %v1571_v4 = vld [vmem:[#allocation11 + $0x1b0] sm:$0xff]  ;;  %v1596_v24 = vld [vmem:[#allocation11 + $0x278] sm:$0xff] }
 0x92f   :  { %v1474_v52 = vadd.f32 %v1470_v51, %v1469_v50  ;;  %v1751_v50 = vld [vmem:[#allocation11 + $0x750] sm:$0xff]  ;;  %v1758_v51 = vld [vmem:[#allocation11 + $0x788] sm:$0xff]  ;;  %3565 = vmatpush1.bf16.msra.mxu0 %v3564_v49 }
 0x930   :  { %v3628_v53 = vpack.c.bf16 %v1751_v50, %v1743_v37  ;;  %v3700_v37 = vpack.c.bf16 %v1531_v35, %v1523_v20 }
 0x931   :  { %1475 = vadd.xlane.f32.xlu1 %v1474_v52  ;;  %v1766_v52 = vld [vmem:[#allocation11 + $0x7c8] sm:$0xff] }
 0x932   :  { %v3566_v54 = vpack.c.bf16 %v1766_v52, %v1758_v51  ;;  %3629 = vmatpush1.bf16.msra.mxu1 %v3628_v53  ;;  %v1537_v51 = vld [vmem:[#allocation11 + $0xa0] sm:$0xff]  ;;  %v3638_v53 = vpack.c.bf16 %v1546_v40, %v1538_v36 }
 0x933   :  { %3631 = vmatprep.subr.bf16.mxu1 %v3630_v34  ;;  %v1545_v52 = vld [vmem:[#allocation11 + $0xe0] sm:$0xff] }
 0x934   :  { %3567 = vmatprep.subr.bf16.mxu0 %v3566_v54  ;;  %v3702_v54 = vpack.c.bf16 %v1548_v44, %v1540_v41  ;;  %v3640_v6 = vpack.c.bf16 %v1545_v52, %v1537_v51  ;;  %v1585_v36 = vld [vmem:[#allocation11 + $0x220] sm:$0xff]  ;;  %v1587_v41 = vld [vmem:[#allocation11 + $0x230] sm:$0xff] }
 0x935   :  { %3569 = vmatpush1.bf16.msra.mxu0 %v3568_v38  ;;  %v1564_v38 = vld [vmem:[#allocation11 + $0x178] sm:$0xff]  ;;  %v1595_v44 = vld [vmem:[#allocation11 + $0x270] sm:$0xff]  ;;  %v1601_v51 = vld [vmem:[#allocation11 + $0x2a0] sm:$0xff] }
 0x936   :  { %3633 = vmatpush1.bf16.msra.mxu1 %v3632_v8  ;;  %3635 = vmatprep.subr.bf16.mxu0 %v3634_v16  ;;  %v1555_v16 = vld [vmem:[#allocation11 + $0x130] sm:$0xff]  ;;  %v1609_v52 = vld [vmem:[#allocation11 + $0x2e0] sm:$0xff] }
 0x937   :  { %3699 = vmatprep.subr.bf16.mxu1 %v3698_v18  ;;  %v1570_v18 = vld [vmem:[#allocation11 + $0x1a8] sm:$0xff]  ;;  %v3708_v26 = vpack.c.bf16 %v1563_v17, %v1555_v16  ;;  %v1619_v16 = vld [vmem:[#allocation11 + $0x330] sm:$0xff] }
 0x938   :  { %v1627_v17 = vld [vmem:[#allocation11 + $0x370] sm:$0xff] }
 0x9ba   :  { %v1473_v19 = vpop.xlane.xlu0 %1472 }
 0x9bb   :  { %v1477_v22 = vmul.f32 0.00390625, %v1473_v19  ;;  %v3642_v19 = vpack.c.bf16 %v1562_v7, %v1554_v5  ;;  %v1620_v5 = vld [vmem:[#allocation11 + $0x338] sm:$0xff]  ;;  %v3656_v7 = vpack.c.bf16 %v1609_v52, %v1601_v51 }
 0x9bd   :  { %v1479_v0 = vadd.f32 1e-06, %v1477_v22 }
 0x9be   :  { %v1476_v1 = vpop.xlane.xlu1 %1475 }
 0x9bf   :  { %4073 = vrsqrt.f32 %v1479_v0  ;;  %v1478_v23 = vmul.f32 0.00390625, %v1476_v1  ;;  %v1578_v0 = vld [vmem:[#allocation11 + $0x1e8] sm:$0xff]  ;;  %v1572_v1 = vld [vmem:[#allocation11 + $0x1b8] sm:$0xff] }
 0x9c1   :  { %v1480_v15 = vadd.f32 1e-06, %v1478_v23  ;;  %v1580_v23 = vld [vmem:[#allocation11 + $0x1f8] sm:$0xff] }
 0x9c3   :  { %4075 = vrsqrt.f32 %v1480_v15  ;;  %v3644_v15 = vpack.c.bf16 %v1561_v13, %v1553_v12 }
 0x9c9   :  { %v4074_v2 = vpop.eup %4073 }
 0x9ca   :  { %v1484_v29 = vmul.f32 %v4074_v2, %v4709_v43  ;;  %v1483_v33 = vmul.f32 %v4074_v2, %v4706_v42  ;;  %v3710_v2 = vpack.c.bf16 %v1580_v23, %v1572_v1  ;;  %v3724_v23 = vpack.c.bf16 %v1627_v17, %v1619_v16  ;;  %v1698_v16 = vld [vmem:[#allocation11 + $0x5a8] sm:$0xff] }
 0x9cb   :  { %v1706_v17 = vld [vmem:[#allocation11 + $0x5e8] sm:$0xff] }
 0x9cc   :  { %v1499_v39 = vmul.f32 %v1495_v14, %v1484_v29  ;;  %v1498_v25 = vmul.f32 %v1491_v28, %v1483_v33  ;;  %v1579_v29 = vld [vmem:[#allocation11 + $0x1f0] sm:$0xff]  ;;  %v1594_v33 = vld [vmem:[#allocation11 + $0x268] sm:$0xff] }
 0x9cd   :  { %v4076_v45 = vpop.eup %4075  ;;  %v3712_v35 = vpack.c.bf16 %v1579_v29, %v1571_v4  ;;  %v1650_v4 = vld [vmem:[#allocation11 + $0x428] sm:$0xff] }
 0x9ce   :  { %v1514_v49 = vadd.f32 %v1510_v30, %v1499_v39  ;;  %v4737_v43 = vadd.f32 %v1506_v21, %v1498_v25  ;;  %v1486_v50 = vmul.f32 %v4076_v45, %v4719_v48  ;;  %v1485_v42 = vmul.f32 %v4076_v45, %v4716_v47  ;;  %v1556_v48 = vld [vmem:[#allocation11 + $0x138] sm:$0xff]  ;;  %v1593_v39 = vld [vmem:[#allocation11 + $0x260] sm:$0xff]  ;;  %v1602_v45 = vld [vmem:[#allocation11 + $0x2a8] sm:$0xff] }
 0x9cf   :  { %v3706_v22 = vpack.c.bf16 %v1564_v38, %v1556_v48  ;;  %v3720_v48 = vpack.c.bf16 %v1611_v58, %v1603_v57  ;;  %v1617_v38 = vld [vmem:[#allocation11 + $0x320] sm:$0xff]  ;;  %v1658_v29 = vld [vmem:[#allocation11 + $0x468] sm:$0xff] }
 0x9d0   :  { %1879 = vmatprep.mubr.f32.mxu0 %v1514_v49  ;;  %1956 = vmatprep.mubr.f32.mxu1 %v1514_v49  ;;  %v1501_v59 = vmul.f32 %v1495_v14, %v1486_v50  ;;  %v1500_v34 = vmul.f32 %v1491_v28, %v1485_v42  ;;  %v1577_v14 = vld [vmem:[#allocation11 + $0x1e0] sm:$0xff]  ;;  %v3646_v28 = vpack.c.bf16 %v1578_v0, %v1570_v18  ;;  %v1634_v18 = vld [vmem:[#allocation11 + $0x3a8] sm:$0xff]  ;;  %v1644_v0 = vld [vmem:[#allocation11 + $0x3f8] sm:$0xff] }
 0x9d1   :  { %1880 = vmatmul.mubr.f32.vlgmr.msra.gmra.mrb[8].mxu0 %v4737_v43  ;;  %1957 = vmatmul.mubr.f32.vlgmr.msra.gmra.mrb[24].mxu1 %v4737_v43  ;;  %v3648_v20 = vpack.c.bf16 %v1577_v14, %v1569_v27  ;;  %v3652_v50 = vpack.c.bf16 %v1593_v39, %v1585_v36  ;;  %v3716_v42 = vpack.c.bf16 %v1595_v44, %v1587_v41  ;;  %v1666_v41 = vld [vmem:[#allocation11 + $0x4a8] sm:$0xff] }
 0x9d2   :  { %3637 = vmatpush1.bf16.msra.mxu0 %v3636_v46  ;;  %3701 = vmatpush1.bf16.msra.mxu1 %v3700_v37  ;;  %v4743_v47 = vadd.f32 %v1510_v30, %v1501_v59  ;;  %v4745_v8 = vadd.f32 %v1506_v21, %v1500_v34  ;;  %v1586_v30 = vld [vmem:[#allocation11 + $0x228] sm:$0xff]  ;;  %v1588_v21 = vld [vmem:[#allocation11 + $0x238] sm:$0xff]  ;;  %v3666_v36 = vpack.c.bf16 %v1658_v29, %v1650_v4 }
 0x9d3   :  { %3639 = vmatprep.subr.bf16.mxu0 %v3638_v53  ;;  %3703 = vmatprep.subr.bf16.mxu1 %v3702_v54  ;;  %v3650_v25 = vpack.c.bf16 %v1594_v33, %v1586_v30  ;;  %v3714_v40 = vpack.c.bf16 %v1596_v24, %v1588_v21  ;;  %v1610_v46 = vld [vmem:[#allocation11 + $0x2e8] sm:$0xff]  ;;  %v1604_v37 = vld [vmem:[#allocation11 + $0x2b8] sm:$0xff] }
 0x9d4   :  { %1885 = vmatprep.mubr.f32.mxu0 %v4743_v47  ;;  %1962 = vmatprep.mubr.f32.mxu1 %v4743_v47  ;;  %v3654_v53 = vpack.c.bf16 %v1610_v46, %v1602_v45  ;;  %v1618_v59 = vld [vmem:[#allocation11 + $0x328] sm:$0xff]  ;;  %v1652_v30 = vld [vmem:[#allocation11 + $0x438] sm:$0xff] }
 0x9d5   :  { %1886 = vmatmul.mubr.f32.gmra.mrb[10].mxu0 %v4745_v8  ;;  %1963 = vmatmul.mubr.f32.gmra.mrb[26].mxu1 %v4745_v8  ;;  %v1626_v34 = vld [vmem:[#allocation11 + $0x368] sm:$0xff]  ;;  %v1660_v33 = vld [vmem:[#allocation11 + $0x478] sm:$0xff] }
 0x9d6   :  { %3641 = vmatpush1.bf16.msra.mxu0 %v3640_v6  ;;  %3705 = vmatpush1.bf16.msra.mxu1 %v3704_v9  ;;  %v1628_v6 = vld [vmem:[#allocation11 + $0x378] sm:$0xff]  ;;  %v1625_v9 = vld [vmem:[#allocation11 + $0x360] sm:$0xff]  ;;  %v3658_v12 = vpack.c.bf16 %v1626_v34, %v1618_v59  ;;  %v3730_v39 = vpack.c.bf16 %v1660_v33, %v1652_v30  ;;  %v1674_v44 = vld [vmem:[#allocation11 + $0x4e8] sm:$0xff] }
 0x9d7   :  { %2033 = vmatprep.mubr.f32.mxu0 %v1514_v49  ;;  %2110 = vmatprep.mubr.f32.mxu1 %v1514_v49  ;;  %v1612_v49 = vld [vmem:[#allocation11 + $0x2f8] sm:$0xff]  ;;  %v3722_v13 = vpack.c.bf16 %v1628_v6, %v1620_v5  ;;  %v3660_v1 = vpack.c.bf16 %v1625_v9, %v1617_v38  ;;  %v3670_v51 = vpack.c.bf16 %v1674_v44, %v1666_v41  ;;  %v1682_v57 = vld [vmem:[#allocation11 + $0x528] sm:$0xff] }
 0x9d8   :  { %3643 = vmatprep.subr.bf16.mxu0 %v3642_v19  ;;  %3707 = vmatprep.subr.bf16.mxu1 %v3706_v22  ;;  %v3718_v54 = vpack.c.bf16 %v1612_v49, %v1604_v37  ;;  %v1642_v19 = vld [vmem:[#allocation11 + $0x3e8] sm:$0xff]  ;;  %v1636_v22 = vld [vmem:[#allocation11 + $0x3b8] sm:$0xff] }
 0x9d9   :  { %v3662_v27 = vpack.c.bf16 %v1642_v19, %v1634_v18  ;;  %v3726_v14 = vpack.c.bf16 %v1644_v0, %v1636_v22  ;;  %v1668_v45 = vld [vmem:[#allocation11 + $0x4b8] sm:$0xff]  ;;  %v1690_v58 = vld [vmem:[#allocation11 + $0x568] sm:$0xff] }
 0x9da   :  { %3645 = vmatpush1.bf16.msra.mxu0 %v3644_v15  ;;  %3709 = vmatpush1.bf16.msra.mxu1 %v3708_v26  ;;  %v1633_v15 = vld [vmem:[#allocation11 + $0x3a0] sm:$0xff]  ;;  %v1676_v46 = vld [vmem:[#allocation11 + $0x4f8] sm:$0xff]  ;;  %v3674_v38 = vpack.c.bf16 %v1690_v58, %v1682_v57 }
 0x9db   :  { %3647 = vmatprep.subr.bf16.mxu0 %v3646_v28  ;;  %3711 = vmatprep.subr.bf16.mxu1 %v3710_v2  ;;  %v1641_v26 = vld [vmem:[#allocation11 + $0x3e0] sm:$0xff]  ;;  %v1635_v28 = vld [vmem:[#allocation11 + $0x3b0] sm:$0xff]  ;;  %v3734_v52 = vpack.c.bf16 %v1676_v46, %v1668_v45  ;;  %v1684_v59 = vld [vmem:[#allocation11 + $0x538] sm:$0xff] }
 0x9dc   :  { %v1643_v2 = vld [vmem:[#allocation11 + $0x3f0] sm:$0xff]  ;;  %v3664_v21 = vpack.c.bf16 %v1641_v26, %v1633_v15  ;;  %v1692_v34 = vld [vmem:[#allocation11 + $0x578] sm:$0xff]  ;;  %v3678_v15 = vpack.c.bf16 %v1706_v17, %v1698_v16 }
 0x9dd   :  { %v3728_v24 = vpack.c.bf16 %v1643_v2, %v1635_v28  ;;  %v3738_v9 = vpack.c.bf16 %v1692_v34, %v1684_v59  ;;  %v1700_v18 = vld [vmem:[#allocation11 + $0x5b8] sm:$0xff]  ;;  %v1714_v28 = vld [vmem:[#allocation11 + $0x628] sm:$0xff] }
 0x9de   :  { %3649 = vmatpush1.bf16.msra.mxu0 %v3648_v20  ;;  %3713 = vmatpush1.bf16.msra.mxu1 %v3712_v35  ;;  %v1649_v20 = vld [vmem:[#allocation11 + $0x420] sm:$0xff]  ;;  %v1708_v19 = vld [vmem:[#allocation11 + $0x5f8] sm:$0xff]  ;;  %v1722_v2 = vld [vmem:[#allocation11 + $0x668] sm:$0xff] }
 0x9df   :  { %3651 = vmatprep.subr.bf16.mxu0 %v3650_v25  ;;  %3715 = vmatprep.subr.bf16.mxu1 %v3714_v40  ;;  %v1657_v35 = vld [vmem:[#allocation11 + $0x460] sm:$0xff]  ;;  %v1651_v25 = vld [vmem:[#allocation11 + $0x430] sm:$0xff]  ;;  %v3742_v26 = vpack.c.bf16 %v1708_v19, %v1700_v18  ;;  %v1716_v4 = vld [vmem:[#allocation11 + $0x638] sm:$0xff] }
 0x9e0   :  { %v1659_v40 = vld [vmem:[#allocation11 + $0x470] sm:$0xff]  ;;  %v3668_v37 = vpack.c.bf16 %v1657_v35, %v1649_v20  ;;  %v1724_v29 = vld [vmem:[#allocation11 + $0x678] sm:$0xff]  ;;  %v3682_v20 = vpack.c.bf16 %v1722_v2, %v1714_v28 }
 0x9e1   :  { %v3732_v49 = vpack.c.bf16 %v1659_v40, %v1651_v25  ;;  %v3746_v35 = vpack.c.bf16 %v1724_v29, %v1716_v4  ;;  %v1730_v25 = vld [vmem:[#allocation11 + $0x6a8] sm:$0xff]  ;;  %v1732_v41 = vld [vmem:[#allocation11 + $0x6b8] sm:$0xff]  ;;  %v2555_v29 = vld [vmem:[#allocation12] sm:$0xff] }
 0x9e2   :  { %3653 = vmatpush1.bf16.msra.mxu0 %v3652_v50  ;;  %3717 = vmatpush1.bf16.msra.mxu1 %v3716_v42  ;;  %v1665_v50 = vld [vmem:[#allocation11 + $0x4a0] sm:$0xff]  ;;  %v1738_v40 = vld [vmem:[#allocation11 + $0x6e8] sm:$0xff]  ;;  %v1740_v44 = vld [vmem:[#allocation11 + $0x6f8] sm:$0xff] }
 0x9e3   :  { %3655 = vmatprep.subr.bf16.mxu0 %v3654_v53  ;;  %3719 = vmatprep.subr.bf16.mxu1 %v3718_v54  ;;  %v1673_v42 = vld [vmem:[#allocation11 + $0x4e0] sm:$0xff]  ;;  %v1667_v53 = vld [vmem:[#allocation11 + $0x4b0] sm:$0xff]  ;;  %v1748_v57 = vld [vmem:[#allocation11 + $0x738] sm:$0xff] }
 0x9e4   :  { %v1675_v54 = vld [vmem:[#allocation11 + $0x4f0] sm:$0xff]  ;;  %v3672_v5 = vpack.c.bf16 %v1673_v42, %v1665_v50  ;;  %v3686_v50 = vpack.c.bf16 %v1738_v40, %v1730_v25  ;;  %v3750_v42 = vpack.c.bf16 %v1740_v44, %v1732_v41  ;;  %v1756_v58 = vld [vmem:[#allocation11 + $0x778] sm:$0xff]  ;;  %v2563_v44 = vld [vmem:[#allocation12 + $0x40] sm:$0xff] }
 0x9e5   :  { %v3736_v6 = vpack.c.bf16 %v1675_v54, %v1667_v53  ;;  %v1746_v53 = vld [vmem:[#allocation11 + $0x728] sm:$0xff]  ;;  %v1764_v16 = vld [vmem:[#allocation11 + $0x7b8] sm:$0xff] }
 0x9e6   :  { %3657 = vmatpush1.bf16.msra.mxu0 %v3656_v7  ;;  %3721 = vmatpush1.bf16.msra.mxu1 %v3720_v48  ;;  %v1681_v7 = vld [vmem:[#allocation11 + $0x520] sm:$0xff]  ;;  %v1754_v54 = vld [vmem:[#allocation11 + $0x768] sm:$0xff]  ;;  %v1772_v17 = vld [vmem:[#allocation11 + $0x7f8] sm:$0xff] }
 0x9e7   :  { %3659 = vmatprep.subr.bf16.mxu0 %v3658_v12  ;;  %3723 = vmatprep.subr.bf16.mxu1 %v3722_v13  ;;  %v1689_v48 = vld [vmem:[#allocation11 + $0x560] sm:$0xff]  ;;  %v1683_v12 = vld [vmem:[#allocation11 + $0x530] sm:$0xff]  ;;  %v2566_v25 = vld [vmem:[#allocation12 + $0x58] sm:$0xff] }
 0x9e8   :  { %v1691_v13 = vld [vmem:[#allocation11 + $0x570] sm:$0xff]  ;;  %v3676_v22 = vpack.c.bf16 %v1689_v48, %v1681_v7  ;;  %v3690_v7 = vpack.c.bf16 %v1754_v54, %v1746_v53  ;;  %v3754_v48 = vpack.c.bf16 %v1756_v58, %v1748_v57  ;;  %v2571_v54 = vld [vmem:[#allocation12 + $0x80] sm:$0xff] }
 0x9e9   :  { %v3740_v0 = vpack.c.bf16 %v1691_v13, %v1683_v12  ;;  %v1762_v12 = vld [vmem:[#allocation11 + $0x7a8] sm:$0xff]  ;;  %v2573_v57 = vld [vmem:[#allocation12 + $0x90] sm:$0xff] }
 0x9ea   :  { %3661 = vmatpush1.bf16.msra.mxu0 %v3660_v1  ;;  %3725 = vmatpush1.bf16.msra.mxu1 %v3724_v23  ;;  %v1697_v1 = vld [vmem:[#allocation11 + $0x5a0] sm:$0xff]  ;;  %v1770_v13 = vld [vmem:[#allocation11 + $0x7e8] sm:$0xff]  ;;  %v3780_v58 = vpack.c.bf16 %v2573_v57, %v2571_v54 }
 0x9eb   :  { %3663 = vmatprep.subr.bf16.mxu0 %v3662_v27  ;;  %3727 = vmatprep.subr.bf16.mxu1 %v3726_v14  ;;  %v1705_v23 = vld [vmem:[#allocation11 + $0x5e0] sm:$0xff]  ;;  %v1699_v27 = vld [vmem:[#allocation11 + $0x5b0] sm:$0xff] }
 0x9ec   :  { %v1707_v14 = vld [vmem:[#allocation11 + $0x5f0] sm:$0xff]  ;;  %v3680_v30 = vpack.c.bf16 %v1705_v23, %v1697_v1  ;;  %v3758_v1 = vpack.c.bf16 %v1772_v17, %v1764_v16  ;;  %v1769_v23 = vld [vmem:[#allocation11 + $0x7e0] sm:$0xff]  ;;  %v2584_v17 = vld [vmem:[#allocation12 + $0xe8] sm:$0xff] }
 0x9ed   :  { %v3744_v33 = vpack.c.bf16 %v1707_v14, %v1699_v27  ;;  %v2556_v27 = vld [vmem:[#allocation12 + $0x8] sm:$0xff]  ;;  %v2558_v14 = vld [vmem:[#allocation12 + $0x18] sm:$0xff]  ;;  %v2607_v57 = vld [vmem:[#allocation12 + $0x1a0] sm:$0xff] }
 0x9ee   :  { %3665 = vmatpush1.bf16.msra.mxu0 %v3664_v21  ;;  %3729 = vmatpush1.bf16.msra.mxu1 %v3728_v24  ;;  %v1713_v21 = vld [vmem:[#allocation11 + $0x620] sm:$0xff]  ;;  %v3762_v4 = vpack.c.bf16 %v2558_v14, %v2556_v27  ;;  %v2589_v14 = vld [vmem:[#allocation12 + $0x110] sm:$0xff] }
 0x9ef   :  { %3667 = vmatprep.subr.bf16.mxu0 %v3666_v36  ;;  %3731 = vmatprep.subr.bf16.mxu1 %v3730_v39  ;;  %v1721_v24 = vld [vmem:[#allocation11 + $0x660] sm:$0xff]  ;;  %v1715_v36 = vld [vmem:[#allocation11 + $0x630] sm:$0xff] }
 0x9f0   :  { %v1723_v39 = vld [vmem:[#allocation11 + $0x670] sm:$0xff]  ;;  %v3684_v45 = vpack.c.bf16 %v1721_v24, %v1713_v21  ;;  %v2562_v21 = vld [vmem:[#allocation12 + $0x38] sm:$0xff]  ;;  %v2587_v27 = vld [vmem:[#allocation12 + $0x100] sm:$0xff] }
 0x9f1   :  { %v3748_v46 = vpack.c.bf16 %v1723_v39, %v1715_v36  ;;  %v2561_v36 = vld [vmem:[#allocation12 + $0x30] sm:$0xff]  ;;  %v2564_v39 = vld [vmem:[#allocation12 + $0x48] sm:$0xff] }
 0x9f2   :  { %3669 = vmatpush1.bf16.msra.mxu0 %v3668_v37  ;;  %3733 = vmatpush1.bf16.msra.mxu1 %v3732_v49  ;;  %v1729_v37 = vld [vmem:[#allocation11 + $0x6a0] sm:$0xff]  ;;  %v3770_v41 = vpack.c.bf16 %v2566_v25, %v2564_v39  ;;  %v2597_v39 = vld [vmem:[#allocation12 + $0x150] sm:$0xff] }
 0x9f3   :  { %3671 = vmatprep.subr.bf16.mxu0 %v3670_v51  ;;  %3735 = vmatprep.subr.bf16.mxu1 %v3734_v52  ;;  %v1737_v49 = vld [vmem:[#allocation11 + $0x6e0] sm:$0xff]  ;;  %v1731_v51 = vld [vmem:[#allocation11 + $0x6b0] sm:$0xff] }
 0x9f4   :  { %v1739_v52 = vld [vmem:[#allocation11 + $0x6f0] sm:$0xff]  ;;  %v3688_v59 = vpack.c.bf16 %v1737_v49, %v1729_v37  ;;  %v2570_v37 = vld [vmem:[#allocation12 + $0x78] sm:$0xff] }
 0x9f5   :  { %v3752_v34 = vpack.c.bf16 %v1739_v52, %v1731_v51  ;;  %v2572_v51 = vld [vmem:[#allocation12 + $0x88] sm:$0xff]  ;;  %v2574_v52 = vld [vmem:[#allocation12 + $0x98] sm:$0xff] }
 0x9f6   :  { %3673 = vmatpush1.bf16.msra.mxu0 %v3672_v5  ;;  %3737 = vmatpush1.bf16.msra.mxu1 %v3736_v6  ;;  %v1745_v5 = vld [vmem:[#allocation11 + $0x720] sm:$0xff]  ;;  %v3778_v53 = vpack.c.bf16 %v2574_v52, %v2572_v51  ;;  %v2608_v52 = vld [vmem:[#allocation12 + $0x1a8] sm:$0xff] }
 0x9f7   :  { %3675 = vmatprep.subr.bf16.mxu0 %v3674_v38  ;;  %3739 = vmatprep.subr.bf16.mxu1 %v3738_v9  ;;  %v1753_v6 = vld [vmem:[#allocation11 + $0x760] sm:$0xff]  ;;  %v1747_v38 = vld [vmem:[#allocation11 + $0x730] sm:$0xff] }
 0x9f8   :  { %v1755_v9 = vld [vmem:[#allocation11 + $0x770] sm:$0xff]  ;;  %v3692_v18 = vpack.c.bf16 %v1753_v6, %v1745_v5  ;;  %v2575_v5 = vld [vmem:[#allocation12 + $0xa0] sm:$0xff] }
 0x9f9   :  { %v3756_v19 = vpack.c.bf16 %v1755_v9, %v1747_v38  ;;  %v2577_v6 = vld [vmem:[#allocation12 + $0xb0] sm:$0xff]  ;;  %v2582_v38 = vld [vmem:[#allocation12 + $0xd8] sm:$0xff] }
 0x9fa   :  { %3677 = vmatpush1.bf16.msra.mxu0 %v3676_v22  ;;  %3741 = vmatpush1.bf16.msra.mxu1 %v3740_v0  ;;  %v1761_v22 = vld [vmem:[#allocation11 + $0x7a0] sm:$0xff]  ;;  %v3694_v0 = vpack.c.bf16 %v1770_v13, %v1762_v12  ;;  %v2581_v13 = vld [vmem:[#allocation12 + $0xd0] sm:$0xff] }
 0x9fb   :  { %3679 = vmatprep.subr.bf16.mxu0 %v3678_v15  ;;  %3743 = vmatprep.subr.bf16.mxu1 %v3742_v26  ;;  %v1763_v15 = vld [vmem:[#allocation11 + $0x7b0] sm:$0xff]  ;;  %v3696_v28 = vpack.c.bf16 %v1769_v23, %v1761_v22  ;;  %v2579_v12 = vld [vmem:[#allocation12 + $0xc0] sm:$0xff]  ;;  %v2588_v23 = vld [vmem:[#allocation12 + $0x108] sm:$0xff] }
 0x9fc   :  { %v1771_v26 = vld [vmem:[#allocation11 + $0x7f0] sm:$0xff]  ;;  %v3788_v16 = vpack.c.bf16 %v2581_v13, %v2579_v12  ;;  %v2583_v22 = vld [vmem:[#allocation12 + $0xe0] sm:$0xff] }
 0x9fd   :  { %v3760_v2 = vpack.c.bf16 %v1771_v26, %v1763_v15  ;;  %v2590_v15 = vld [vmem:[#allocation12 + $0x118] sm:$0xff]  ;;  %v2615_v13 = vld [vmem:[#allocation12 + $0x1e0] sm:$0xff] }
 0x9fe   :  { %3681 = vmatpush1.bf16.msra.mxu0 %v3680_v30  ;;  %3745 = vmatpush1.bf16.msra.mxu1 %v3744_v33  ;;  %v2557_v30 = vld [vmem:[#allocation12 + $0x10] sm:$0xff]  ;;  %v2560_v33 = vld [vmem:[#allocation12 + $0x28] sm:$0xff]  ;;  %v3794_v26 = vpack.c.bf16 %v2590_v15, %v2588_v23 }
 0x9ff   :  { %3683 = vmatprep.subr.bf16.mxu0 %v3682_v20  ;;  %3747 = vmatprep.subr.bf16.mxu1 %v3746_v35  ;;  %v3764_v24 = vpack.c.bf16 %v2557_v30, %v2555_v29  ;;  %v3766_v20 = vpack.c.bf16 %v2562_v21, %v2560_v33  ;;  %v2559_v35 = vld [vmem:[#allocation12 + $0x20] sm:$0xff]  ;;  %v2593_v33 = vld [vmem:[#allocation12 + $0x130] sm:$0xff] }
 0xa00   :  { %v3768_v40 = vpack.c.bf16 %v2561_v36, %v2559_v35  ;;  %v2591_v30 = vld [vmem:[#allocation12 + $0x120] sm:$0xff] }
 0xa01   :  { %v3800_v21 = vpack.c.bf16 %v2593_v33, %v2591_v30  ;;  %v2595_v36 = vld [vmem:[#allocation12 + $0x140] sm:$0xff] }
 0xa02   :  { %3685 = vmatpush1.bf16.msra.mxu0 %v3684_v45  ;;  %3749 = vmatpush1.bf16.msra.mxu1 %v3748_v46  ;;  %v2565_v45 = vld [vmem:[#allocation12 + $0x50] sm:$0xff]  ;;  %v3804_v25 = vpack.c.bf16 %v2597_v39, %v2595_v36 }
 0xa03   :  { %3687 = vmatprep.subr.bf16.mxu0 %v3686_v50  ;;  %3751 = vmatprep.subr.bf16.mxu1 %v3750_v42  ;;  %v3772_v46 = vpack.c.bf16 %v2565_v45, %v2563_v44  ;;  %v2567_v50 = vld [vmem:[#allocation12 + $0x60] sm:$0xff] }
 0xa04   :  { %v2599_v45 = vld [vmem:[#allocation12 + $0x160] sm:$0xff] }
 0xa06   :  { %3689 = vmatpush1.bf16.msra.mxu0 %v3688_v59  ;;  %3753 = vmatpush1.bf16.msra.mxu1 %v3752_v34  ;;  %v2578_v59 = vld [vmem:[#allocation12 + $0xb8] sm:$0xff] }
 0xa07   :  { %3691 = vmatprep.subr.bf16.mxu0 %v3690_v7  ;;  %3755 = vmatprep.subr.bf16.mxu1 %v3754_v48  ;;  %v3784_v7 = vpack.c.bf16 %v2577_v6, %v2575_v5  ;;  %v2580_v48 = vld [vmem:[#allocation12 + $0xc8] sm:$0xff]  ;;  %v2611_v5 = vld [vmem:[#allocation12 + $0x1c0] sm:$0xff]  ;;  %v2613_v6 = vld [vmem:[#allocation12 + $0x1d0] sm:$0xff] }
 0xa08   :  { %v3786_v9 = vpack.c.bf16 %v2582_v38, %v2580_v48  ;;  %v2616_v48 = vld [vmem:[#allocation12 + $0x1e8] sm:$0xff]  ;;  %v2618_v38 = vld [vmem:[#allocation12 + $0x1f8] sm:$0xff] }
 0xa09   :  { %v3822_v12 = vpack.c.bf16 %v2618_v38, %v2616_v48 }
 0xa0a   :  { %3693 = vmatpush1.bf16.msra.mxu0 %v3692_v18  ;;  %3757 = vmatpush1.bf16.msra.mxu1 %v3756_v19  ;;  %v2586_v18 = vld [vmem:[#allocation12 + $0xf8] sm:$0xff] }
 0xa0b   :  { %3695 = vmatprep.subr.bf16.mxu0 %v3694_v0  ;;  %3759 = vmatprep.subr.bf16.mxu1 %v3758_v1  ;;  %v3790_v19 = vpack.c.bf16 %v2586_v18, %v2584_v17  ;;  %v2585_v0 = vld [vmem:[#allocation12 + $0xf0] sm:$0xff]  ;;  %v2620_v17 = vld [vmem:[#allocation12 + $0x208] sm:$0xff]  ;;  %v2622_v18 = vld [vmem:[#allocation12 + $0x218] sm:$0xff] }
 0xa0c   :  { %v3792_v1 = vpack.c.bf16 %v2585_v0, %v2583_v22  ;;  %v3826_v22 = vpack.c.bf16 %v2622_v18, %v2620_v17  ;;  %v4760_v0 = vld [vmem:[%s5163_s10] sm:$0xff] }
 0xa0d   :  { %v1782_v23 = vrot.slane %v4760_v0, %v4571_v63  ;;  %v4769_v15 = vrot.slane %v4760_v0, %v406_v32 }
 0xa0e   :  { %3697 = vmatpush1.bf16.msra.mxu0 %v3696_v28  ;;  %3761 = vmatpush1.bf16.msra.mxu1 %v3760_v2  ;;  %v3796_v28 = vpack.c.bf16 %v2589_v14, %v2587_v27  ;;  %v2592_v2 = vld [vmem:[#allocation12 + $0x128] sm:$0xff] }
 0xa0f   :  { %3763 = vmatprep.subr.bf16.mxu0 %v3762_v4  ;;  %v2594_v4 = vld [vmem:[#allocation12 + $0x138] sm:$0xff] }
 0xa10   :  { %v3798_v29 = vpack.c.bf16 %v2594_v4, %v2592_v2 }
 0xa11   :  { %2034 = vmatmul.mubr.f32.vlgmr.msra.gmra.mrb[12].mxu0 %v4737_v43  ;;  %2111 = vmatmul.mubr.f32.vlgmr.msra.gmra.mrb[28].mxu1 %v4737_v43  ;;  %v2568_v43 = vld [vmem:[#allocation12 + $0x68] sm:$0xff] }
 0xa12   :  { %2039 = vmatprep.mubr.f32.mxu0 %v4743_v47  ;;  %2116 = vmatprep.mubr.f32.mxu1 %v4743_v47  ;;  %v3774_v49 = vpack.c.bf16 %v2570_v37, %v2568_v43  ;;  %v2569_v47 = vld [vmem:[#allocation12 + $0x70] sm:$0xff]  ;;  %v2604_v37 = vld [vmem:[#allocation12 + $0x188] sm:$0xff] }
 0xa13   :  { %3765 = vmatpush1.bf16.msra.mxu0 %v3764_v24  ;;  %v3776_v42 = vpack.c.bf16 %v2569_v47, %v2567_v50  ;;  %v2596_v24 = vld [vmem:[#allocation12 + $0x148] sm:$0xff]  ;;  %v2603_v47 = vld [vmem:[#allocation12 + $0x180] sm:$0xff] }
 0xa14   :  { %3767 = vmatprep.subr.bf16.mxu0 %v3766_v20  ;;  %v2598_v20 = vld [vmem:[#allocation12 + $0x158] sm:$0xff] }
 0xa15   :  { %2040 = vmatmul.mubr.f32.gmra.mrb[14].mxu0 %v4745_v8  ;;  %2117 = vmatmul.mubr.f32.gmra.mrb[30].mxu1 %v4745_v8  ;;  %v2576_v8 = vld [vmem:[#allocation12 + $0xa8] sm:$0xff]  ;;  %v3802_v35 = vpack.c.bf16 %v2598_v20, %v2596_v24 }
 0xa16   :  { %v3782_v34 = vpack.c.bf16 %v2578_v59, %v2576_v8  ;;  %v2612_v8 = vld [vmem:[#allocation12 + $0x1c8] sm:$0xff] }
 0xa17   :  { %3769 = vmatpush1.bf16.msra.mxu0 %v3768_v40  ;;  %v2600_v40 = vld [vmem:[#allocation12 + $0x168] sm:$0xff] }
 0xa18   :  { %3771 = vmatprep.subr.bf16.mxu0 %v3770_v41  ;;  %v2602_v41 = vld [vmem:[#allocation12 + $0x178] sm:$0xff] }
 0xa19   :  { %v3806_v44 = vpack.c.bf16 %v2602_v41, %v2600_v40 }
 0xa1b   :  { %3773 = vmatpush1.bf16.msra.mxu0 %v3772_v46  ;;  %v2601_v46 = vld [vmem:[#allocation12 + $0x170] sm:$0xff] }
 0xa1c   :  { %3775 = vmatprep.subr.bf16.mxu0 %v3774_v49  ;;  %v3808_v43 = vpack.c.bf16 %v2601_v46, %v2599_v45  ;;  %v2606_v49 = vld [vmem:[#allocation12 + $0x198] sm:$0xff] }
 0xa1d   :  { %v3810_v50 = vpack.c.bf16 %v2606_v49, %v2604_v37 }
 0xa1f   :  { %3777 = vmatpush1.bf16.msra.mxu0 %v3776_v42  ;;  %v2605_v42 = vld [vmem:[#allocation12 + $0x190] sm:$0xff] }
 0xa20   :  { %3779 = vmatprep.subr.bf16.mxu0 %v3778_v53  ;;  %v3812_v51 = vpack.c.bf16 %v2605_v42, %v2603_v47  ;;  %v2610_v53 = vld [vmem:[#allocation12 + $0x1b8] sm:$0xff] }
 0xa21   :  { %v3814_v54 = vpack.c.bf16 %v2610_v53, %v2608_v52 }
 0xa23   :  { %3781 = vmatpush1.bf16.msra.mxu0 %v3780_v58  ;;  %v2609_v58 = vld [vmem:[#allocation12 + $0x1b0] sm:$0xff] }
 0xa24   :  { %3783 = vmatprep.subr.bf16.mxu0 %v3782_v34  ;;  %v3816_v59 = vpack.c.bf16 %v2609_v58, %v2607_v57  ;;  %v2614_v34 = vld [vmem:[#allocation12 + $0x1d8] sm:$0xff] }
 0xa27   :  { %3785 = vmatpush1.bf16.msra.mxu0 %v3784_v7  ;;  %v3818_v7 = vpack.c.bf16 %v2614_v34, %v2612_v8 }
 0xa28   :  { %3787 = vmatprep.subr.bf16.mxu0 %v3786_v9  ;;  %v3820_v9 = vpack.c.bf16 %v2613_v6, %v2611_v5 }
 0xa2b   :  { %3789 = vmatpush1.bf16.msra.mxu0 %v3788_v16  ;;  %v2617_v16 = vld [vmem:[#allocation12 + $0x1f0] sm:$0xff] }
 0xa2c   :  { %3791 = vmatprep.subr.bf16.mxu0 %v3790_v19  ;;  %v3824_v19 = vpack.c.bf16 %v2617_v16, %v2615_v13 }
 0xa2f   :  { %3793 = vmatpush1.bf16.msra.mxu0 %v3792_v1  ;;  %v1778_v1 = vrot.slane %v4760_v0, %v4574_v3 }
 0xa30   :  { %3795 = vmatprep.subr.bf16.mxu0 %v3794_v26 }
 0xa33   :  { %3797 = vmatpush1.bf16.msra.mxu0 %v3796_v28 }
 0xa34   :  { %3799 = vmatprep.subr.bf16.mxu0 %v3798_v29 }
 0xa37   :  { %3801 = vmatpush1.bf16.msra.mxu0 %v3800_v21 }
 0xa38   :  { %3803 = vmatprep.subr.bf16.mxu0 %v3802_v35 }
 0xa3b   :  { %3805 = vmatpush1.bf16.msra.mxu0 %v3804_v25 }
 0xa3c   :  { %3807 = vmatprep.subr.bf16.mxu0 %v3806_v44 }
 0xa3f   :  { %3809 = vmatpush1.bf16.msra.mxu0 %v3808_v43 }
 0xa40   :  { %3811 = vmatprep.subr.bf16.mxu0 %v3810_v50 }
 0xa43   :  { %3813 = vmatpush1.bf16.msra.mxu0 %v3812_v51 }
 0xa44   :  { %3815 = vmatprep.subr.bf16.mxu0 %v3814_v54 }
 0xa47   :  { %3817 = vmatpush1.bf16.msra.mxu0 %v3816_v59 }
 0xa48   :  { %3819 = vmatprep.subr.bf16.mxu0 %v3818_v7 }
 0xa4b   :  { %3821 = vmatpush1.bf16.msra.mxu0 %v3820_v9  ;;  %v1786_v9 = vrot.slane %v4760_v0, %v402_v31 }
 0xa4c   :  { %3823 = vmatprep.subr.bf16.mxu0 %v3822_v12 }
 0xa4f   :  { %3825 = vmatpush1.bf16.msra.mxu0 %v3824_v19 }
 0xa50   :  { %3827 = vmatprep.subr.bf16.mxu0 %v3826_v22 }
 0xaa4   :  { %v1881_v26 = vpop.f32.mrb[8].mxu0  ;;  %v1958_v27 = vpop.f32.mrb[24].mxu1 }
 0xaa5   :  { %v4771_v14 = vadd.f32 %v1881_v26, %v1778_v1  ;;  %v1883_v28 = vpop.f32.mrb[9].mxu0  ;;  %v1960_v2 = vpop.f32.mrb[25].mxu1 }
 0xaa6   :  { %v4773_v4 = vadd.f32 %v1883_v28, %v1782_v23  ;;  %v4776_v29 = vadd.f32 %v1960_v2, %v4769_v15 }
 0xaa7   :  { %v4779_v30 = vmul.f32 0.70710677, %v4771_v14 }
 0xaa8   :  { %v4782_v33 = vmul.f32 0.70710677, %v4773_v4  ;;  %v4785_v32 = vmul.f32 0.70710677, %v4776_v29  ;;  %v1887_v40 = vpop.f32.mrb[10].mxu0  ;;  %v1964_v41 = vpop.f32.mrb[26].mxu1 }
 0xaa9   :  { %v2155_v21 = vand.u32 2147483647, %v4779_v30  ;;  %v1889_v44 = vpop.f32.mrb[11].mxu0  ;;  %v1966_v45 = vpop.f32.mrb[27].mxu1  ;;  %v4790_v43 = vadd.f32 %v1887_v40, %v1778_v1  ;;  %vm2475_vm2 = vcmp.ge.f32.partialorder %v4779_v30, 0.0 }
 0xaaa   :  { %v2156_v24 = vand.u32 2147483647, %v4782_v33  ;;  %v2158_v20 = vand.u32 2147483647, %v4785_v32  ;;  %v4795_v50 = vadd.f32 %v1889_v44, %v1782_v23  ;;  %v4810_v23 = vadd.f32 %v1958_v27, %v1786_v9 }
 0xaab   :  { %v2171_v35 = vmul.f32 0.3275911, %v2155_v21  ;;  %v4793_v49 = vmul.f32 0.70710677, %v4790_v43  ;;  %v2379_v51 = vsub.f32 0.0, %v2155_v21  ;;  %vm2476_vm3 = vcmp.ge.f32.partialorder %v4782_v33, 0.0 }
 0xaac   :  { %v2172_v36 = vmul.f32 0.3275911, %v2156_v24  ;;  %v2174_v25 = vmul.f32 0.3275911, %v2158_v20  ;;  %v4799_v42 = vmul.f32 0.70710677, %v4795_v50 }
 0xaad   :  { %v2187_v39 = vadd.f32 1.0, %v2171_v35  ;;  %v2163_v47 = vand.u32 2147483647, %v4793_v49  ;;  %v2395_v8 = vmul.f32 %v2379_v51, %v2155_v21  ;;  %v2380_v59 = vsub.f32 0.0, %v2156_v24 }
 0xaae   :  { %v2188_v46 = vadd.f32 1.0, %v2172_v36  ;;  %v2190_v37 = vadd.f32 1.0, %v2174_v25  ;;  %v2164_v53 = vand.u32 2147483647, %v4799_v42  ;;  %v2382_v5 = vsub.f32 0.0, %v2158_v20 }
 0xaaf   :  { %4077 = vrcp.f32 %v2187_v39  ;;  %v2179_v52 = vmul.f32 0.3275911, %v2163_v47  ;;  %v2411_v38 = vmul.f32 1.442695, %v2395_v8  ;;  %v2396_v12 = vmul.f32 %v2380_v59, %v2156_v24 }
 0xab0   :  { %4079 = vrcp.f32 %v2188_v46  ;;  %v2180_v57 = vmul.f32 0.3275911, %v2164_v53  ;;  %v2398_v16 = vmul.f32 %v2382_v5, %v2158_v20  ;;  %v2387_v19 = vsub.f32 0.0, %v2163_v47 }
 0xab1   :  { %4081 = vrcp.f32 %v2190_v37  ;;  %v2195_v54 = vadd.f32 1.0, %v2179_v52  ;;  %v2413_v26 = vmul.f32 1.442695, %v2396_v12  ;;  %v2388_v35 = vsub.f32 0.0, %v2164_v53 }
 0xab2   :  { %v2196_v6 = vadd.f32 1.0, %v2180_v57  ;;  %v2417_v21 = vmul.f32 1.442695, %v2398_v16  ;;  %v2403_v20 = vmul.f32 %v2387_v19, %v2163_v47  ;;  %v4817_v36 = vadd.f32 %v1966_v45, %v4769_v15 }
 0xab3   :  { %4083 = vrcp.f32 %v2195_v54  ;;  %v4821_v44 = vmul.f32 0.70710677, %v4810_v23  ;;  %v4823_v46 = vadd.f32 %v1964_v41, %v1786_v9  ;;  %v2404_v54 = vmul.f32 %v2388_v35, %v2164_v53 }
 0xab4   :  { %4085 = vrcp.f32 %v2196_v6  ;;  %v2427_v45 = vmul.f32 1.442695, %v2403_v20  ;;  %v4830_v57 = vmul.f32 0.70710677, %v4817_v36  ;;  %vm2483_vm4 = vcmp.ge.f32.partialorder %v4793_v49, 0.0 }
 0xab5   :  { %4087 = vpow2.f32 %v2411_v38  ;;  %v4835_v6 = vand.u32 2147483647, %v4821_v44  ;;  %vm2478_vm5 = vcmp.ge.f32.partialorder %v4785_v32, 0.0  ;;  %vm2484_vm6 = vcmp.ge.f32.partialorder %v4799_v42, 0.0 }
 0xab6   :  { %4089 = vpow2.f32 %v2413_v26  ;;  %v4843_v19 = vand.u32 2147483647, %v4830_v57  ;;  %v2132_v32 = vmul.f32 0.5, %v4795_v50  ;;  %v2126_v50 = vmul.f32 0.5, %v4776_v29 }
 0xab7   :  { %4091 = vpow2.f32 %v2417_v21  ;;  %v2173_v21 = vmul.f32 0.3275911, %v4835_v6  ;;  %vm2477_vm7 = vcmp.ge.f32.partialorder %v4821_v44, 0.0  ;;  %vm2486_vm8 = vcmp.ge.f32.partialorder %v4830_v57, 0.0 }
 0xab8   :  { %4093 = vpow2.f32 %v2427_v45 }
 0xab9   :  { %v4078_v58 = vpop.eup %4077 }
 0xaba   :  { %v2235_v34 = vmul.f32 1.0614054, %v4078_v58  ;;  %v4802_v48 = vpop.eup %4079 }
 0xabb   :  { %v2236_v17 = vmul.f32 1.0614054, %v4802_v48  ;;  %v4808_v18 = vpop.eup %4081 }
 0xabc   :  { %v2251_v7 = vadd.f32 -1.4531521, %v2235_v34  ;;  %v2238_v28 = vmul.f32 1.0614054, %v4808_v18 }
 0xabd   :  { %v2252_v1 = vadd.f32 -1.4531521, %v2236_v17  ;;  %v4814_v24 = vpop.eup %4083  ;;  %v2429_v17 = vmul.f32 1.442695, %v2404_v54 }
 0xabe   :  { %v2267_v13 = vmul.f32 %v4078_v58, %v2251_v7  ;;  %v2254_v39 = vadd.f32 -1.4531521, %v2238_v28  ;;  %v2243_v27 = vmul.f32 1.0614054, %v4814_v24  ;;  %v4827_v15 = vpop.eup %4085  ;;  %v4838_v7 = vmul.f32 0.70710677, %v4823_v46 }
 0xabf   :  { %v2268_v31 = vmul.f32 %v4802_v48, %v2252_v1  ;;  %v2244_v41 = vmul.f32 1.0614054, %v4827_v15  ;;  %v4088_v16 = vpop.eup %4087  ;;  %4095 = vpow2.f32 %v2429_v17 }
 0xac0   :  { %v2283_v22 = vadd.f32 1.4214138, %v2267_v13  ;;  %v2270_v37 = vmul.f32 %v4808_v18, %v2254_v39  ;;  %v2259_v52 = vadd.f32 -1.4531521, %v2243_v27  ;;  %v2182_v27 = vmul.f32 0.3275911, %v4843_v19 }
 0xac1   :  { %v2284_v40 = vadd.f32 1.4214138, %v2268_v31  ;;  %v2260_v12 = vadd.f32 -1.4531521, %v2244_v41  ;;  %vm2485_vm9 = vcmp.ge.f32.partialorder %v4838_v7, 0.0 }
 0xac2   :  { %v2299_v2 = vmul.f32 %v4078_v58, %v2283_v22  ;;  %v2286_v8 = vadd.f32 1.4214138, %v2270_v37  ;;  %v2275_v5 = vmul.f32 %v4814_v24, %v2259_v52 }
 0xac3   :  { %v2300_v47 = vmul.f32 %v4802_v48, %v2284_v40  ;;  %v2276_v28 = vmul.f32 %v4827_v15, %v2260_v12  ;;  %v4090_v40 = vpop.eup %4089 }
 0xac4   :  { %v2315_v25 = vadd.f32 -0.28449672, %v2299_v2  ;;  %v2302_v38 = vmul.f32 %v4808_v18, %v2286_v8  ;;  %v2291_v13 = vadd.f32 1.4214138, %v2275_v5  ;;  %v2189_v8 = vadd.f32 1.0, %v2173_v21  ;;  %v2626_v21 = vld [vmem:[#allocation12 + $0x238] sm:$0xff] }
 0xac5   :  { %v2316_v34 = vadd.f32 -0.28449672, %v2300_v47  ;;  %v2292_v39 = vadd.f32 1.4214138, %v2276_v28 }
 0xac6   :  { %v2331_v51 = vmul.f32 %v4078_v58, %v2315_v25  ;;  %v2318_v22 = vadd.f32 -0.28449672, %v2302_v38  ;;  %v2307_v2 = vmul.f32 %v4814_v24, %v2291_v13  ;;  %4097 = vrcp.f32 %v2189_v8  ;;  %v2625_v8 = vld [vmem:[#allocation12 + $0x230] sm:$0xff] }
 0xac7   :  { %v2332_v53 = vmul.f32 %v4802_v48, %v2316_v34  ;;  %v2308_v45 = vmul.f32 %v4827_v15, %v2292_v39 }
 0xac8   :  { %v2347_v59 = vadd.f32 0.2548296, %v2331_v51  ;;  %v2334_v31 = vmul.f32 %v4808_v18, %v2318_v22  ;;  %v2323_v25 = vadd.f32 -0.28449672, %v2307_v2  ;;  %v4092_v51 = vpop.eup %4091  ;;  %v2624_v2 = vld [vmem:[#allocation12 + $0x228] sm:$0xff] }
 0xac9   :  { %v2348_v26 = vadd.f32 0.2548296, %v2332_v53  ;;  %v2324_v5 = vadd.f32 -0.28449672, %v2308_v45  ;;  %v4094_v17 = vpop.eup %4093 }
 0xaca   :  { %v2363_v9 = vmul.f32 %v4078_v58, %v2347_v59  ;;  %v4849_v58 = vand.u32 2147483647, %v4838_v7  ;;  %v2350_v37 = vadd.f32 0.2548296, %v2334_v31  ;;  %v2339_v54 = vmul.f32 %v4814_v24, %v2323_v25 }
 0xacb   :  { %v2364_v35 = vmul.f32 %v4802_v48, %v2348_v26  ;;  %v2340_v13 = vmul.f32 %v4827_v15, %v2324_v5 }
 0xacc   :  { %v2443_v1 = vmul.f32 %v4088_v16, %v2363_v9  ;;  %v2181_v59 = vmul.f32 0.3275911, %v4849_v58  ;;  %v2366_v48 = vmul.f32 %v4808_v18, %v2350_v37  ;;  %v2355_v38 = vadd.f32 0.2548296, %v2339_v54  ;;  %v2621_v18 = vld [vmem:[#allocation12 + $0x210] sm:$0xff]  ;;  %v2623_v54 = vld [vmem:[#allocation12 + $0x220] sm:$0xff] }
 0xacd   :  { %v2444_v52 = vmul.f32 %v4090_v40, %v2364_v35  ;;  %v2198_v9 = vadd.f32 1.0, %v2182_v27  ;;  %v2356_v28 = vadd.f32 0.2548296, %v2340_v13  ;;  %v2124_v35 = vmul.f32 0.5, %v4773_v4  ;;  %v4096_v27 = vpop.eup %4095  ;;  %v2628_v4 = vld [vmem:[#allocation12 + $0x248] sm:$0xff] }
 0xace   :  { %v2459_v20 = vsub.f32 1.0, %v2443_v1  ;;  %v2446_v53 = vmul.f32 %v4092_v51, %v2366_v48  ;;  %v2371_v16 = vmul.f32 %v4814_v24, %v2355_v38  ;;  %v2197_v30 = vadd.f32 1.0, %v2181_v59  ;;  %v2619_v1 = vld [vmem:[#allocation12 + $0x200] sm:$0xff]  ;;  %v2630_v48 = vld [vmem:[#allocation12 + $0x258] sm:$0xff]  ;;  %v2632_v13 = vld [vmem:[#allocation12 + $0x268] sm:$0xff] }
 0xacf   :  { %v2460_v41 = vsub.f32 1.0, %v2444_v52  ;;  %4099 = vrcp.f32 %v2198_v9  ;;  %v2123_v24 = vmul.f32 0.5, %v4771_v14  ;;  %v2372_v25 = vmul.f32 %v4827_v15, %v2356_v28  ;;  %v2627_v9 = vld [vmem:[#allocation12 + $0x240] sm:$0xff] }
 0xad0   :  { %v2491_v47 = vsub.f32 0.0, %v2459_v20  ;;  %v2451_v31 = vmul.f32 %v4094_v17, %v2371_v16  ;;  %4101 = vrcp.f32 %v2197_v30  ;;  %v3828_v37 = vpack.c.bf16 %v2621_v18, %v2619_v1  ;;  %v2634_v16 = vld [vmem:[#allocation12 + $0x278] sm:$0xff] }
 0xad1   :  { %v2492_v12 = vsub.f32 0.0, %v2460_v41  ;;  %v3830_v51 = vpack.c.bf16 %v2626_v21, %v2624_v2  ;;  %v2452_v52 = vmul.f32 %v4096_v27, %v2372_v25  ;;  %v3834_v38 = vpack.c.bf16 %v2630_v48, %v2628_v4  ;;  %v2631_v2 = vld [vmem:[#allocation12 + $0x260] sm:$0xff]  ;;  %v2633_v21 = vld [vmem:[#allocation12 + $0x270] sm:$0xff]  ;;  %v2642_v4 = vld [vmem:[#allocation12 + $0x2b8] sm:$0xff] }
 0xad2   :  { %v2507_v34 = vsel %vm2475_vm2, %v2459_v20, %v2491_v47  ;;  %v2462_v20 = vsub.f32 1.0, %v2446_v53  ;;  %v2467_v40 = vsub.f32 1.0, %v2451_v31  ;;  %v2629_v53 = vld [vmem:[#allocation12 + $0x250] sm:$0xff]  ;;  %v2131_v18 = vmul.f32 0.5, %v4790_v43 }
 0xad3   :  { %v2523_v22 = vadd.f32 1.0, %v2507_v34  ;;  %v2508_v26 = vsel %vm2476_vm3, %v2460_v41, %v2492_v12  ;;  %v2468_v14 = vsub.f32 1.0, %v2452_v52  ;;  %v3832_v34 = vpack.c.bf16 %v2625_v8, %v2623_v54  ;;  %v4867_v12 = vpop.eup %4097  ;;  %v2635_v52 = vld [vmem:[#allocation12 + $0x280] sm:$0xff] }
 0xad4   :  { %v2524_v39 = vadd.f32 1.0, %v2508_v26  ;;  %v2499_v45 = vsub.f32 0.0, %v2467_v40  ;;  %v2494_v59 = vsub.f32 0.0, %v2462_v20  ;;  %v3836_v26 = vpack.c.bf16 %v2629_v53, %v2627_v9 }
 0xad5   :  { %v2539_v47 = vmul.f32 %v2523_v22, %v2123_v24  ;;  %v2500_v41 = vsub.f32 0.0, %v2468_v14  ;;  %v4877_v28 = vrot.slane %v4760_v0, %v414_v56  ;;  %v3838_v42 = vpack.c.bf16 %v2634_v16, %v2632_v13  ;;  %v2638_v24 = vld [vmem:[#allocation12 + $0x298] sm:$0xff]  ;;  %v2644_v13 = vld [vmem:[#allocation12 + $0x2c8] sm:$0xff] }
 0xad6   :  { %v2540_v33 = vmul.f32 %v2524_v39, %v2124_v35  ;;  %v2515_v15 = vsel %vm2483_vm4, %v2467_v40, %v2499_v45  ;;  %v2510_v5 = vsel %vm2478_vm5, %v2462_v20, %v2494_v59  ;;  %v2237_v20 = vmul.f32 1.0614054, %v4867_v12  ;;  %v2636_v39 = vld [vmem:[#allocation12 + $0x288] sm:$0xff]  ;;  %v2637_v45 = vld [vmem:[#allocation12 + $0x290] sm:$0xff]  ;;  %v2646_v16 = vld [vmem:[#allocation12 + $0x2d8] sm:$0xff] }
 0xad7   :  { %v2516_v49 = vsel %vm2484_vm6, %v2468_v14, %v2500_v41  ;;  %v2531_v17 = vadd.f32 1.0, %v2515_v15  ;;  %v2526_v1 = vadd.f32 1.0, %v2510_v5  ;;  %v2640_v59 = vld [vmem:[#allocation12 + $0x2a8] sm:$0xff]  ;;  %v3844_v15 = vpack.c.bf16 %v2637_v45, %v2635_v52  ;;  %v2639_v5 = vld [vmem:[#allocation12 + $0x2a0] sm:$0xff]  ;;  %v2649_v52 = vld [vmem:[#allocation12 + $0x2f0] sm:$0xff] }
 0xad8   :  { %2887 = vmatprep.mubr.f32.mxu0 %v2540_v33  ;;  %v2532_v30 = vadd.f32 1.0, %v2516_v49  ;;  %v2253_v8 = vadd.f32 -1.4531521, %v2237_v20  ;;  %v3846_v41 = vpack.c.bf16 %v2642_v4, %v2640_v59  ;;  %v2652_v59 = vld [vmem:[#allocation12 + $0x308] sm:$0xff]  ;;  %v2654_v4 = vld [vmem:[#allocation12 + $0x318] sm:$0xff] }
 0xad9   :  { %2888 = vmatmul.mubr.f32.vlgmr.msra.gmra.mrb[16].mxu0 %v2539_v47  ;;  %v4870_v22 = vpop.eup %4099  ;;  %v2547_v25 = vmul.f32 %v2531_v17, %v2131_v18  ;;  %v2542_v27 = vmul.f32 %v2526_v1, %v2126_v50  ;;  %v3842_v47 = vpack.c.bf16 %v2638_v24, %v2636_v39  ;;  %v2648_v39 = vld [vmem:[#allocation12 + $0x2e8] sm:$0xff]  ;;  %v2650_v24 = vld [vmem:[#allocation12 + $0x2f8] sm:$0xff] }
 0xada   :  { %3829 = vmatpush1.bf16.msra.mxu0 %v3828_v37  ;;  %v4879_v31 = vpop.eup %4101  ;;  %v2548_v35 = vmul.f32 %v2532_v30, %v2132_v32  ;;  %v2246_v56 = vmul.f32 1.0614054, %v4870_v22  ;;  %v2269_v53 = vmul.f32 %v4867_v12, %v2253_v8  ;;  %v2389_v8 = vsub.f32 0.0, %v4849_v58 }
 0xadb   :  { %3831 = vmatprep.subr.bf16.mxu0 %v3830_v51  ;;  %v3840_v51 = vpack.c.bf16 %v2633_v21, %v2631_v2  ;;  %v2245_v54 = vmul.f32 1.0614054, %v4879_v31  ;;  %v2643_v2 = vld [vmem:[#allocation12 + $0x2c0] sm:$0xff]  ;;  %v2645_v21 = vld [vmem:[#allocation12 + $0x2d0] sm:$0xff] }
 0xadc   :  { %2893 = vmatprep.mubr.f32.mxu0 %v2548_v35  ;;  %v2262_v14 = vadd.f32 -1.4531521, %v2246_v56  ;;  %v2285_v50 = vadd.f32 1.4214138, %v2269_v53  ;;  %v2653_v53 = vld [vmem:[#allocation12 + $0x310] sm:$0xff] }
 0xadd   :  { %2894 = vmatmul.mubr.f32.gmra.mrb[18].mxu0 %v2547_v25  ;;  %v2261_v9 = vadd.f32 -1.4531521, %v2245_v54  ;;  %v2381_v25 = vsub.f32 0.0, %v4835_v6 }
 0xade   :  { %3833 = vmatpush1.bf16.msra.mxu0 %v3832_v34  ;;  %2964 = vmatprep.mubr.f32.mxu0 %v2542_v27  ;;  %v2278_v17 = vmul.f32 %v4870_v22, %v2262_v14  ;;  %v2390_v27 = vsub.f32 0.0, %v4843_v19  ;;  %v2301_v54 = vmul.f32 %v4867_v12, %v2285_v50  ;;  %v2655_v50 = vld [vmem:[#allocation12 + $0x320] sm:$0xff] }
 0xadf   :  { %3835 = vmatprep.subr.bf16.mxu0 %v3834_v38  ;;  %v2641_v38 = vld [vmem:[#allocation12 + $0x2b0] sm:$0xff]  ;;  %v2277_v20 = vmul.f32 %v4879_v31, %v2261_v9  ;;  %v2397_v14 = vmul.f32 %v2381_v25, %v4835_v6  ;;  %v2651_v9 = vld [vmem:[#allocation12 + $0x300] sm:$0xff] }
 0xae0   :  { %v3848_v1 = vpack.c.bf16 %v2641_v38, %v2639_v5  ;;  %v2294_v56 = vadd.f32 1.4214138, %v2278_v17  ;;  %v3858_v38 = vpack.c.bf16 %v2654_v4, %v2652_v59  ;;  %v2656_v17 = vld [vmem:[#allocation12 + $0x328] sm:$0xff] }
 0xae1   :  { %v2293_v45 = vadd.f32 1.4214138, %v2277_v20 }
 0xae2   :  { %3837 = vmatpush1.bf16.msra.mxu0 %v3836_v26 }
 0xae3   :  { %3839 = vmatprep.subr.bf16.mxu0 %v3838_v42  ;;  %v3850_v42 = vpack.c.bf16 %v2646_v16, %v2644_v13  ;;  %v2309_v13 = vmul.f32 %v4879_v31, %v2293_v45  ;;  %v2317_v16 = vadd.f32 -0.28449672, %v2301_v54  ;;  %v2659_v54 = vld [vmem:[#allocation12 + $0x340] sm:$0xff] }
 0xae4   :  { %v4883_v43 = vpop.f32.mrb[12].mxu0  ;;  %v4885_v40 = vpop.f32.mrb[28].mxu1 }
 0xae5   :  { %v2037_v33 = vpop.f32.mrb[13].mxu0  ;;  %v4888_v37 = vpop.f32.mrb[29].mxu1 }
 0xae6   :  { %v4891_v29 = vadd.f32 %v2037_v33, %v4877_v28  ;;  %3841 = vmatpush1.bf16.msra.mxu0 %v3840_v51  ;;  %v3852_v33 = vpack.c.bf16 %v2645_v21, %v2643_v2  ;;  %v3854_v51 = vpack.c.bf16 %v2650_v24, %v2648_v39  ;;  %v2325_v39 = vadd.f32 -0.28449672, %v2309_v13 }
 0xae7   :  { %3843 = vmatprep.subr.bf16.mxu0 %v3842_v47  ;;  %v2647_v47 = vld [vmem:[#allocation12 + $0x2e0] sm:$0xff]  ;;  %v2333_v24 = vmul.f32 %v4867_v12, %v2317_v16 }
 0xae8   :  { %v4895_v48 = vmul.f32 0.70710677, %v4891_v29  ;;  %v4903_v32 = vpop.f32.mrb[14].mxu0  ;;  %v4905_v30 = vpop.f32.mrb[30].mxu1  ;;  %v3856_v5 = vpack.c.bf16 %v2649_v52, %v2647_v47  ;;  %v1794_v52 = vrot.slane %v4760_v0, %v410_v55  ;;  %v2341_v59 = vmul.f32 %v4879_v31, %v2325_v39  ;;  %v2663_v55 = vld [vmem:[#allocation12 + $0x360] sm:$0xff] }
 0xae9   :  { %v4907_v26 = vpop.f32.mrb[15].mxu0  ;;  %v4909_v18 = vpop.f32.mrb[31].mxu1  ;;  %v2667_v39 = vld [vmem:[#allocation12 + $0x380] sm:$0xff] }
 0xaea   :  { %v4898_v34 = vand.u32 2147483647, %v4895_v48  ;;  %3845 = vmatpush1.bf16.msra.mxu0 %v3844_v15  ;;  %v2310_v15 = vmul.f32 %v4870_v22, %v2294_v56  ;;  %v2660_v56 = vld [vmem:[#allocation12 + $0x348] sm:$0xff]  ;;  %v4934_v13 = vadd.f32 %v4883_v43, %v1794_v52  ;;  %vm2480_vm10 = vcmp.ge.f32.partialorder %v4895_v48, 0.0 }
 0xaeb   :  { %3847 = vmatprep.subr.bf16.mxu0 %v3846_v41  ;;  %v2406_v41 = vmul.f32 %v2390_v27, %v4843_v19  ;;  %v3860_v19 = vpack.c.bf16 %v2653_v53, %v2651_v9  ;;  %v2662_v27 = vld [vmem:[#allocation12 + $0x358] sm:$0xff] }
 0xaec   :  { %v2176_v49 = vmul.f32 0.3275911, %v4898_v34  ;;  %v2326_v2 = vadd.f32 -0.28449672, %v2310_v15  ;;  %v2384_v21 = vsub.f32 0.0, %v4898_v34  ;;  %v3866_v45 = vpack.c.bf16 %v2662_v27, %v2660_v56  ;;  %v2672_v56 = vld [vmem:[#allocation12 + $0x3a8] sm:$0xff] }
 0xaed   :  { %v2433_v6 = vmul.f32 1.442695, %v2406_v41  ;;  %v1805_v15 = vsub.s32 7, %v4568_v61  ;;  %v2664_v41 = vld [vmem:[#allocation12 + $0x368] sm:$0xff] }
 0xaee   :  { %v2192_v35 = vadd.f32 1.0, %v2176_v49  ;;  %3849 = vmatpush1.bf16.msra.mxu0 %v3848_v1  ;;  %v2405_v49 = vmul.f32 %v2389_v8, %v4849_v58  ;;  %v2658_v1 = vld [vmem:[#allocation12 + $0x338] sm:$0xff]  ;;  %v2342_v58 = vmul.f32 %v4870_v22, %v2326_v2  ;;  %v2661_v8 = vld [vmem:[#allocation12 + $0x350] sm:$0xff] }
 0xaef   :  { %3851 = vmatprep.subr.bf16.mxu0 %v3850_v42  ;;  %v2415_v42 = vmul.f32 1.442695, %v2397_v14  ;;  %v3862_v20 = vpack.c.bf16 %v2658_v1, %v2656_v17  ;;  %v2349_v14 = vadd.f32 0.2548296, %v2333_v24  ;;  %v3868_v53 = vpack.c.bf16 %v2661_v8, %v2659_v54  ;;  %v2668_v17 = vld [vmem:[#allocation12 + $0x388] sm:$0xff]  ;;  %v2670_v1 = vld [vmem:[#allocation12 + $0x398] sm:$0xff] }
 0xaf0   :  { %4103 = vrcp.f32 %v2192_v35  ;;  %v2657_v35 = vld [vmem:[#allocation12 + $0x330] sm:$0xff]  ;;  %v2431_v25 = vmul.f32 1.442695, %v2405_v49 }
 0xaf1   :  { %4105 = vpow2.f32 %v2415_v42  ;;  %v3864_v47 = vpack.c.bf16 %v2657_v35, %v2655_v50  ;;  %v2665_v49 = vld [vmem:[#allocation12 + $0x370] sm:$0xff]  ;;  %v2357_v42 = vadd.f32 0.2548296, %v2341_v59  ;;  %v3874_v35 = vpack.c.bf16 %v2670_v1, %v2668_v17  ;;  %v2671_v59 = vld [vmem:[#allocation12 + $0x3a0] sm:$0xff] }
 0xaf2   :  { %3853 = vmatpush1.bf16.msra.mxu0 %v3852_v33  ;;  %4107 = vpow2.f32 %v2433_v6  ;;  %v2365_v6 = vmul.f32 %v4867_v12, %v2349_v14  ;;  %v3872_v50 = vpack.c.bf16 %v2665_v49, %v2663_v55  ;;  %v4950_v12 = vadd.f32 %v4903_v32, %v1794_v52  ;;  %v2675_v17 = vld [vmem:[#allocation12 + $0x3c0] sm:$0xff]  ;;  %v2677_v1 = vld [vmem:[#allocation12 + $0x3d0] sm:$0xff] }
 0xaf3   :  { %3855 = vmatprep.subr.bf16.mxu0 %v3854_v51  ;;  %v2400_v51 = vmul.f32 %v2384_v21, %v4898_v34  ;;  %4109 = vpow2.f32 %v2431_v25  ;;  %v2666_v34 = vld [vmem:[#allocation12 + $0x378] sm:$0xff]  ;;  %v4939_v21 = vrot.slane %v4760_v0, %v1805_v15  ;;  %v4947_v25 = vmul.f32 0.70710677, %v4934_v13  ;;  %v2669_v0 = vld [vmem:[#allocation12 + $0x390] sm:$0xff] }
 0xaf4   :  { %v3870_v16 = vpack.c.bf16 %v2666_v34, %v2664_v41  ;;  %v3876_v54 = vpack.c.bf16 %v2669_v0, %v2667_v39  ;;  %v4965_v14 = vmul.f32 0.70710677, %v4950_v12  ;;  %v2678_v15 = vld [vmem:[#allocation12 + $0x3d8] sm:$0xff] }
 0xaf5   :  { %v2421_v9 = vmul.f32 1.442695, %v2400_v51  ;;  %v4956_v51 = vadd.f32 %v4888_v37, %v4939_v21  ;;  %v2676_v37 = vld [vmem:[#allocation12 + $0x3c8] sm:$0xff]  ;;  %vm2479_vm11 = vcmp.ge.f32.partialorder %v4947_v25, 0.0 }
 0xaf6   :  { %3857 = vmatpush1.bf16.msra.mxu0 %v3856_v5  ;;  %v2358_v5 = vadd.f32 0.2548296, %v2342_v58  ;;  %v3882_v49 = vpack.c.bf16 %v2678_v15, %v2676_v37  ;;  %vm2487_vm13 = vcmp.ge.f32.partialorder %v4965_v14, 0.0 }
 0xaf7   :  { %3859 = vmatprep.subr.bf16.mxu0 %v3858_v38  ;;  %4111 = vpow2.f32 %v2421_v9 }
 0xaf8   :  { %v2374_v43 = vmul.f32 %v4870_v22, %v2358_v5 }
 0xafa   :  { %v4924_v33 = vpop.eup %4103  ;;  %3861 = vmatpush1.bf16.msra.mxu0 %v3860_v19  ;;  %v4943_v19 = vadd.f32 %v4907_v26, %v4877_v28  ;;  %v2674_v28 = vld [vmem:[#allocation12 + $0x3b8] sm:$0xff]  ;;  %v2373_v26 = vmul.f32 %v4879_v31, %v2357_v42  ;;  %v4962_v31 = vand.u32 2147483647, %v4947_v25  ;;  %v2680_v42 = vld [vmem:[#allocation12 + $0x3e8] sm:$0xff] }
 0xafb   :  { %3863 = vmatprep.subr.bf16.mxu0 %v3862_v20  ;;  %v2240_v4 = vmul.f32 1.0614054, %v4924_v33  ;;  %v4106_v24 = vpop.eup %4105  ;;  %v3878_v8 = vpack.c.bf16 %v2674_v28, %v2672_v56 }
 0xafc   :  { %v4108_v27 = vpop.eup %4107  ;;  %v2445_v58 = vmul.f32 %v4106_v24, %v2365_v6  ;;  %v4976_v6 = vand.u32 2147483647, %v4965_v14 }
 0xafd   :  { %v2256_v38 = vadd.f32 -1.4531521, %v2240_v4  ;;  %v4110_v52 = vpop.eup %4109  ;;  %v2673_v4 = vld [vmem:[#allocation12 + $0x3b0] sm:$0xff] }
 0xafe   :  { %3865 = vmatpush1.bf16.msra.mxu0 %v3864_v47  ;;  %v4959_v47 = vmul.f32 0.70710677, %v4943_v19  ;;  %v2453_v41 = vmul.f32 %v4110_v52, %v2373_v26  ;;  %v2461_v5 = vsub.f32 1.0, %v2445_v58  ;;  %v3884_v26 = vpack.c.bf16 %v2677_v1, %v2675_v17  ;;  %v2681_v58 = vld [vmem:[#allocation12 + $0x3f0] sm:$0xff]  ;;  %v2686_v52 = vld [vmem:[#allocation12 + $0x418] sm:$0xff] }
 0xaff   :  { %3867 = vmatprep.subr.bf16.mxu0 %v3866_v45  ;;  %v2272_v2 = vmul.f32 %v4924_v33, %v2256_v38  ;;  %v2454_v45 = vmul.f32 %v4108_v27, %v2374_v43  ;;  %v4969_v38 = vmul.f32 0.70710677, %v4956_v51  ;;  %v2682_v43 = vld [vmem:[#allocation12 + $0x3f8] sm:$0xff]  ;;  %v2679_v27 = vld [vmem:[#allocation12 + $0x3e0] sm:$0xff]  ;;  %v2685_v17 = vld [vmem:[#allocation12 + $0x410] sm:$0xff] }
 0xb00   :  { %v4972_v9 = vand.u32 2147483647, %v4959_v47  ;;  %v2493_v39 = vsub.f32 0.0, %v2461_v5  ;;  %vm2488_vm12 = vcmp.ge.f32.partialorder %v4959_v47, 0.0 }
 0xb01   :  { %v2288_v20 = vadd.f32 1.4214138, %v2272_v2  ;;  %v2175_v2 = vmul.f32 0.3275911, %v4962_v31  ;;  %v4980_v24 = vand.u32 2147483647, %v4969_v38 }
 0xb02   :  { %3869 = vmatpush1.bf16.msra.mxu0 %v3868_v53  ;;  %v2470_v53 = vsub.f32 1.0, %v2454_v45  ;;  %v2184_v0 = vmul.f32 0.3275911, %v4972_v9  ;;  %v2684_v45 = vld [vmem:[#allocation12 + $0x408] sm:$0xff]  ;;  %vm2482_vm14 = vcmp.ge.f32.partialorder %v4969_v38, 0.0 }
 0xb03   :  { %3871 = vmatprep.subr.bf16.mxu0 %v3870_v16  ;;  %v2304_v22 = vmul.f32 %v4924_v33, %v2288_v20  ;;  %v3880_v16 = vpack.c.bf16 %v2673_v4, %v2671_v59  ;;  %v2469_v20 = vsub.f32 1.0, %v2453_v41  ;;  %v2509_v59 = vsel %vm2477_vm7, %v2461_v5, %v2493_v39 }
 0xb04   :  { %v2502_v56 = vsub.f32 0.0, %v2470_v53  ;;  %v2178_v4 = vmul.f32 0.3275911, %v4980_v24  ;;  %v2200_v37 = vadd.f32 1.0, %v2184_v0  ;;  %v3888_v41 = vpack.c.bf16 %v2681_v58, %v2679_v27 }
 0xb05   :  { %v2320_v32 = vadd.f32 -0.28449672, %v2304_v22  ;;  %v3886_v22 = vpack.c.bf16 %v2682_v43, %v2680_v42  ;;  %v2688_v42 = vld [vmem:[#allocation12 + $0x428] sm:$0xff]  ;;  %v2134_v43 = vmul.f32 0.5, %v4817_v36  ;;  %v2133_v27 = vmul.f32 0.5, %v4823_v46 }
 0xb06   :  { %3873 = vmatpush1.bf16.msra.mxu0 %v3872_v50  ;;  %v2518_v44 = vsel %vm2486_vm8, %v2470_v53, %v2502_v56  ;;  %v2194_v57 = vadd.f32 1.0, %v2178_v4  ;;  %v2690_v53 = vld [vmem:[#allocation12 + $0x438] sm:$0xff]  ;;  %v2689_v56 = vld [vmem:[#allocation12 + $0x430] sm:$0xff] }
 0xb07   :  { %3875 = vmatprep.subr.bf16.mxu0 %v3874_v35  ;;  %v2336_v34 = vmul.f32 %v4924_v33, %v2320_v32  ;;  %v4112_v35 = vpop.eup %4111  ;;  %v2191_v32 = vadd.f32 1.0, %v2175_v2  ;;  %v2534_v5 = vadd.f32 1.0, %v2518_v44  ;;  %v2125_v2 = vmul.f32 0.5, %v4810_v23  ;;  %v2697_v44 = vld [vmem:[#allocation12 + $0x470] sm:$0xff] }
 0xb08   :  { %v3894_v0 = vpack.c.bf16 %v2690_v53, %v2688_v42  ;;  %v2128_v23 = vmul.f32 0.5, %v4891_v29  ;;  %v2704_v53 = vld [vmem:[#allocation12 + $0x4a8] sm:$0xff] }
 0xb09   :  { %v2352_v55 = vadd.f32 0.2548296, %v2336_v34  ;;  %v3890_v34 = vpack.c.bf16 %v2686_v52, %v2684_v45  ;;  %4113 = vrcp.f32 %v2191_v32  ;;  %v2550_v48 = vmul.f32 %v2534_v5, %v2134_v43  ;;  %v2691_v32 = vld [vmem:[#allocation12 + $0x440] sm:$0xff]  ;;  %v2701_v5 = vld [vmem:[#allocation12 + $0x490] sm:$0xff] }
 0xb0a   :  { %3877 = vmatpush1.bf16.msra.mxu0 %v3876_v54  ;;  %v2501_v54 = vsub.f32 0.0, %v2469_v20  ;;  %4115 = vrcp.f32 %v2200_v37  ;;  %v2695_v37 = vld [vmem:[#allocation12 + $0x460] sm:$0xff] }
 0xb0b   :  { %3879 = vmatprep.subr.bf16.mxu0 %v3878_v8  ;;  %v2368_v50 = vmul.f32 %v4924_v33, %v2352_v55  ;;  %v2183_v33 = vmul.f32 0.3275911, %v4976_v6  ;;  %v2525_v55 = vadd.f32 1.0, %v2509_v59 }
 0xb0c   :  { %v2517_v1 = vsel %vm2485_vm9, %v2469_v20, %v2501_v54  ;;  %v2687_v20 = vld [vmem:[#allocation12 + $0x420] sm:$0xff]  ;;  %v2696_v54 = vld [vmem:[#allocation12 + $0x468] sm:$0xff] }
 0xb0d   :  { %v2448_v28 = vmul.f32 %v4112_v35, %v2368_v50  ;;  %v2541_v35 = vmul.f32 %v2525_v55, %v2125_v2  ;;  %v2533_v39 = vadd.f32 1.0, %v2517_v1  ;;  %v3896_v36 = vpack.c.bf16 %v2689_v56, %v2687_v20  ;;  %v2706_v2 = vld [vmem:[#allocation12 + $0x4b8] sm:$0xff]  ;;  %v2705_v20 = vld [vmem:[#allocation12 + $0x4b0] sm:$0xff] }
 0xb0e   :  { %3881 = vmatpush1.bf16.msra.mxu0 %v3880_v16  ;;  %v2199_v16 = vadd.f32 1.0, %v2183_v33  ;;  %v2693_v33 = vld [vmem:[#allocation12 + $0x450] sm:$0xff] }
 0xb0f   :  { %3883 = vmatprep.subr.bf16.mxu0 %v3882_v49  ;;  %v2464_v8 = vsub.f32 1.0, %v2448_v28  ;;  %v2683_v49 = vld [vmem:[#allocation12 + $0x400] sm:$0xff]  ;;  %v2549_v58 = vmul.f32 %v2533_v39, %v2133_v27  ;;  %v3900_v46 = vpack.c.bf16 %v2693_v33, %v2691_v32  ;;  %v3910_v39 = vpack.c.bf16 %v2706_v2, %v2704_v53  ;;  %v2712_v33 = vld [vmem:[#allocation12 + $0x4e8] sm:$0xff] }
 0xb10   :  { %v3892_v50 = vpack.c.bf16 %v2685_v17, %v2683_v49  ;;  %4117 = vrcp.f32 %v2199_v16  ;;  %v3904_v17 = vpack.c.bf16 %v2697_v44, %v2695_v37  ;;  %v2392_v37 = vsub.f32 0.0, %v4972_v9 }
 0xb11   :  { %v2496_v15 = vsub.f32 0.0, %v2464_v8  ;;  %4119 = vrcp.f32 %v2194_v57  ;;  %v2699_v57 = vld [vmem:[#allocation12 + $0x480] sm:$0xff] }
 0xb12   :  { %3885 = vmatpush1.bf16.msra.mxu0 %v3884_v26  ;;  %v2692_v26 = vld [vmem:[#allocation12 + $0x448] sm:$0xff] }
 0xb13   :  { %3887 = vmatprep.subr.bf16.mxu0 %v3886_v22  ;;  %v2512_v7 = vsel %vm2480_vm10, %v2464_v8, %v2496_v15  ;;  %v2694_v22 = vld [vmem:[#allocation12 + $0x458] sm:$0xff]  ;;  %v4993_v59 = vpop.eup %4113 }
 0xb14   :  { %v2528_v28 = vadd.f32 1.0, %v2512_v7  ;;  %v3898_v45 = vpack.c.bf16 %v2694_v22, %v2692_v26  ;;  %v2698_v8 = vld [vmem:[#allocation12 + $0x478] sm:$0xff]  ;;  %v4995_v4 = vpop.eup %4115  ;;  %v2239_v15 = vmul.f32 1.0614054, %v4993_v59 }
 0xb15   :  { %v3902_v29 = vpack.c.bf16 %v2698_v8, %v2696_v54  ;;  %v2248_v16 = vmul.f32 1.0614054, %v4995_v4  ;;  %v2383_v8 = vsub.f32 0.0, %v4962_v31 }
 0xb16   :  { %3889 = vmatpush1.bf16.msra.mxu0 %v3888_v41  ;;  %v2544_v52 = vmul.f32 %v2528_v28, %v2128_v23  ;;  %v2700_v41 = vld [vmem:[#allocation12 + $0x488] sm:$0xff]  ;;  %v2255_v42 = vadd.f32 -1.4531521, %v2239_v15  ;;  %v2710_v28 = vld [vmem:[#allocation12 + $0x4d8] sm:$0xff] }
 0xb17   :  { %3891 = vmatprep.subr.bf16.mxu0 %v3890_v34  ;;  %v2702_v34 = vld [vmem:[#allocation12 + $0x498] sm:$0xff]  ;;  %v2264_v43 = vadd.f32 -1.4531521, %v2248_v16 }
 0xb18   :  { %v3906_v1 = vpack.c.bf16 %v2702_v34, %v2700_v41  ;;  %v2271_v56 = vmul.f32 %v4993_v59, %v2255_v42  ;;  %v2711_v41 = vld [vmem:[#allocation12 + $0x4e0] sm:$0xff]  ;;  %v2713_v34 = vld [vmem:[#allocation12 + $0x4f0] sm:$0xff]  ;;  %v2391_v42 = vsub.f32 0.0, %v4976_v6 }
 0xb19   :  { %2965 = vmatmul.mubr.f32.vlgmr.msra.gmra.mrb[16].mxu0 %v2541_v35  ;;  %v3908_v35 = vpack.c.bf16 %v2701_v5, %v2699_v57  ;;  %v2280_v22 = vmul.f32 %v4995_v4, %v2264_v43  ;;  %v2399_v5 = vmul.f32 %v2383_v8, %v4962_v31  ;;  %v2408_v43 = vmul.f32 %v2392_v37, %v4972_v9  ;;  %v2726_v8 = vld [vmem:[#allocation12 + $0x558] sm:$0xff] }
 0xb1a   :  { %2970 = vmatprep.mubr.f32.mxu0 %v2550_v48  ;;  %3893 = vmatpush1.bf16.msra.mxu0 %v3892_v50  ;;  %v4998_v55 = vpop.eup %4117  ;;  %v2708_v48 = vld [vmem:[#allocation12 + $0x4c8] sm:$0xff]  ;;  %v2287_v32 = vadd.f32 1.4214138, %v2271_v56 }
 0xb1b   :  { %3895 = vmatprep.subr.bf16.mxu0 %v3894_v0  ;;  %v5001_v49 = vpop.eup %4119  ;;  %v2247_v7 = vmul.f32 1.0614054, %v4998_v55  ;;  %v2703_v0 = vld [vmem:[#allocation12 + $0x4a0] sm:$0xff]  ;;  %v2720_v56 = vld [vmem:[#allocation12 + $0x528] sm:$0xff]  ;;  %v2437_v9 = vmul.f32 1.442695, %v2408_v43 }
 0xb1c   :  { %v2242_v50 = vmul.f32 1.0614054, %v5001_v49  ;;  %v3912_v23 = vpack.c.bf16 %v2705_v20, %v2703_v0  ;;  %v2303_v16 = vmul.f32 %v4993_v59, %v2287_v32  ;;  %v2717_v0 = vld [vmem:[#allocation12 + $0x510] sm:$0xff]  ;;  %v2719_v32 = vld [vmem:[#allocation12 + $0x520] sm:$0xff] }
 0xb1d   :  { %2971 = vmatmul.mubr.f32.gmra.mrb[18].mxu0 %v2549_v58  ;;  %v2263_v26 = vadd.f32 -1.4531521, %v2247_v7  ;;  %v2707_v58 = vld [vmem:[#allocation12 + $0x4c0] sm:$0xff]  ;;  %v2386_v7 = vsub.f32 0.0, %v4980_v24 }
 0xb1e   :  { %3897 = vmatpush1.bf16.msra.mxu0 %v3896_v36  ;;  %3041 = vmatprep.mubr.f32.mxu0 %v2544_v52  ;;  %v2258_v27 = vadd.f32 -1.4531521, %v2242_v50  ;;  %v3914_v36 = vpack.c.bf16 %v2710_v28, %v2708_v48  ;;  %v2714_v52 = vld [vmem:[#allocation12 + $0x4f8] sm:$0xff]  ;;  %v3920_v50 = vpack.c.bf16 %v2713_v34, %v2711_v41  ;;  %v2319_v20 = vadd.f32 -0.28449672, %v2303_v16  ;;  %v2723_v34 = vld [vmem:[#allocation12 + $0x540] sm:$0xff] }
 0xb1f   :  { %3899 = vmatprep.subr.bf16.mxu0 %v3898_v45  ;;  %v2709_v45 = vld [vmem:[#allocation12 + $0x4d0] sm:$0xff]  ;;  %v2279_v54 = vmul.f32 %v4998_v55, %v2263_v26  ;;  %v3918_v15 = vpack.c.bf16 %v2714_v52, %v2712_v33  ;;  %v2722_v48 = vld [vmem:[#allocation12 + $0x538] sm:$0xff]  ;;  %v2419_v28 = vmul.f32 1.442695, %v2399_v5  ;;  %v2407_v26 = vmul.f32 %v2391_v42, %v4976_v6 }
 0xb20   :  { %v3916_v44 = vpack.c.bf16 %v2709_v45, %v2707_v58  ;;  %v1801_v58 = vsub.s32 6, %v4568_v61  ;;  %v3926_v45 = vpack.c.bf16 %v2722_v48, %v2720_v56  ;;  %v2721_v33 = vld [vmem:[#allocation12 + $0x530] sm:$0xff]  ;;  %v2335_v52 = vmul.f32 %v4993_v59, %v2319_v20  ;;  %v4145_v61 = vld [vmem:[%s5163_s10] sm:$0xff]  ;;  %v2732_v20 = vld [vmem:[#allocation12 + $0x588] sm:$0xff]  ;;  %s4370_s10 = smov [#allocation15]  }
 0xb21   :  { %v2295_v57 = vadd.f32 1.4214138, %v2279_v54  ;;  %v2724_v54 = vld [vmem:[#allocation12 + $0x548] sm:$0xff]  ;;  %4121 = vpow2.f32 %v2419_v28  ;;  %v2435_v6 = vmul.f32 1.442695, %v2407_v26  ;;  %v2725_v16 = vld [vmem:[#allocation12 + $0x550] sm:$0xff] }
 0xb22   :  { %3901 = vmatpush1.bf16.msra.mxu0 %v3900_v46  ;;  %v2296_v46 = vadd.f32 1.4214138, %v2280_v22  ;;  %4123 = vpow2.f32 %v2437_v9  ;;  %v3930_v41 = vpack.c.bf16 %v2726_v8, %v2724_v54  ;;  %v2734_v56 = vld [vmem:[#allocation12 + $0x598] sm:$0xff]  ;;  %s3156_s20 = sshll.u32 %s4370_s10, 4  ;;  %s3157_s20 = int_to_ptr.vmem [resolvable:$true] %s3156_s20 }
 0xb23   :  { %3903 = vmatprep.subr.bf16.mxu0 %v3902_v29  ;;  %v2274_v29 = vmul.f32 %v5001_v49, %v2258_v27  ;;  %v2311_v31 = vmul.f32 %v4998_v55, %v2295_v57  ;;  %v2730_v57 = vld [vmem:[#allocation12 + $0x578] sm:$0xff]  ;;  %4125 = vpow2.f32 %v2435_v6  ;;  %v2735_v6 = vld [vmem:[#allocation12 + $0x5a0] sm:$0xff]  ;;  %s4278_s0 = scalar_lea.vmem %s3157_s20, 512  ;;  %p4283_p7 = scmp.lt.s32.totalorder %s3157_s20, %s3157_s20 }
 0xb24   :  { %v2312_v53 = vmul.f32 %v4995_v4, %v2296_v46  ;;  %p4279_p6 = scmp.ne.s32.totalorder %s3157_s20, %s4278_s0  ;;  %p4284_p8 = scmp.lt.s32.totalorder %s4278_s0, %s4278_s0 }
 0xb25   :  { %v2290_v2 = vadd.f32 1.4214138, %v2274_v29  ;;  %v2327_v46 = vadd.f32 -0.28449672, %v2311_v31 }
 0xb26   :  { %3905 = vmatpush1.bf16.msra.mxu0 %v3904_v17  ;;  %v2716_v17 = vld [vmem:[#allocation12 + $0x508] sm:$0xff]  ;;  %v2328_v22 = vadd.f32 -0.28449672, %v2312_v53  ;;  %p4285_p9 = por %p4284_p8, %p4283_p7 }
 0xb27   :  { %3907 = vmatprep.subr.bf16.mxu0 %v3906_v1  ;;  %v2718_v1 = vld [vmem:[#allocation12 + $0x518] sm:$0xff]  ;;  %v2306_v27 = vmul.f32 %v5001_v49, %v2290_v2  ;;  %v2343_v5 = vmul.f32 %v4998_v55, %v2327_v46  ;;  %v3932_v2 = vpack.c.bf16 %v2725_v16, %v2723_v34 }
 0xb28   :  { %v2344_v29 = vmul.f32 %v4995_v4, %v2328_v22  ;;  %p4286_p10 = pnand %p4285_p9, %p4279_p6 }
 0xb29   :  { %v2322_v37 = vadd.f32 -0.28449672, %v2306_v27  ;;  %v2359_v48 = vadd.f32 0.2548296, %v2343_v5  ;;  %v2741_v5 = vld [vmem:[#allocation12 + $0x5d0] sm:$0xff] }
 0xb2a   :  { %3909 = vmatpush1.bf16.msra.mxu0 %v3908_v35  ;;  %v3922_v35 = vpack.c.bf16 %v2718_v1, %v2716_v17  ;;  %v2351_v17 = vadd.f32 0.2548296, %v2335_v52  ;;  %v2728_v1 = vld [vmem:[#allocation12 + $0x568] sm:$0xff]  ;;  %v2360_v42 = vadd.f32 0.2548296, %v2344_v29  ;;  %v2737_v29 = vld [vmem:[#allocation12 + $0x5b0] sm:$0xff] }
 0xb2b   :  { %3911 = vmatprep.subr.bf16.mxu0 %v3910_v39  ;;  %v2715_v39 = vld [vmem:[#allocation12 + $0x500] sm:$0xff]  ;;  %v2338_v53 = vmul.f32 %v5001_v49, %v2322_v37  ;;  %v3934_v43 = vpack.c.bf16 %v2730_v57, %v2728_v1  ;;  %v3944_v34 = vpack.c.bf16 %v2737_v29, %v2735_v6  ;;  %v2754_v6 = vld [vmem:[#allocation12 + $0x638] sm:$0xff]  ;;  %v2127_v29 = vmul.f32 0.5, %v4934_v13 }
 0xb2c   :  { %v2376_v31 = vmul.f32 %v4995_v4, %v2360_v42  ;;  %v2736_v4 = vld [vmem:[#allocation12 + $0x5a8] sm:$0xff]  ;;  %v2739_v57 = vld [vmem:[#allocation12 + $0x5c0] sm:$0xff]  ;;  %v2130_v13 = vmul.f32 0.5, %v4956_v51 }
 0xb2d   :  { %v2354_v28 = vadd.f32 0.2548296, %v2338_v53 }
 0xb2e   :  { %3913 = vmatpush1.bf16.msra.mxu0 %v3912_v23  ;;  %v2402_v23 = vmul.f32 %v2386_v7, %v4980_v24 }
 0xb2f   :  { %3915 = vmatprep.subr.bf16.mxu0 %v3914_v36  ;;  %v3924_v36 = vpack.c.bf16 %v2717_v0, %v2715_v39  ;;  %v2367_v39 = vmul.f32 %v4993_v59, %v2351_v17  ;;  %v5035_v0 = vadd.f32 %v4909_v18, %v4939_v21  ;;  %v3938_v59 = vpack.c.bf16 %v2734_v56, %v2732_v20  ;;  %v2733_v18 = vld [vmem:[#allocation12 + $0x590] sm:$0xff]  ;;  %v2743_v56 = vld [vmem:[#allocation12 + $0x5e0] sm:$0xff] }
 0xb30   :  { %v2425_v24 = vmul.f32 1.442695, %v2402_v23  ;;  %v2731_v23 = vld [vmem:[#allocation12 + $0x580] sm:$0xff]  ;;  %v3948_v20 = vpack.c.bf16 %v2741_v5, %v2739_v57  ;;  %v2135_v57 = vmul.f32 0.5, %v4950_v12 }
 0xb31   :  { %v3940_v52 = vpack.c.bf16 %v2733_v18, %v2731_v23 }
 0xb32   :  { %3917 = vmatpush1.bf16.msra.mxu0 %v3916_v44  ;;  %v3928_v44 = vpack.c.bf16 %v2721_v33, %v2719_v32  ;;  %4127 = vpow2.f32 %v2425_v24  ;;  %v2370_v33 = vmul.f32 %v5001_v49, %v2354_v28  ;;  %v2742_v49 = vld [vmem:[#allocation12 + $0x5d8] sm:$0xff] }
 0xb33   :  { %3919 = vmatprep.subr.bf16.mxu0 %v3918_v15  ;;  %v1802_v15 = vrot.slane %v4145_v61, %v1801_v58  ;;  %v2738_v58 = vld [vmem:[#allocation12 + $0x5b8] sm:$0xff] }
 0xb34   :  { %v3942_v46 = vpack.c.bf16 %v2738_v58, %v2736_v4 }
 0xb35   :  { %v5030_v7 = vadd.f32 %v4885_v40, %v1802_v15  ;;  %v4122_v40 = vpop.eup %4121  ;;  %v5042_v27 = vadd.f32 %v4905_v30, %v1802_v15 }
 0xb36   :  { %3921 = vmatpush1.bf16.msra.mxu0 %v3920_v50  ;;  %v2727_v50 = vld [vmem:[#allocation12 + $0x560] sm:$0xff]  ;;  %v4124_v21 = vpop.eup %4123  ;;  %v2447_v9 = vmul.f32 %v4122_v40, %v2367_v39  ;;  %v2748_v40 = vld [vmem:[#allocation12 + $0x608] sm:$0xff] }
 0xb37   :  { %3923 = vmatprep.subr.bf16.mxu0 %v3922_v35  ;;  %v2729_v35 = vld [vmem:[#allocation12 + $0x570] sm:$0xff]  ;;  %v5039_v22 = vmul.f32 0.70710677, %v5030_v7  ;;  %v2456_v32 = vmul.f32 %v4124_v21, %v2376_v31  ;;  %v4126_v30 = vpop.eup %4125  ;;  %v5053_v8 = vmul.f32 0.70710677, %v5042_v27 }
 0xb38   :  { %v3936_v26 = vpack.c.bf16 %v2729_v35, %v2727_v50  ;;  %v2463_v24 = vsub.f32 1.0, %v2447_v9 }
 0xb39   :  { %v5050_v54 = vand.u32 2147483647, %v5039_v22  ;;  %v2472_v15 = vsub.f32 1.0, %v2456_v32  ;;  %v5060_v17 = vand.u32 2147483647, %v5053_v8  ;;  %vm2481_vm15 = vcmp.ge.f32.partialorder %v5039_v22, 0.0 }
 0xb3a   :  { %3925 = vmatpush1.bf16.msra.mxu0 %v3924_v36  ;;  %v5045_v36 = vmul.f32 0.70710677, %v5035_v0  ;;  %v2495_v42 = vsub.f32 0.0, %v2463_v24  ;;  %vm2489_vm1 = vcmp.ge.f32.partialorder %v5053_v8, 0.0  ;;  %v2138_v22 = vmul.f32 0.5, %v5035_v0 }
 0xb3b   :  { %3927 = vmatprep.subr.bf16.mxu0 %v3926_v45  ;;  %v2375_v45 = vmul.f32 %v4998_v55, %v2359_v48  ;;  %v2177_v16 = vmul.f32 0.3275911, %v5050_v54  ;;  %v2504_v35 = vsub.f32 0.0, %v2472_v15  ;;  %v2745_v48 = vld [vmem:[#allocation12 + $0x5f0] sm:$0xff]  ;;  %v2185_v28 = vmul.f32 0.3275911, %v5060_v17 }
 0xb3c   :  { %v4128_v37 = vpop.eup %4127  ;;  %v5056_v55 = vand.u32 2147483647, %v5045_v36  ;;  %v2511_v23 = vsel %vm2479_vm11, %v2463_v24, %v2495_v42  ;;  %v3952_v58 = vpack.c.bf16 %v2745_v48, %v2743_v56  ;;  %v2136_v24 = vmul.f32 0.5, %v4943_v19  ;;  %v2759_v56 = vld [vmem:[#allocation12 + $0x660] sm:$0xff]  ;;  %v2761_v48 = vld [vmem:[#allocation12 + $0x670] sm:$0xff] }
 0xb3d   :  { %v2455_v61 = vmul.f32 %v4126_v30, %v2375_v45  ;;  %v2193_v31 = vadd.f32 1.0, %v2177_v16  ;;  %v2520_v9 = vsel %vm2488_vm12, %v2472_v15, %v2504_v35  ;;  %v2527_v32 = vadd.f32 1.0, %v2511_v23  ;;  %v2751_v15 = vld [vmem:[#allocation12 + $0x620] sm:$0xff]  ;;  %v2756_v16 = vld [vmem:[#allocation12 + $0x648] sm:$0xff]  ;;  %v2762_v35 = vld [vmem:[#allocation12 + $0x678] sm:$0xff] }
 0xb3e   :  { %3929 = vmatpush1.bf16.msra.mxu0 %v3928_v44  ;;  %v2740_v44 = vld [vmem:[#allocation12 + $0x5c8] sm:$0xff]  ;;  %v2186_v53 = vmul.f32 0.3275911, %v5056_v55  ;;  %v2201_v25 = vadd.f32 1.0, %v2185_v28  ;;  %v2536_v30 = vadd.f32 1.0, %v2520_v9  ;;  %v3968_v23 = vpack.c.bf16 %v2761_v48, %v2759_v56  ;;  %v2765_v9 = vld [vmem:[#allocation12 + $0x690] sm:$0xff] }
 0xb3f   :  { %3931 = vmatprep.subr.bf16.mxu0 %v3930_v41  ;;  %v2450_v41 = vmul.f32 %v4128_v37, %v2370_v33  ;;  %v3946_v1 = vpack.c.bf16 %v2742_v49, %v2740_v44  ;;  %v2471_v50 = vsub.f32 1.0, %v2455_v61  ;;  %4129 = vrcp.f32 %v2193_v31  ;;  %v2747_v33 = vld [vmem:[#allocation12 + $0x600] sm:$0xff]  ;;  %v2764_v28 = vld [vmem:[#allocation12 + $0x688] sm:$0xff] }
 0xb40   :  { %v2202_v18 = vadd.f32 1.0, %v2186_v53  ;;  %v2543_v49 = vmul.f32 %v2527_v32, %v2127_v29  ;;  %v2552_v38 = vmul.f32 %v2536_v30, %v2136_v24  ;;  %v2755_v53 = vld [vmem:[#allocation12 + $0x640] sm:$0xff]  ;;  %v2774_v29 = vld [vmem:[#allocation12 + $0x6d8] sm:$0xff]  ;;  %vm2490_vm0 = vcmp.ge.f32.partialorder %v5045_v36, 0.0 }
 0xb41   :  { %v2466_v39 = vsub.f32 1.0, %v2450_v41  ;;  %v2503_v21 = vsub.f32 0.0, %v2471_v50  ;;  %v2753_v41 = vld [vmem:[#allocation12 + $0x630] sm:$0xff]  ;;  %v2767_v30 = vld [vmem:[#allocation12 + $0x6a0] sm:$0xff]  ;;  %v2137_v36 = vmul.f32 0.5, %v5042_v27 }
 0xb42   :  { %3933 = vmatpush1.bf16.msra.mxu0 %v3932_v2  ;;  %v2744_v2 = vld [vmem:[#allocation12 + $0x5e8] sm:$0xff]  ;;  %4131 = vrcp.f32 %v2202_v18  ;;  %v3960_v19 = vpack.c.bf16 %v2753_v41, %v2751_v15 }
 0xb43   :  { %3935 = vmatprep.subr.bf16.mxu0 %v3934_v43  ;;  %v2746_v43 = vld [vmem:[#allocation12 + $0x5f8] sm:$0xff]  ;;  %v2498_v4 = vsub.f32 0.0, %v2466_v39  ;;  %v2519_v47 = vsel %vm2487_vm13, %v2471_v50, %v2503_v21  ;;  %4133 = vrcp.f32 %v2201_v25  ;;  %v2760_v50 = vld [vmem:[#allocation12 + $0x668] sm:$0xff]  ;;  %v2763_v21 = vld [vmem:[#allocation12 + $0x680] sm:$0xff] }
 0xb44   :  { %v2535_v14 = vadd.f32 1.0, %v2519_v47  ;;  %v3966_v51 = vpack.c.bf16 %v2762_v35, %v2760_v50  ;;  %v2769_v47 = vld [vmem:[#allocation12 + $0x6b0] sm:$0xff]  ;;  %v2776_v41 = vld [vmem:[#allocation12 + $0x6e8] sm:$0xff] }
 0xb45   :  { %v2514_v37 = vsel %vm2482_vm14, %v2466_v39, %v2498_v4 }
 0xb46   :  { %3937 = vmatpush1.bf16.msra.mxu0 %v3936_v26  ;;  %v3950_v26 = vpack.c.bf16 %v2746_v43, %v2744_v2  ;;  %v2551_v5 = vmul.f32 %v2535_v14, %v2135_v57  ;;  %v2757_v2 = vld [vmem:[#allocation12 + $0x650] sm:$0xff]  ;;  %v2771_v14 = vld [vmem:[#allocation12 + $0x6c0] sm:$0xff]  ;;  %v2394_v57 = vsub.f32 0.0, %v5056_v55 }
 0xb47   :  { %3939 = vmatprep.subr.bf16.mxu0 %v3938_v59  ;;  %v2750_v59 = vld [vmem:[#allocation12 + $0x618] sm:$0xff]  ;;  %v3964_v12 = vpack.c.bf16 %v2757_v2, %v2755_v53  ;;  %v2780_v2 = vld [vmem:[#allocation12 + $0x708] sm:$0xff] }
 0xb48   :  { %v3954_v45 = vpack.c.bf16 %v2750_v59, %v2748_v40  ;;  %v2410_v56 = vmul.f32 %v2394_v57, %v5056_v55  ;;  %v2796_v57 = vld [vmem:[#allocation12 + $0x788] sm:$0xff] }
 0xb49   :  { %v5072_v39 = vpop.eup %4129 }
 0xb4a   :  { %3941 = vmatpush1.bf16.msra.mxu0 %v3940_v52  ;;  %v2749_v52 = vld [vmem:[#allocation12 + $0x610] sm:$0xff]  ;;  %v2241_v31 = vmul.f32 1.0614054, %v5072_v39 }
 0xb4b   :  { %3943 = vmatprep.subr.bf16.mxu0 %v3942_v46  ;;  %v2752_v46 = vld [vmem:[#allocation12 + $0x628] sm:$0xff]  ;;  %v3956_v44 = vpack.c.bf16 %v2749_v52, %v2747_v33  ;;  %v3972_v33 = vpack.c.bf16 %v2765_v9, %v2763_v21 }
 0xb4c   :  { %v3958_v61 = vpack.c.bf16 %v2754_v6, %v2752_v46  ;;  %v2257_v4 = vadd.f32 -1.4531521, %v2241_v31  ;;  %v2772_v6 = vld [vmem:[#allocation12 + $0x6c8] sm:$0xff] }
 0xb4e   :  { %3945 = vmatpush1.bf16.msra.mxu0 %v3944_v34  ;;  %v2530_v34 = vadd.f32 1.0, %v2514_v37  ;;  %v2273_v46 = vmul.f32 %v5072_v39, %v2257_v4 }
 0xb4f   :  { %3947 = vmatprep.subr.bf16.mxu0 %v3946_v1  ;;  %v2758_v1 = vld [vmem:[#allocation12 + $0x658] sm:$0xff] }
 0xb50   :  { %v3962_v42 = vpack.c.bf16 %v2758_v1, %v2756_v16  ;;  %v2546_v43 = vmul.f32 %v2530_v34, %v2130_v13  ;;  %v2289_v15 = vadd.f32 1.4214138, %v2273_v46  ;;  %v2385_v16 = vsub.f32 0.0, %v5050_v54 }
 0xb52   :  { %3949 = vmatpush1.bf16.msra.mxu0 %v3948_v20  ;;  %v5074_v20 = vpop.eup %4131  ;;  %v2305_v53 = vmul.f32 %v5072_v39, %v2289_v15  ;;  %v2401_v35 = vmul.f32 %v2385_v16, %v5050_v54  ;;  %v2793_v16 = vld [vmem:[#allocation12 + $0x770] sm:$0xff] }
 0xb53   :  { %3951 = vmatprep.subr.bf16.mxu0 %v3950_v26  ;;  %v2766_v26 = vld [vmem:[#allocation12 + $0x698] sm:$0xff]  ;;  %v5077_v40 = vpop.eup %4133  ;;  %v2250_v59 = vmul.f32 1.0614054, %v5074_v20 }
 0xb54   :  { %v3970_v18 = vpack.c.bf16 %v2766_v26, %v2764_v28  ;;  %v2249_v32 = vmul.f32 1.0614054, %v5077_v40  ;;  %v2779_v28 = vld [vmem:[#allocation12 + $0x700] sm:$0xff]  ;;  %v2781_v26 = vld [vmem:[#allocation12 + $0x710] sm:$0xff]  ;;  %v2423_v9 = vmul.f32 1.442695, %v2401_v35 }
 0xb55   :  { %v2266_v25 = vadd.f32 -1.4531521, %v2250_v59  ;;  %v2321_v59 = vadd.f32 -0.28449672, %v2305_v53 }
 0xb56   :  { %3953 = vmatpush1.bf16.msra.mxu0 %v3952_v58  ;;  %v2768_v58 = vld [vmem:[#allocation12 + $0x6a8] sm:$0xff]  ;;  %v2265_v37 = vadd.f32 -1.4531521, %v2249_v32  ;;  %v2783_v32 = vld [vmem:[#allocation12 + $0x720] sm:$0xff]  ;;  %4135 = vpow2.f32 %v2423_v9 }
 0xb57   :  { %3955 = vmatprep.subr.bf16.mxu0 %v3954_v45  ;;  %v2770_v45 = vld [vmem:[#allocation12 + $0x6b8] sm:$0xff]  ;;  %v2282_v24 = vmul.f32 %v5074_v20, %v2266_v25  ;;  %v2785_v25 = vld [vmem:[#allocation12 + $0x730] sm:$0xff] }
 0xb58   :  { %v3974_v52 = vpack.c.bf16 %v2770_v45, %v2768_v58  ;;  %v2281_v34 = vmul.f32 %v5077_v40, %v2265_v37  ;;  %v2441_v58 = vmul.f32 1.442695, %v2410_v56  ;;  %v3988_v45 = vpack.c.bf16 %v2781_v26, %v2779_v28  ;;  %v2787_v37 = vld [vmem:[#allocation12 + $0x740] sm:$0xff]  ;;  %v2802_v56 = vld [vmem:[#allocation12 + $0x7b8] sm:$0xff] }
 0xb59   :  { %3042 = vmatmul.mubr.f32.vlgmr.msra.gmra.mrb[16].mxu0 %v2543_v49  ;;  %v3978_v49 = vpack.c.bf16 %v2774_v29, %v2772_v6  ;;  %v2298_v1 = vadd.f32 1.4214138, %v2282_v24  ;;  %v2789_v24 = vld [vmem:[#allocation12 + $0x750] sm:$0xff] }
 0xb5a   :  { %3047 = vmatprep.mubr.f32.mxu0 %v2552_v38  ;;  %3957 = vmatpush1.bf16.msra.mxu0 %v3956_v44  ;;  %v3976_v44 = vpack.c.bf16 %v2769_v47, %v2767_v30  ;;  %v2778_v38 = vld [vmem:[#allocation12 + $0x6f8] sm:$0xff]  ;;  %v2297_v50 = vadd.f32 1.4214138, %v2281_v34  ;;  %4137 = vpow2.f32 %v2441_v58  ;;  %v2791_v34 = vld [vmem:[#allocation12 + $0x760] sm:$0xff] }
 0xb5b   :  { %3959 = vmatprep.subr.bf16.mxu0 %v3958_v61  ;;  %v2773_v61 = vld [vmem:[#allocation12 + $0x6d0] sm:$0xff]  ;;  %v2790_v30 = vld [vmem:[#allocation12 + $0x758] sm:$0xff] }
 0xb5c   :  { %v3980_v13 = vpack.c.bf16 %v2773_v61, %v2771_v14  ;;  %v2313_v21 = vmul.f32 %v5077_v40, %v2297_v50  ;;  %v2794_v14 = vld [vmem:[#allocation12 + $0x778] sm:$0xff]  ;;  %v2797_v50 = vld [vmem:[#allocation12 + $0x790] sm:$0xff] }
 0xb5d   :  { %3048 = vmatmul.mubr.f32.gmra.mrb[18].mxu0 %v2551_v5  ;;  %v2775_v5 = vld [vmem:[#allocation12 + $0x6e0] sm:$0xff] }
 0xb5e   :  { %3961 = vmatpush1.bf16.msra.mxu0 %v3960_v19  ;;  %3118 = vmatprep.mubr.f32.mxu0 %v2546_v43  ;;  %v3982_v19 = vpack.c.bf16 %v2778_v38, %v2776_v41  ;;  %v2782_v43 = vld [vmem:[#allocation12 + $0x718] sm:$0xff]  ;;  %v2329_v47 = vadd.f32 -0.28449672, %v2313_v21  ;;  %v3996_v41 = vpack.c.bf16 %v2789_v24, %v2787_v37 }
 0xb5f   :  { %3963 = vmatprep.subr.bf16.mxu0 %v3962_v42  ;;  %v2777_v42 = vld [vmem:[#allocation12 + $0x6f0] sm:$0xff]  ;;  %v3986_v31 = vpack.c.bf16 %v2782_v43, %v2780_v2  ;;  %v2795_v43 = vld [vmem:[#allocation12 + $0x780] sm:$0xff]  ;;  %v2806_v21 = vld [vmem:[#allocation12 + $0x7d8] sm:$0xff] }
 0xb60   :  { %v3984_v48 = vpack.c.bf16 %v2777_v42, %v2775_v5  ;;  %v2345_v61 = vmul.f32 %v5077_v40, %v2329_v47  ;;  %v4000_v42 = vpack.c.bf16 %v2793_v16, %v2791_v34  ;;  %v4136_v53 = vpop.eup %4135 }
 0xb62   :  { %3965 = vmatpush1.bf16.msra.mxu0 %v3964_v12  ;;  %v2393_v12 = vsub.f32 0.0, %v5060_v17 }
 0xb63   :  { %3967 = vmatprep.subr.bf16.mxu0 %v3966_v51  ;;  %v2314_v51 = vmul.f32 %v5074_v20, %v2298_v1 }
 0xb64   :  { %v2409_v54 = vmul.f32 %v2393_v12, %v5060_v17  ;;  %v3992_v17 = vpack.c.bf16 %v2785_v25, %v2783_v32  ;;  %v4138_v35 = vpop.eup %4137  ;;  %v2808_v32 = vld [vmem:[#allocation12 + $0x7e8] sm:$0xff]  ;;  %v2810_v25 = vld [vmem:[#allocation12 + $0x7f8] sm:$0xff] }
 0xb65   :  { %v2330_v4 = vadd.f32 -0.28449672, %v2314_v51  ;;  %v2800_v51 = vld [vmem:[#allocation12 + $0x7a8] sm:$0xff]  ;;  %v4014_v47 = vpack.c.bf16 %v2810_v25, %v2808_v32 }
 0xb66   :  { %3969 = vmatpush1.bf16.msra.mxu0 %v3968_v23  ;;  %v2784_v23 = vld [vmem:[#allocation12 + $0x728] sm:$0xff]  ;;  %v2439_v46 = vmul.f32 1.442695, %v2409_v54  ;;  %v4006_v26 = vpack.c.bf16 %v2802_v56, %v2800_v51 }
 0xb67   :  { %3971 = vmatprep.subr.bf16.mxu0 %v3970_v18  ;;  %v2786_v18 = vld [vmem:[#allocation12 + $0x738] sm:$0xff]  ;;  %v2346_v6 = vmul.f32 %v5074_v20, %v2330_v4 }
 0xb68   :  { %v3990_v55 = vpack.c.bf16 %v2786_v18, %v2784_v23  ;;  %4139 = vpow2.f32 %v2439_v46  ;;  %v2804_v18 = vld [vmem:[#allocation12 + $0x7c8] sm:$0xff]  ;;  %v2807_v46 = vld [vmem:[#allocation12 + $0x7e0] sm:$0xff] }
 0xb69   :  { %v2362_v15 = vadd.f32 0.2548296, %v2346_v6  ;;  %v4010_v58 = vpack.c.bf16 %v2806_v21, %v2804_v18  ;;  %v2809_v6 = vld [vmem:[#allocation12 + $0x7f0] sm:$0xff] }
 0xb6a   :  { %3973 = vmatpush1.bf16.msra.mxu0 %v3972_v33  ;;  %v2337_v33 = vmul.f32 %v5072_v39, %v2321_v59  ;;  %v2801_v59 = vld [vmem:[#allocation12 + $0x7b0] sm:$0xff]  ;;  %v4016_v24 = vpack.c.bf16 %v2809_v6, %v2807_v46 }
 0xb6b   :  { %3975 = vmatprep.subr.bf16.mxu0 %v3974_v52  ;;  %v2788_v52 = vld [vmem:[#allocation12 + $0x748] sm:$0xff]  ;;  %v2378_v5 = vmul.f32 %v5074_v20, %v2362_v15  ;;  %v2799_v20 = vld [vmem:[#allocation12 + $0x7a0] sm:$0xff] }
 0xb6c   :  { %v3994_v29 = vpack.c.bf16 %v2790_v30, %v2788_v52  ;;  %v4008_v4 = vpack.c.bf16 %v2801_v59, %v2799_v20 }
 0xb6e   :  { %3977 = vmatpush1.bf16.msra.mxu0 %v3976_v44  ;;  %v2353_v44 = vadd.f32 0.2548296, %v2337_v33 }
 0xb6f   :  { %3979 = vmatprep.subr.bf16.mxu0 %v3978_v49  ;;  %v2792_v49 = vld [vmem:[#allocation12 + $0x768] sm:$0xff] }
 0xb70   :  { %v3998_v38 = vpack.c.bf16 %v2794_v14, %v2792_v49  ;;  %v2369_v1 = vmul.f32 %v5072_v39, %v2353_v44  ;;  %v4004_v39 = vpack.c.bf16 %v2797_v50, %v2795_v43 }
 0xb72   :  { %3981 = vmatpush1.bf16.msra.mxu0 %v3980_v13  ;;  %v2798_v13 = vld [vmem:[#allocation12 + $0x798] sm:$0xff]  ;;  %v2449_v12 = vmul.f32 %v4136_v53, %v2369_v1  ;;  %v4140_v28 = vpop.eup %4139 }
 0xb73   :  { %3983 = vmatprep.subr.bf16.mxu0 %v3982_v19  ;;  %v2361_v19 = vadd.f32 0.2548296, %v2345_v61  ;;  %v4002_v2 = vpack.c.bf16 %v2798_v13, %v2796_v57  ;;  %v2129_v61 = vmul.f32 0.5, %v5030_v7 }
 0xb74   :  { %v2465_v23 = vsub.f32 1.0, %v2449_v12 }
 0xb76   :  { %3985 = vmatpush1.bf16.msra.mxu0 %v3984_v48  ;;  %v2377_v48 = vmul.f32 %v5077_v40, %v2361_v19  ;;  %v2497_v40 = vsub.f32 0.0, %v2465_v23 }
 0xb77   :  { %3987 = vmatprep.subr.bf16.mxu0 %v3986_v31  ;;  %v2458_v31 = vmul.f32 %v4138_v35, %v2378_v5 }
 0xb78   :  { %v2457_v9 = vmul.f32 %v4140_v28, %v2377_v48 }
 0xb79   :  { %v2474_v54 = vsub.f32 1.0, %v2458_v31 }
 0xb7a   :  { %3989 = vmatpush1.bf16.msra.mxu0 %v3988_v45  ;;  %v2803_v45 = vld [vmem:[#allocation12 + $0x7c0] sm:$0xff]  ;;  %v2473_v33 = vsub.f32 1.0, %v2457_v9 }
 0xb7b   :  { %3991 = vmatprep.subr.bf16.mxu0 %v3990_v55  ;;  %v2805_v55 = vld [vmem:[#allocation12 + $0x7d0] sm:$0xff]  ;;  %v2506_v52 = vsub.f32 0.0, %v2474_v54 }
 0xb7c   :  { %v4012_v30 = vpack.c.bf16 %v2805_v55, %v2803_v45 }
 0xb7d   :  { %v2522_v37 = vsel %vm2490_vm0, %v2474_v54, %v2506_v52 }
 0xb7e   :  { %3993 = vmatpush1.bf16.msra.mxu0 %v3992_v17  ;;  %v2513_v17 = vsel %vm2481_vm15, %v2465_v23, %v2497_v40  ;;  %v2538_v49 = vadd.f32 1.0, %v2522_v37 }
 0xb7f   :  { %3995 = vmatprep.subr.bf16.mxu0 %v3994_v29  ;;  %v2505_v29 = vsub.f32 0.0, %v2473_v33  ;;  %v2529_v44 = vadd.f32 1.0, %v2513_v17 }
 0xb81   :  { %v2521_v14 = vsel %vm2489_vm1, %v2473_v33, %v2505_v29  ;;  %v2545_v15 = vmul.f32 %v2529_v44, %v2129_v61 }
 0xb82   :  { %3997 = vmatpush1.bf16.msra.mxu0 %v3996_v41  ;;  %v2537_v41 = vadd.f32 1.0, %v2521_v14 }
 0xb83   :  { %3999 = vmatprep.subr.bf16.mxu0 %v3998_v38  ;;  %v2554_v38 = vmul.f32 %v2538_v49, %v2138_v22 }
 0xb84   :  { %v2553_v34 = vmul.f32 %v2537_v41, %v2137_v36 }
 0xb86   :  { %4001 = vmatpush1.bf16.msra.mxu0 %v4000_v42 }
 0xb87   :  { %4003 = vmatprep.subr.bf16.mxu0 %v4002_v2 }
 0xb8a   :  { %4005 = vmatpush1.bf16.msra.mxu0 %v4004_v39 }
 0xb8b   :  { %4007 = vmatprep.subr.bf16.mxu0 %v4006_v26 }
 0xb8e   :  { %4009 = vmatpush1.bf16.msra.mxu0 %v4008_v4 }
 0xb8f   :  { %4011 = vmatprep.subr.bf16.mxu0 %v4010_v58 }
 0xb92   :  { %4013 = vmatpush1.bf16.msra.mxu0 %v4012_v30 }
 0xb93   :  { %4015 = vmatprep.subr.bf16.mxu0 %v4014_v47 }
 0xb96   :  { %4017 = vmatpush1.bf16.msra.mxu0 %v4016_v24 }
 0xb99   :  { %3119 = vmatmul.mubr.f32.vlgmr.msra.gmra.mrb[16].mxu0 %v2545_v15 }
 0xb9a   :  { %3124 = vmatprep.mubr.f32.mxu0 %v2554_v38 }
 0xb9d   :  { %3125 = vmatmul.mubr.f32.gmra.mrb[18].mxu0 %v2553_v34 }
 0xb9e   :  { %4289 = shalt.err (!%p4286_p10)
}
 0xb9f   :  { %s4290_s23 = scalar_lea.hbm %s5167_s14, 512 }
 0xba0   :  { %p4291_p11 = scmp.ne.s32.totalorder %s5167_s14, %s4290_s23  ;;  %p4294_p12 = scmp.lt.u32.totalorder %s4290_s23, %s5167_s14 }
 0xba2   :  { %p4296_p13 = pnand %p4294_p12, %p4291_p11 }
 0xba4   :  { %4299 = shalt.err (!%p4296_p13)
}
 0xba5   :  { %s4371_s9 = smov 128   ;;  %s4372_s19 = smov 8  }
 0xba6   :  { %3162 = dma.vmem_to_hbm [thread:$0]  %s3157_s20, 512, %s5167_s14, [#allocation16], %s4371_s9, %s4371_s9, %s4372_s19  }
 0xba7   :  { %s4373_s29 = smov [#allocation17]  }
 0xba8   :  { %s3168_s30 = sshll.u32 %s4373_s29, 4  ;;  %s3169_s30 = int_to_ptr.vmem [resolvable:$true] %s3168_s30 }
 0xba9   :  { %s4300_s5 = scalar_lea.vmem %s3169_s30, 512  ;;  %p4305_p1 = scmp.lt.s32.totalorder %s3169_s30, %s3169_s30 }
 0xbaa   :  { %p4301_p0 = scmp.ne.s32.totalorder %s3169_s30, %s4300_s5  ;;  %p4306_p2 = scmp.lt.s32.totalorder %s4300_s5, %s4300_s5 }
 0xbac   :  { %p4307_p3 = por %p4306_p2, %p4305_p1 }
 0xbae   :  { %p4308_p4 = pnand %p4307_p3, %p4301_p0 }
 0xbb0   :  { %4311 = shalt.err (!%p4308_p4)
}
 0xbb1   :  { %s4312_s3 = scalar_lea.hbm %s5168_s15, 512 }
 0xbb2   :  { %p4313_p5 = scmp.ne.s32.totalorder %s5168_s15, %s4312_s3  ;;  %p4316_p6 = scmp.lt.u32.totalorder %s4312_s3, %s5168_s15 }
 0xbb4   :  { %p4318_p7 = pnand %p4316_p6, %p4313_p5 }
 0xbb6   :  { %4321 = shalt.err (!%p4318_p7)
}
 0xbb7   :  { %3174 = dma.vmem_to_hbm [thread:$0]  %s3169_s30, 512, %s5168_s15, [#allocation16], %s4371_s9, %s4371_s9, %s4372_s19  }
 0xbb8   :  { %v2811_v7 = vld [vmem:[%s5165_s12] sm:$0x3]  ;;  %s4374_s15 = smov [#allocation14]  }
 0xbb9   :  { %v2816_v0 = vrot.slane %v2811_v7, %v4574_v3  ;;  %v2820_v27 = vrot.slane %v2811_v7, %v4571_v63  ;;  %s3144_s20 = sshll.u32 %s4374_s15, 4  ;;  %s3145_s20 = int_to_ptr.vmem [resolvable:$true] %s3144_s20 }
 0xbba   :  { %s4322_s12 = scalar_lea.vmem %s3145_s20, 512  ;;  %p4327_p9 = scmp.lt.s32.totalorder %s3145_s20, %s3145_s20 }
 0xbbb   :  { %p4323_p8 = scmp.ne.s32.totalorder %s3145_s20, %s4322_s12  ;;  %p4328_p10 = scmp.lt.s32.totalorder %s4322_s12, %s4322_s12 }
 0xbbd   :  { %p4329_p11 = por %p4328_p10, %p4327_p9 }
 0xbbf   :  { %p4330_p12 = pnand %p4329_p11, %p4323_p8 }
 0xc6c   :  { %v3120_v8 = vpop.f32.mrb[16].mxu0 }
 0xc6d   :  { %v4018_v16 = vadd.f32 %v3120_v8, %v2816_v0  ;;  %v3122_v1 = vpop.f32.mrb[17].mxu0 }
 0xc6e   :  { %v4019_v57 = vadd.f32 %v3122_v1, %v2820_v27 }
 0xc6f   :  { %v3131_v13 = vadd.f32 %v4018_v16, %v4693_v60 }
 0xc70   :  { %v3132_v19 = vadd.f32 %v4019_v57, %v4695_v62  ;;  %v3126_v5 = vpop.f32.mrb[18].mxu0 }
 0xc71   :  { %3135 = vst [vmem:[#allocation14] sm:$0xff] %v3131_v13  ;;  %v4020_v42 = vadd.f32 %v3126_v5, %v2816_v0  ;;  %v3128_v53 = vpop.f32.mrb[19].mxu0 }
 0xc72   :  { %3136 = vst [vmem:[#allocation14 + $0x8] sm:$0xff] %v3132_v19  ;;  %v4021_v2 = vadd.f32 %v3128_v53, %v2820_v27 }
 0xc73   :  { %v3133_v3 = vadd.f32 %v4020_v42, %v4699_v10 }
 0xc74   :  { %v3134_v63 = vadd.f32 %v4021_v2, %v4701_v11 }
 0xc75   :  { %3137 = vst [vmem:[#allocation14 + $0x10] sm:$0xff] %v3133_v3 }
 0xc76   :  { %3138 = vst [vmem:[#allocation14 + $0x18] sm:$0xff] %v3134_v63 }
 0xc77   :  { %4333 = shalt.err (!%p4330_p12)
}
 0xc78   :  { %s5171_s22 = sld [smem:[#allocation24_spill]] }
 0xc7e   :  { %s4334_s23 = scalar_lea.hbm %s5171_s22, 512 }
 0xc7f   :  { %p4335_p13 = scmp.ne.s32.totalorder %s5171_s22, %s4334_s23  ;;  %p4338_p0 = scmp.lt.u32.totalorder %s4334_s23, %s5171_s22 }
 0xc81   :  { %p4340_p1 = pnand %p4338_p0, %p4335_p13 }
 0xc83   :  { %4343 = shalt.err (!%p4340_p1)
}
 0xc84   :  { %3150 = dma.vmem_to_hbm [thread:$0]  %s3145_s20, 512, %s5171_s22, [#allocation5], %s4361_s4, %s4361_s4, %s4362_s18  }
 0xc85   :  { %4352 = dma.done.wait [#allocation5], 512  }
 0xc86   :  { %4353 = vsyncadd [#allocation5], 4294966784 }
 0xc87   :  { %4354 = dma.done.wait [#allocation16], 1024  }
 0xc88   :  { %4355 = vsyncadd [#allocation16], 4294966272 }
 0xc89   :  { %3184 = vsyncpa [#allocation4], 1 }
 0xc8a   :  { %3185 = vsyncpa [#allocation7], 1 }
 0xc8b   :  { %3186 = vsyncpa [#allocation10], 1 }
 0xc8c   :  { %3187 = vsyncpa [#allocation13], 1 }
 0xc8d   :  { %3188 = vsyncpa [#allocation5], 1 }
 0xc8e   :  { %3189 = vsyncpa [#allocation16], 1 }

</bundles_post_ra>
